<compile_context>
chip_gen: v5e
topology: v5e:2x2
jax: 0.10.0
libtpu: 0.0.40
codegen_flags: <defaults>
</compile_context>

<pallas_src>
import functools

import jax
import jax.numpy as jnp
from jax import lax
from jax.experimental import pallas as pl
from jax.experimental.pallas import tpu as pltpu

BN_EPS = 1e-5
LEAKY_SLOPE = 0.01  # nn.LeakyReLU() default


def _conv_bn_lrelu_kernel(x_ref, w_ref, gamma_ref, beta_ref, out_ref, *,
                          N, H, W, Cin, Cout):
    """Fully fused ConvBlocka forward for the whole (small) batch.

    x_ref:     (N, Cin, H, W)   NCHW input (no wrapper transpose)
    w_ref:     (Cout, 9*Cin)    conv weights, K ordered (kh, kw, ci)
    gamma_ref: (Cout, 1)        BN weight
    beta_ref:  (Cout, 1)        BN bias
    out_ref:   (N, Cout, H*W)   lane-dense output (wrapper does a free reshape)
    """
    HW = H * W

    # --- im2col with K in sublanes, flattened spatial in lanes --------------
    # patches[(kh*3+kw)*Cin + ci, h*W + w] = xpad[ci, h+kh, w+kw]
    cols = []
    for n in range(N):                                   # N=2, unrolled at trace
        x = x_ref[n]                                     # (Cin, H, W)
        # reflect pad (pad=1) fused into the kernel
        xp = jnp.concatenate([x[:, 1:2, :], x, x[:, H - 2:H - 1, :]], axis=1)
        xp = jnp.concatenate([xp[:, :, 1:2], xp, xp[:, :, W - 2:W - 1]], axis=2)
        p = jnp.concatenate(
            [xp[:, kh:kh + H, kw:kw + W] for kh in range(3) for kw in range(3)],
            axis=0)                                      # (9*Cin, H, W)
        cols.append(p.reshape(9 * Cin, HW))              # (9*Cin, H*W)
    patches = jnp.concatenate(cols, axis=1)              # (9*Cin, N*H*W)

    # --- single MXU matmul: (Cout, 9Cin) @ (9Cin, N*H*W) --------------------
    # TODO(synk): cast operands to bf16 (keep f32 accumulate) once shapes are
    # large enough for the MXU to matter on v6e/v7x.
    acc = jnp.dot(w_ref[...], patches,
                  preferred_element_type=jnp.float32)    # (Cout, N*H*W)

    # --- BatchNorm, training mode, true two-pass batch statistics -----------
    cnt = float(N * HW)
    mean = jnp.sum(acc, axis=1, keepdims=True) / cnt     # (Cout, 1)
    centered = acc - mean
    var = jnp.sum(centered * centered, axis=1, keepdims=True) / cnt
    scale = gamma_ref[...] * lax.rsqrt(var + BN_EPS)     # (Cout, 1)
    y = centered * scale + beta_ref[...]                 # folded affine FMA

    # --- LeakyReLU -----------------------------------------------------------
    y = jnp.where(y >= 0, y, LEAKY_SLOPE * y)

    # --- lane-dense unmasked stores: one (Cout, H*W) slab per batch element --
    for n in range(N):
        out_ref[n] = y[:, n * HW:(n + 1) * HW]


@jax.jit
def conv_block_a(x_nchw, weight, gamma, beta):
    """x_nchw: (N, Cin, H, W) f32; weight: (Cout, Cin, 3, 3) f32 (PyTorch layout);
       gamma, beta: (Cout,) f32.  Returns (N, Cout, H, W) f32."""
    N, Cin, H, W = x_nchw.shape
    Cout = weight.shape[0]
    HW = H * W

    # (Cout, Cin, kh, kw) -> (Cout, kh, kw, ci) -> (Cout, 9*Cin); matches the
    # in-kernel im2col K ordering (kh major, kw middle, ci minor).
    w2 = jnp.transpose(weight, (0, 2, 3, 1)).reshape(Cout, 9 * Cin)
    g2 = gamma.reshape(Cout, 1)
    b2 = beta.reshape(Cout, 1)

    out = pl.pallas_call(
        functools.partial(_conv_bn_lrelu_kernel,
                          N=N, H=H, W=W, Cin=Cin, Cout=Cout),
        grid=(1,),
        in_specs=[
            pl.BlockSpec((N, Cin, H, W), lambda i: (0, 0, 0, 0)),
            pl.BlockSpec((Cout, 9 * Cin), lambda i: (0, 0)),
            pl.BlockSpec((Cout, 1), lambda i: (0, 0)),
            pl.BlockSpec((Cout, 1), lambda i: (0, 0)),
        ],
        out_specs=pl.BlockSpec((N, Cout, HW), lambda i: (0, 0, 0)),
        out_shape=jax.ShapeDtypeStruct((N, Cout, HW), jnp.float32),
        compiler_params=pltpu.CompilerParams(
            dimension_semantics=("arbitrary",)),
    )(x_nchw, w2, g2, b2)

    # Only a reshape of the lane-dense kernel output; no activation transpose.
    return out.reshape(N, Cout, H, W)


@jax.jit
def _reference(x_nchw, weight, gamma, beta):
    """Pure-JAX reference (reflect-pad conv + training-mode BN + LeakyReLU)."""
    xpad = jnp.pad(x_nchw, ((0, 0), (0, 0), (1, 1), (1, 1)), mode="reflect")
    out = lax.conv_general_dilated(
        xpad, weight, window_strides=(1, 1), padding="VALID",
        dimension_numbers=("NCHW", "OIHW", "NCHW"))
    mean = jnp.mean(out, axis=(0, 2, 3), keepdims=True)
    var = jnp.mean((out - mean) ** 2, axis=(0, 2, 3), keepdims=True)
    y = (out - mean) * lax.rsqrt(var + BN_EPS)
    y = y * gamma.reshape(1, -1, 1, 1) + beta.reshape(1, -1, 1, 1)
    return jnp.where(y >= 0, y, LEAKY_SLOPE * y)


if __name__ == "__main__":
    # Small shapes consistent with the module: N=2, Cin=4, Cout=8, H=W=16.
    N, Cin, Cout, H, W = 2, 4, 8, 16, 16

    key = jax.random.PRNGKey(0)
    kx, kw, kg, kb = jax.random.split(key, 4)
    x = jax.random.normal(kx, (N, Cin, H, W), dtype=jnp.float32)
    # Deterministic synthetic params (module __init__ shapes); not a checkpoint.
    weight = jax.random.normal(kw, (Cout, Cin, 3, 3), dtype=jnp.float32) * 0.1
    gamma = 1.0 + 0.1 * jax.random.normal(kg, (Cout,), dtype=jnp.float32)
    beta = 0.1 * jax.random.normal(kb, (Cout,), dtype=jnp.float32)

    out = conv_block_a(x, weight, gamma, beta)
    out = jax.block_until_ready(out)

    ref = jax.block_until_ready(_reference(x, weight, gamma, beta))
    assert out.shape == (N, Cout, H, W)
    assert jnp.allclose(out, ref, atol=1e-4, rtol=1e-4), "mismatch vs reference"

    print("KERNEL_OK")
</pallas_src>

<mosaic_0001>
module attributes {stable_mosaic.version = 11 : i64} {
  func.func @_conv_bn_lrelu_kernel(%arg0: i32, %arg1: memref<2x4x16x16xf32, #tpu.memory_space<vmem>>, %arg2: memref<8x36xf32, #tpu.memory_space<vmem>>, %arg3: memref<8x1xf32, #tpu.memory_space<vmem>>, %arg4: memref<8x1xf32, #tpu.memory_space<vmem>>, %arg5: memref<2x8x256xf32, #tpu.memory_space<vmem>>) attributes {dimension_semantics = [#tpu.dimension_semantics<arbitrary>], iteration_bounds = array<i64: 1>, scalar_prefetch = 0 : i64, scratch_operands = 0 : i64, tpu.core_type = #tpu.core_type<tc>, window_params = [{pipeline_mode = #tpu.pipeline_mode<synchronous>, transform_indices = @transform_0, window_bounds = array<i64: 2, 4, 16, 16>}, {pipeline_mode = #tpu.pipeline_mode<synchronous>, transform_indices = @transform_1, window_bounds = array<i64: 8, 36>}, {pipeline_mode = #tpu.pipeline_mode<synchronous>, transform_indices = @transform_2, window_bounds = array<i64: 8, 1>}, {pipeline_mode = #tpu.pipeline_mode<synchronous>, transform_indices = @transform_3, window_bounds = array<i64: 8, 1>}, {pipeline_mode = #tpu.pipeline_mode<synchronous>, transform_indices = @transform_4, window_bounds = array<i64: 2, 8, 256>}]} {
    %c0 = arith.constant 0 : index
    %c0_0 = arith.constant 0 : index
    %c0_1 = arith.constant 0 : index
    %c0_2 = arith.constant 0 : index
    %0 = vector.load %arg1[%c0, %c0_0, %c0_1, %c0_2] : memref<2x4x16x16xf32, #tpu.memory_space<vmem>>, vector<1x4x16x16xf32>
    %1 = vector.shape_cast %0 : vector<1x4x16x16xf32> to vector<4x16x16xf32>
    %2 = vector.extract_strided_slice %1 {offsets = [0, 1, 0], sizes = [4, 1, 16], strides = [1, 1, 1]} : vector<4x16x16xf32> to vector<4x1x16xf32>
    %3 = vector.extract_strided_slice %1 {offsets = [0, 14, 0], sizes = [4, 1, 16], strides = [1, 1, 1]} : vector<4x16x16xf32> to vector<4x1x16xf32>
    %4 = tpu.concatenate %2, %1, %3 in 1 : vector<4x1x16xf32>, vector<4x16x16xf32>, vector<4x1x16xf32> -> vector<4x18x16xf32>
    %5 = vector.extract_strided_slice %4 {offsets = [0, 0, 1], sizes = [4, 18, 1], strides = [1, 1, 1]} : vector<4x18x16xf32> to vector<4x18x1xf32>
    %6 = vector.extract_strided_slice %4 {offsets = [0, 0, 14], sizes = [4, 18, 1], strides = [1, 1, 1]} : vector<4x18x16xf32> to vector<4x18x1xf32>
    %7 = tpu.concatenate %5, %4, %6 in 2 : vector<4x18x1xf32>, vector<4x18x16xf32>, vector<4x18x1xf32> -> vector<4x18x18xf32>
    %8 = vector.extract_strided_slice %7 {offsets = [0, 0, 0], sizes = [4, 16, 16], strides = [1, 1, 1]} : vector<4x18x18xf32> to vector<4x16x16xf32>
    %9 = vector.extract_strided_slice %7 {offsets = [0, 0, 1], sizes = [4, 16, 16], strides = [1, 1, 1]} : vector<4x18x18xf32> to vector<4x16x16xf32>
    %10 = vector.extract_strided_slice %7 {offsets = [0, 0, 2], sizes = [4, 16, 16], strides = [1, 1, 1]} : vector<4x18x18xf32> to vector<4x16x16xf32>
    %11 = vector.extract_strided_slice %7 {offsets = [0, 1, 0], sizes = [4, 16, 16], strides = [1, 1, 1]} : vector<4x18x18xf32> to vector<4x16x16xf32>
    %12 = vector.extract_strided_slice %7 {offsets = [0, 1, 1], sizes = [4, 16, 16], strides = [1, 1, 1]} : vector<4x18x18xf32> to vector<4x16x16xf32>
    %13 = vector.extract_strided_slice %7 {offsets = [0, 1, 2], sizes = [4, 16, 16], strides = [1, 1, 1]} : vector<4x18x18xf32> to vector<4x16x16xf32>
    %14 = vector.extract_strided_slice %7 {offsets = [0, 2, 0], sizes = [4, 16, 16], strides = [1, 1, 1]} : vector<4x18x18xf32> to vector<4x16x16xf32>
    %15 = vector.extract_strided_slice %7 {offsets = [0, 2, 1], sizes = [4, 16, 16], strides = [1, 1, 1]} : vector<4x18x18xf32> to vector<4x16x16xf32>
    %16 = vector.extract_strided_slice %7 {offsets = [0, 2, 2], sizes = [4, 16, 16], strides = [1, 1, 1]} : vector<4x18x18xf32> to vector<4x16x16xf32>
    %17 = tpu.concatenate %8, %9, %10, %11, %12, %13, %14, %15, %16 in 0 : vector<4x16x16xf32>, vector<4x16x16xf32>, vector<4x16x16xf32>, vector<4x16x16xf32>, vector<4x16x16xf32>, vector<4x16x16xf32>, vector<4x16x16xf32>, vector<4x16x16xf32>, vector<4x16x16xf32> -> vector<36x16x16xf32>
    %18 = vector.shape_cast %17 : vector<36x16x16xf32> to vector<36x256xf32>
    %c1 = arith.constant 1 : index
    %c0_3 = arith.constant 0 : index
    %c0_4 = arith.constant 0 : index
    %c0_5 = arith.constant 0 : index
    %19 = vector.load %arg1[%c1, %c0_3, %c0_4, %c0_5] : memref<2x4x16x16xf32, #tpu.memory_space<vmem>>, vector<1x4x16x16xf32>
    %20 = vector.shape_cast %19 : vector<1x4x16x16xf32> to vector<4x16x16xf32>
    %21 = vector.extract_strided_slice %20 {offsets = [0, 1, 0], sizes = [4, 1, 16], strides = [1, 1, 1]} : vector<4x16x16xf32> to vector<4x1x16xf32>
    %22 = vector.extract_strided_slice %20 {offsets = [0, 14, 0], sizes = [4, 1, 16], strides = [1, 1, 1]} : vector<4x16x16xf32> to vector<4x1x16xf32>
    %23 = tpu.concatenate %21, %20, %22 in 1 : vector<4x1x16xf32>, vector<4x16x16xf32>, vector<4x1x16xf32> -> vector<4x18x16xf32>
    %24 = vector.extract_strided_slice %23 {offsets = [0, 0, 1], sizes = [4, 18, 1], strides = [1, 1, 1]} : vector<4x18x16xf32> to vector<4x18x1xf32>
    %25 = vector.extract_strided_slice %23 {offsets = [0, 0, 14], sizes = [4, 18, 1], strides = [1, 1, 1]} : vector<4x18x16xf32> to vector<4x18x1xf32>
    %26 = tpu.concatenate %24, %23, %25 in 2 : vector<4x18x1xf32>, vector<4x18x16xf32>, vector<4x18x1xf32> -> vector<4x18x18xf32>
    %27 = vector.extract_strided_slice %26 {offsets = [0, 0, 0], sizes = [4, 16, 16], strides = [1, 1, 1]} : vector<4x18x18xf32> to vector<4x16x16xf32>
    %28 = vector.extract_strided_slice %26 {offsets = [0, 0, 1], sizes = [4, 16, 16], strides = [1, 1, 1]} : vector<4x18x18xf32> to vector<4x16x16xf32>
    %29 = vector.extract_strided_slice %26 {offsets = [0, 0, 2], sizes = [4, 16, 16], strides = [1, 1, 1]} : vector<4x18x18xf32> to vector<4x16x16xf32>
    %30 = vector.extract_strided_slice %26 {offsets = [0, 1, 0], sizes = [4, 16, 16], strides = [1, 1, 1]} : vector<4x18x18xf32> to vector<4x16x16xf32>
    %31 = vector.extract_strided_slice %26 {offsets = [0, 1, 1], sizes = [4, 16, 16], strides = [1, 1, 1]} : vector<4x18x18xf32> to vector<4x16x16xf32>
    %32 = vector.extract_strided_slice %26 {offsets = [0, 1, 2], sizes = [4, 16, 16], strides = [1, 1, 1]} : vector<4x18x18xf32> to vector<4x16x16xf32>
    %33 = vector.extract_strided_slice %26 {offsets = [0, 2, 0], sizes = [4, 16, 16], strides = [1, 1, 1]} : vector<4x18x18xf32> to vector<4x16x16xf32>
    %34 = vector.extract_strided_slice %26 {offsets = [0, 2, 1], sizes = [4, 16, 16], strides = [1, 1, 1]} : vector<4x18x18xf32> to vector<4x16x16xf32>
    %35 = vector.extract_strided_slice %26 {offsets = [0, 2, 2], sizes = [4, 16, 16], strides = [1, 1, 1]} : vector<4x18x18xf32> to vector<4x16x16xf32>
    %36 = tpu.concatenate %27, %28, %29, %30, %31, %32, %33, %34, %35 in 0 : vector<4x16x16xf32>, vector<4x16x16xf32>, vector<4x16x16xf32>, vector<4x16x16xf32>, vector<4x16x16xf32>, vector<4x16x16xf32>, vector<4x16x16xf32>, vector<4x16x16xf32>, vector<4x16x16xf32> -> vector<36x16x16xf32>
    %37 = vector.shape_cast %36 : vector<36x16x16xf32> to vector<36x256xf32>
    %38 = tpu.concatenate %18, %37 in 1 : vector<36x256xf32>, vector<36x256xf32> -> vector<36x512xf32>
    %c0_6 = arith.constant 0 : index
    %c0_7 = arith.constant 0 : index
    %39 = vector.load %arg2[%c0_6, %c0_7] : memref<8x36xf32, #tpu.memory_space<vmem>>, vector<8x36xf32>
    %cst = arith.constant dense<0.000000e+00> : vector<8x512xf32>
    %40 = tpu.matmul %39, %38, %cst {dimension_numbers = #tpu.dot_dimension_numbers<[1], [0], [0], [1], [0, 0, 1, 1], [], []>} : vector<8x36xf32>, vector<36x512xf32>, vector<8x512xf32> -> vector<8x512xf32>
    %cst_8 = arith.constant dense<0.000000e+00> : vector<8xf32>
    %41 = vector.multi_reduction <add>, %40, %cst_8 [1] : vector<8x512xf32> to vector<8xf32>
    %42 = vector.shape_cast %41 : vector<8xf32> to vector<8x1xf32>
    %cst_9 = arith.constant 5.120000e+02 : f32
    %43 = vector.broadcast %cst_9 : f32 to vector<8x1xf32>
    %44 = arith.divf %42, %43 : vector<8x1xf32>
    %45 = vector.broadcast %44 : vector<8x1xf32> to vector<8x512xf32>
    %46 = arith.subf %40, %45 : vector<8x512xf32>
    %47 = arith.mulf %46, %46 : vector<8x512xf32>
    %cst_10 = arith.constant dense<0.000000e+00> : vector<8xf32>
    %48 = vector.multi_reduction <add>, %47, %cst_10 [1] : vector<8x512xf32> to vector<8xf32>
    %49 = vector.shape_cast %48 : vector<8xf32> to vector<8x1xf32>
    %cst_11 = arith.constant 5.120000e+02 : f32
    %50 = vector.broadcast %cst_11 : f32 to vector<8x1xf32>
    %51 = arith.divf %49, %50 : vector<8x1xf32>
    %c0_12 = arith.constant 0 : index
    %c0_13 = arith.constant 0 : index
    %52 = vector.load %arg3[%c0_12, %c0_13] : memref<8x1xf32, #tpu.memory_space<vmem>>, vector<8x1xf32>
    %cst_14 = arith.constant 9.99999974E-6 : f32
    %53 = vector.broadcast %cst_14 : f32 to vector<8x1xf32>
    %54 = arith.addf %51, %53 : vector<8x1xf32>
    %55 = math.rsqrt %54 : vector<8x1xf32>
    %56 = arith.mulf %52, %55 : vector<8x1xf32>
    %57 = vector.broadcast %56 : vector<8x1xf32> to vector<8x512xf32>
    %58 = arith.mulf %46, %57 : vector<8x512xf32>
    %c0_15 = arith.constant 0 : index
    %c0_16 = arith.constant 0 : index
    %59 = vector.load %arg4[%c0_15, %c0_16] : memref<8x1xf32, #tpu.memory_space<vmem>>, vector<8x1xf32>
    %60 = vector.broadcast %59 : vector<8x1xf32> to vector<8x512xf32>
    %61 = arith.addf %58, %60 : vector<8x512xf32>
    %cst_17 = arith.constant 0.000000e+00 : f32
    %62 = vector.broadcast %cst_17 : f32 to vector<8x512xf32>
    %63 = arith.cmpf oge, %61, %62 : vector<8x512xf32>
    %cst_18 = arith.constant 0.00999999977 : f32
    %64 = vector.broadcast %cst_18 : f32 to vector<8x512xf32>
    %65 = arith.mulf %64, %61 : vector<8x512xf32>
    %66 = arith.select %63, %61, %65 : vector<8x512xi1>, vector<8x512xf32>
    %67 = vector.extract_strided_slice %66 {offsets = [0, 0], sizes = [8, 256], strides = [1, 1]} : vector<8x512xf32> to vector<8x256xf32>
    %c0_19 = arith.constant 0 : index
    %c0_20 = arith.constant 0 : index
    %c0_21 = arith.constant 0 : index
    %68 = vector.load %arg5[%c0_19, %c0_20, %c0_21] : memref<2x8x256xf32, #tpu.memory_space<vmem>>, vector<1x8x256xf32>
    %69 = vector.shape_cast %68 : vector<1x8x256xf32> to vector<8x256xf32>
    %70 = vector.shape_cast %67 : vector<8x256xf32> to vector<1x8x256xf32>
    tpu.vector_store %arg5[%c0_19, %c0_20, %c0_21], %70 {strides = array<i32>} : memref<2x8x256xf32, #tpu.memory_space<vmem>>, vector<1x8x256xf32>,
    %71 = vector.extract_strided_slice %66 {offsets = [0, 256], sizes = [8, 256], strides = [1, 1]} : vector<8x512xf32> to vector<8x256xf32>
    %c1_22 = arith.constant 1 : index
    %c0_23 = arith.constant 0 : index
    %c0_24 = arith.constant 0 : index
    %72 = vector.load %arg5[%c1_22, %c0_23, %c0_24] : memref<2x8x256xf32, #tpu.memory_space<vmem>>, vector<1x8x256xf32>
    %73 = vector.shape_cast %72 : vector<1x8x256xf32> to vector<8x256xf32>
    %74 = vector.shape_cast %71 : vector<8x256xf32> to vector<1x8x256xf32>
    tpu.vector_store %arg5[%c1_22, %c0_23, %c0_24], %74 {strides = array<i32>} : memref<2x8x256xf32, #tpu.memory_space<vmem>>, vector<1x8x256xf32>,
    return
  }
  func.func @transform_0(%arg0: i32) -> (i32, i32, i32, i32) {
    %c0_i32 = arith.constant 0 : i32
    %c0_i32_0 = arith.constant 0 : i32
    %c0_i32_1 = arith.constant 0 : i32
    %c0_i32_2 = arith.constant 0 : i32
    %c0_i32_3 = arith.constant 0 : i32
    return %c0_i32, %c0_i32_0, %c0_i32_1, %c0_i32_2 : i32, i32, i32, i32
  }
  func.func @transform_1(%arg0: i32) -> (i32, i32) {
    %c0_i32 = arith.constant 0 : i32
    %c0_i32_0 = arith.constant 0 : i32
    %c0_i32_1 = arith.constant 0 : i32
    return %c0_i32, %c0_i32_0 : i32, i32
  }
  func.func @transform_2(%arg0: i32) -> (i32, i32) {
    %c0_i32 = arith.constant 0 : i32
    %c0_i32_0 = arith.constant 0 : i32
    %c0_i32_1 = arith.constant 0 : i32
    return %c0_i32, %c0_i32_0 : i32, i32
  }
  func.func @transform_3(%arg0: i32) -> (i32, i32) {
    %c0_i32 = arith.constant 0 : i32
    %c0_i32_0 = arith.constant 0 : i32
    %c0_i32_1 = arith.constant 0 : i32
    return %c0_i32, %c0_i32_0 : i32, i32
  }
  func.func @transform_4(%arg0: i32) -> (i32, i32, i32) {
    %c0_i32 = arith.constant 0 : i32
    %c0_i32_0 = arith.constant 0 : i32
    %c0_i32_1 = arith.constant 0 : i32
    %c0_i32_2 = arith.constant 0 : i32
    return %c0_i32, %c0_i32_0, %c0_i32_1 : i32, i32, i32
  }
}

</mosaic_0001>

<bundles_post_ra>
// kernel: conv_block_a.1
= control target key start
LH: loop header
LB: loop body
LE: loop exit
PB: predicated region body
PF: predicated region fallthrough
CT: control target
= control target key end

     0   :  { %vm41_vm0 = vcmask 1040384   ;;  %s4268_s23 = smov 127   ;;  %s4269_s6 = smov 1   ;;  %vm194_vm1 = vcmask 7168   ;;  %vm207_vm2 = vcmask 138240   ;;  %vm280_vm3 = vcmask 1046528   ;;  %s7625_s0 = inlined_call_operand.vmem [shape: f32[2,4,16,16], index: 0, kind: input, shape index: {}]   ;;  %s7626_s1 = inlined_call_operand.vmem [shape: f32[8,36], index: 1, kind: input, shape index: {}]   ;;  %s7627_s2 = inlined_call_operand.vmem [shape: f32[8,1], index: 2, kind: input, shape index: {}]   ;;  %s7628_s3 = inlined_call_operand.vmem [shape: f32[8,1], index: 3, kind: input, shape index: {}]   ;;  %s7629_s4 = inlined_call_operand.vmem [shape: f32[2,8,256], index: 4, kind: output, shape index: {}]  }
   0x1   :  { %v19_v0 = vld [vmem:[%s7625_s0 + $0x10] sm:$0xff]  ;;  %v20_v1 = vld [vmem:[%s7625_s0 + $0x18] sm:$0xff]  ;;  %v18_v2 = vld [vmem:[%s7625_s0 + $0x8] sm:$0xff]  ;;  %s4270_s7 = smov 3   ;;  %vm357_vm4 = vcmask 1045504   ;;  %vm435_vm5 = vcmask 1047556  }
   0x2   :  { %v45_v3 = vrot.slane %v19_v0, 7  ;;  %v46_v4 = vrot.slane %v20_v1, 7  ;;  %v43_v5 = vrot.slane %v18_v2, 7  ;;  %v62_v6 = vrot.slane %v18_v2, 5  ;;  %v17_v7 = vld [vmem:[%s7625_s0] sm:$0xff]  ;;  %v22_v18 = vld [vmem:[%s7625_s0 + $0x28] sm:$0xff] }
   0x3   :  { %v29_v8 = vrot.slane %v17_v7, 1  ;;  %v42_v9 = vrot.slane %v17_v7, 7  ;;  %v63_v13 = vrot.slane %v20_v1, 5  ;;  %v30_v14 = vrot.slane %v19_v0, 1  ;;  %v21_v19 = vld [vmem:[%s7625_s0 + $0x20] sm:$0xff]  ;;  %v24_v27 = vld [vmem:[%s7625_s0 + $0x38] sm:$0xff] }
   0x4   :  { %v47_v10 = vsel %vm41_vm0, %v45_v3, %v46_v4  ;;  %v74_v11 = vsel %vm41_vm0, %v43_v5, %v62_v6  ;;  %v49_v20 = vrot.slane %v22_v18, 7  ;;  %v64_v21 = vrot.slane %v22_v18, 5  ;;  %v23_v28 = vld [vmem:[%s7625_s0 + $0x30] sm:$0xff]  ;;  %s4272_s8 = smov 126   ;;  %s4274_s9 = smov 16  }
   0x5   :  { %94 = vrot.lane.b32.xlu2 %v47_v10, %s4268_s23  ;;  %90 = vrot.lane.b32.xlu1 %v74_v11, %s4268_s23  ;;  %v70_v12 = vsel %vm41_vm0, %v29_v8, %v42_v9  ;;  %v75_v15 = vsel %vm41_vm0, %v46_v4, %v63_v13  ;;  %v71_v16 = vsel %vm41_vm0, %v30_v14, %v45_v3  ;;  %v48_v22 = vrot.slane %v21_v19, 7  ;;  %s4275_s10 = smov 32   ;;  %s4276_s11 = smov 48  }
   0x6   :  { %86 = vrot.lane.b32.xlu0 %v70_v12, %s4268_s23  ;;  %v44_v17 = vsel %vm41_vm0, %v42_v9, %v43_v5  ;;  %v31_v23 = vrot.slane %v21_v19, 1  ;;  %v76_v24 = vsel %vm41_vm0, %v49_v20, %v64_v21  ;;  %v52_v29 = vrot.slane %v24_v27, 7  ;;  %s4277_s12 = smov 64   ;;  %s4278_s13 = smov 80  }
   0x7   :  { %v50_v25 = vsel %vm41_vm0, %v48_v22, %v49_v20  ;;  %v65_v30 = vrot.slane %v24_v27, 5  ;;  %v51_v31 = vrot.slane %v23_v28, 7  ;;  %v32_v32 = vrot.slane %v23_v28, 1  ;;  %s4279_s14 = smov 96   ;;  %s4280_s15 = smov 112  }
   0x8   :  { %v72_v26 = vsel %vm41_vm0, %v31_v23, %v48_v22  ;;  %vm1723_vm6 = vcmask 130048   ;;  %vm1729_vm7 = vcmask 261120   ;;  %vm1735_vm8 = vcmask 392192  }
   0x9   :  { %v77_v33 = vsel %vm41_vm0, %v52_v29, %v65_v30  ;;  %v53_v34 = vsel %vm41_vm0, %v51_v31, %v52_v29  ;;  %v73_v35 = vsel %vm41_vm0, %v32_v32, %v51_v31  ;;  %vm1741_vm9 = vcmask 523264  }
   0xa   :  { %vm1747_vm10 = vcmask 654336   ;;  %vm1753_vm11 = vcmask 785408   ;;  %vm3576_vm12 = vcmask 1043456   ;;  %vm1759_vm13 = vcmask 916480  }
   0xb   :  { %vm3572_vm14 = vcmask 293888  }
   0xd   :  { %96 = vrot.lane.b32.xlu2 %v75_v15, %s4268_s23  ;;  %92 = vrot.lane.b32.xlu1 %v71_v16, %s4268_s23 }
   0xe   :  { %88 = vrot.lane.b32.xlu0 %v44_v17, %s4268_s23 }
  0x15   :  { %102 = vrot.lane.b32.xlu2 %v76_v24, %s4268_s23  ;;  %100 = vrot.lane.b32.xlu1 %v50_v25, %s4268_s23 }
  0x16   :  { %98 = vrot.lane.b32.xlu0 %v72_v26, %s4268_s23 }
  0x1d   :  { %108 = vrot.lane.b32.xlu2 %v77_v33, %s4268_s23  ;;  %106 = vrot.lane.b32.xlu1 %v53_v34, %s4268_s23 }
  0x1e   :  { %104 = vrot.lane.b32.xlu0 %v73_v35, %s4268_s23 }
  0x25   :  { %126 = vrot.lane.b32.xlu2 %v74_v11, %s4269_s6  ;;  %124 = vrot.lane.b32.xlu1 %v44_v17, %s4269_s6 }
  0x26   :  { %122 = vrot.lane.b32.xlu0 %v70_v12, %s4269_s6 }
  0x2d   :  { %132 = vrot.lane.b32.xlu2 %v75_v15, %s4269_s6  ;;  %130 = vrot.lane.b32.xlu1 %v47_v10, %s4269_s6 }
  0x2e   :  { %128 = vrot.lane.b32.xlu0 %v71_v16, %s4269_s6 }
  0x35   :  { %138 = vrot.lane.b32.xlu2 %v76_v24, %s4269_s6  ;;  %136 = vrot.lane.b32.xlu1 %v50_v25, %s4269_s6 }
  0x36   :  { %134 = vrot.lane.b32.xlu0 %v72_v26, %s4269_s6 }
  0x3d   :  { %144 = vrot.lane.b32.xlu2 %v77_v33, %s4269_s6  ;;  %142 = vrot.lane.b32.xlu1 %v53_v34, %s4269_s6 }
  0x3e   :  { %140 = vrot.lane.b32.xlu0 %v73_v35, %s4269_s6 }
  0x45   :  { %162 = vrot.lane.b32.xlu2 %v74_v11, %s4270_s7  ;;  %160 = vrot.lane.b32.xlu1 %v44_v17, %s4270_s7 }
  0x46   :  { %158 = vrot.lane.b32.xlu0 %v70_v12, %s4270_s7 }
  0x4d   :  { %168 = vrot.lane.b32.xlu2 %v75_v15, %s4270_s7  ;;  %166 = vrot.lane.b32.xlu1 %v47_v10, %s4270_s7 }
  0x4e   :  { %164 = vrot.lane.b32.xlu0 %v71_v16, %s4270_s7 }
  0x55   :  { %174 = vrot.lane.b32.xlu2 %v76_v24, %s4270_s7  ;;  %172 = vrot.lane.b32.xlu1 %v50_v25, %s4270_s7  ;;  %v4271_v24 = vmov 1983009808  }
  0x56   :  { %170 = vrot.lane.b32.xlu0 %v72_v26, %s4270_s7  ;;  %v440_v25 = vunpack.c.l.s4 %v4271_v24 }
  0x5d   :  { %180 = vrot.lane.b32.xlu2 %v77_v33, %s4270_s7  ;;  %178 = vrot.lane.b32.xlu1 %v53_v34, %s4270_s7 }
  0x5e   :  { %176 = vrot.lane.b32.xlu0 %v73_v35, %s4270_s7 }
  0x5f   :  { %v95_v36 = vpop.permute.xlu2 %94 }
  0x67   :  { %v97_v37 = vpop.permute.xlu2 %96 }
  0x6f   :  { %v103_v38 = vpop.permute.xlu2 %102 }
  0x77   :  { %v109_v39 = vpop.permute.xlu2 %108  ;;  %v91_v40 = vpop.permute.xlu1 %90 }
  0x78   :  { %v87_v41 = vpop.permute.xlu0 %86 }
  0x7f   :  { %v127_v42 = vpop.permute.xlu2 %126  ;;  %v93_v43 = vpop.permute.xlu1 %92 }
  0x80   :  { %v89_v44 = vpop.permute.xlu0 %88  ;;  %v197_v11 = vsel %vm194_vm1, %v91_v40, %v127_v42 }
  0x87   :  { %v101_v45 = vpop.permute.xlu1 %100  ;;  %v133_v47 = vpop.permute.xlu2 %132 }
  0x88   :  { %v99_v46 = vpop.permute.xlu0 %98  ;;  %v200_v16 = vsel %vm194_vm1, %v97_v37, %v133_v47 }
  0x8f   :  { %v4380_v48 = vpop.permute.xlu1 %106  ;;  %v139_v50 = vpop.permute.xlu2 %138 }
  0x90   :  { %v4382_v49 = vpop.permute.xlu0 %104  ;;  %v203_v15 = vsel %vm194_vm1, %v103_v38, %v139_v50 }
  0x97   :  { %v125_v51 = vpop.permute.xlu1 %124  ;;  %v145_v53 = vpop.permute.xlu2 %144 }
  0x98   :  { %v123_v52 = vpop.permute.xlu0 %122  ;;  %v196_v62 = vsel %vm194_vm1, %v89_v44, %v125_v51  ;;  %v206_v19 = vsel %vm194_vm1, %v109_v39, %v145_v53 }
  0x99   :  { %v195_v2 = vsel %vm194_vm1, %v87_v41, %v123_v52 }
  0x9f   :  { %v131_v54 = vpop.permute.xlu1 %130  ;;  %v163_v56 = vpop.permute.xlu2 %162 }
  0xa0   :  { %v129_v55 = vpop.permute.xlu0 %128  ;;  %v199_v6 = vsel %vm194_vm1, %v95_v36, %v131_v54  ;;  %v4409_v13 = vsel %vm207_vm2, %v197_v11, %v163_v56 }
  0xa1   :  { %v198_v8 = vsel %vm194_vm1, %v93_v43, %v129_v55  ;;  %v284_v20 = vrot.slane %v4409_v13, 1 }
  0xa7   :  { %v137_v57 = vpop.permute.xlu1 %136  ;;  %v169_v61 = vpop.permute.xlu2 %168 }
  0xa8   :  { %v135_v58 = vpop.permute.xlu0 %134  ;;  %v4426_v22 = vsel %vm207_vm2, %v200_v16, %v169_v61  ;;  %v202_v26 = vsel %vm194_vm1, %v101_v45, %v137_v57  ;;  %v4488_v61 = vunpack.c.0.s8 %v440_v25 }
  0xa9   :  { %v201_v27 = vsel %vm194_vm1, %v99_v46, %v135_v58  ;;  %v289_v57 = vrot.slane %v4426_v22, 1 }
  0xaf   :  { %v4384_v59 = vpop.permute.xlu1 %142  ;;  %v175_v4 = vpop.permute.xlu2 %174 }
  0xb0   :  { %v4386_v60 = vpop.permute.xlu0 %140  ;;  %v4418_v17 = vsel %vm207_vm2, %v203_v15, %v175_v4  ;;  %v205_v58 = vsel %vm194_vm1, %v4380_v48, %v4384_v59 }
  0xb1   :  { %v294_v28 = vrot.slane %v4418_v17, 1 }
  0xb7   :  { %v161_v63 = vpop.permute.xlu1 %160  ;;  %v181_v21 = vpop.permute.xlu2 %180 }
  0xb8   :  { %v4390_v0 = vsel %vm207_vm2, %v196_v62, %v161_v63  ;;  %v159_v1 = vpop.permute.xlu0 %158  ;;  %v4434_v31 = vsel %vm207_vm2, %v206_v19, %v181_v21  ;;  %v204_v63 = vsel %vm194_vm1, %v4382_v49, %v4386_v60 }
  0xb9   :  { %v4394_v3 = vsel %vm207_vm2, %v195_v2, %v159_v1  ;;  %v282_v18 = vrot.slane %v4390_v0, 1  ;;  %v941_v29 = vrot.slane %v4390_v0, 4  ;;  %v359_v32 = vrot.slane %v4390_v0, 2 }
  0xba   :  { %v3782_v5 = vpack.i.bf16 %v4390_v0, %v4394_v3  ;;  %v281_v23 = vrot.slane %v4394_v3, 1  ;;  %v358_v36 = vrot.slane %v4394_v3, 2  ;;  %v437_v40 = vrot.slane %v4394_v3, 4 }
  0xbb   :  { %v4441_v35 = vsel %vm280_vm3, %v282_v18, %v284_v20  ;;  %v299_v1 = vrot.slane %v4434_v31, 1 }
  0xbc   :  { %3783 = vrot.lane.b32.xlu0 %v3782_v5, %s4268_s23  ;;  %v4455_v42 = vsel %vm280_vm3, %v281_v23, %v282_v18  ;;  %v1077_v46 = vrot.slane %v4441_v35, 4  ;;  %v4513_v49 = vsel %vm357_vm4, %v358_v36, %v359_v32 }
  0xbd   :  { %v573_v54 = vrot.slane %v4455_v42, 4 }
  0xbf   :  { %v167_v7 = vpop.permute.xlu1 %166 }
  0xc0   :  { %v4402_v9 = vsel %vm207_vm2, %v199_v6, %v167_v7  ;;  %v165_v10 = vpop.permute.xlu0 %164 }
  0xc1   :  { %v4406_v12 = vsel %vm207_vm2, %v198_v8, %v165_v10  ;;  %v287_v47 = vrot.slane %v4402_v9, 1  ;;  %v953_v2 = vrot.slane %v4402_v9, 4  ;;  %v364_v59 = vrot.slane %v4402_v9, 2 }
  0xc2   :  { %v4413_v14 = vpack.i.bf16 %v4402_v9, %v4406_v12  ;;  %v286_v50 = vrot.slane %v4406_v12, 1  ;;  %v363_v60 = vrot.slane %v4406_v12, 2  ;;  %v449_v11 = vrot.slane %v4406_v12, 4 }
  0xc3   :  { %v4525_v16 = vsel %vm280_vm3, %v287_v47, %v289_v57 }
  0xc4   :  { %3788 = vrot.lane.b32.xlu1 %v4413_v14, %s4268_s23  ;;  %v4508_v6 = vsel %vm280_vm3, %v286_v50, %v287_v47  ;;  %v4565_v47 = vpack.i.bf16 %v4441_v35, %v4455_v42 }
  0xc5   :  { %v585_v21 = vrot.slane %v4508_v6, 4 }
  0xc7   :  { %v173_v30 = vpop.permute.xlu1 %172 }
  0xc8   :  { %v4438_v33 = vsel %vm207_vm2, %v202_v26, %v173_v30  ;;  %v171_v34 = vpop.permute.xlu0 %170 }
  0xc9   :  { %v292_v37 = vrot.slane %v4438_v33, 1  ;;  %v939_v38 = vrot.slane %v4438_v33, 4  ;;  %v4448_v39 = vsel %vm435_vm5, %v4438_v33, %v941_v29  ;;  %v4452_v41 = vsel %vm207_vm2, %v201_v27, %v171_v34 }
  0xca   :  { %v291_v44 = vrot.slane %v4452_v41, 1  ;;  %v434_v45 = vrot.slane %v4452_v41, 4  ;;  %v4468_v51 = vsel %vm435_vm5, %v4452_v41, %v437_v40  ;;  %v4473_v52 = vpack.i.bf16 %v4438_v33, %v4452_v41 }
  0xcb   :  { %v4459_v43 = vsel %vm435_vm5, %v939_v38, %v4390_v0  ;;  %v4482_v56 = vsel %vm280_vm3, %v292_v37, %v294_v28  ;;  %v1089_v28 = vrot.slane %v4525_v16, 4  ;;  %v368_v38 = vrot.slane %v4452_v41, 2 }
  0xcc   :  { %3803 = vrot.lane.b32.xlu1 %v3782_v5, %s4272_s8  ;;  %v436_v53 = vsel %vm435_vm5, %v434_v45, %v4394_v3  ;;  %v4479_v55 = vsel %vm280_vm3, %v291_v44, %v292_v37  ;;  %3793 = vrot.lane.b32.xlu2 %v4473_v52, %s4268_s23  ;;  %v4494_v62 = vsel %vm435_vm5, %v4482_v56, %v1077_v46 }
  0xcd   :  { %v574_v48 = vsel %vm435_vm5, %v4479_v55, %v573_v54  ;;  %v4547_v37 = vsel %vm357_vm4, %v363_v60, %v364_v59  ;;  %v442_v57 = vperm.slane %v436_v53, %v4488_v61 }
  0xce   :  { %v785_v54 = vrot.slane %v4547_v37, 4 }
  0xcf   :  { %v179_v3 = vpop.permute.xlu1 %178 }
  0xd0   :  { %v4505_v4 = vsel %vm207_vm2, %v205_v58, %v179_v3  ;;  %v177_v5 = vpop.permute.xlu0 %176  ;;  %v3832_v58 = vpack.i.bf16 %v4482_v56, %v4479_v55 }
  0xd1   :  { %v297_v7 = vrot.slane %v4505_v4, 1  ;;  %v951_v8 = vrot.slane %v4505_v4, 4  ;;  %v4520_v10 = vsel %vm435_vm5, %v4505_v4, %v953_v2  ;;  %v217_v15 = vsel %vm207_vm2, %v204_v63, %v177_v5 }
  0xd2   :  { %v296_v19 = vrot.slane %v217_v15, 1  ;;  %v447_v20 = vrot.slane %v217_v15, 4  ;;  %v374_v23 = vrot.slane %v4505_v4, 2  ;;  %v373_v24 = vrot.slane %v217_v15, 2 }
  0xd3   :  { %v4529_v18 = vsel %vm435_vm5, %v951_v8, %v4402_v9  ;;  %v450_v25 = vsel %vm435_vm5, %v217_v15, %v449_v11  ;;  %v3817_v26 = vpack.i.bf16 %v4505_v4, %v217_v15  ;;  %v300_v30 = vsel %vm280_vm3, %v297_v7, %v299_v1 }
  0xd4   :  { %v448_v27 = vsel %vm435_vm5, %v447_v20, %v4406_v12  ;;  %v298_v29 = vsel %vm280_vm3, %v296_v19, %v297_v7  ;;  %3808 = vrot.lane.b32.xlu2 %v4413_v14, %s4272_s8  ;;  %v369_v12 = vrot.slane %v4438_v33, 2  ;;  %v1087_v40 = vrot.slane %v300_v30, 4 }
  0xd5   :  { %3818 = vrot.lane.b32.xlu1 %v3817_v26, %s4272_s8  ;;  %v583_v34 = vrot.slane %v298_v29, 4  ;;  %v586_v36 = vsel %vm435_vm5, %v298_v29, %v585_v21  ;;  %3798 = vrot.lane.b32.xlu0 %v3817_v26, %s4268_s23  ;;  %v4553_v14 = vsel %vm435_vm5, %v300_v30, %v1089_v28  ;;  %v458_v44 = vperm.slane %v450_v25, %v4488_v61 }
  0xd6   :  { %v4561_v46 = vsel %vm357_vm4, %v373_v24, %v374_v23  ;;  %v4569_v41 = vsel %vm435_vm5, %v1087_v40, %v4525_v16  ;;  %v594_v63 = vperm.slane %v586_v36, %v4488_v61  ;;  %v773_v1 = vrot.slane %v4513_v49, 4 }
  0xd7   :  { %v584_v45 = vsel %vm435_vm5, %v583_v34, %v4508_v6  ;;  %v783_v50 = vrot.slane %v4561_v46, 4  ;;  %v454_v2 = vperm.slane %v448_v27, %v4488_v61  ;;  %v786_v5 = vsel %vm435_vm5, %v4561_v46, %v785_v54 }
  0xd8   :  { %v4586_v60 = vsel %vm357_vm4, %v368_v38, %v369_v12  ;;  %v495_v53 = vrot.slane %v458_v44, 4  ;;  %v571_v7 = vrot.slane %v4479_v55, 4  ;;  %v446_v15 = vperm.slane %v4468_v51, %v4488_v61 }
  0xd9   :  { %v784_v3 = vsel %vm435_vm5, %v783_v50, %v4547_v37  ;;  %v771_v11 = vrot.slane %v4586_v60, 4  ;;  %v631_v19 = vrot.slane %v594_v63, 4  ;;  %v774_v21 = vsel %vm435_vm5, %v4586_v60, %v773_v1 }
  0xda   :  { %v790_v8 = vperm.slane %v784_v3, %v4488_v61  ;;  %v582_v55 = vperm.slane %v574_v48, %v4488_v61  ;;  %v483_v25 = vrot.slane %v454_v2, 4  ;;  %v572_v51 = vsel %vm435_vm5, %v571_v7, %v4455_v42 }
  0xdb   :  { %v772_v20 = vsel %vm435_vm5, %v771_v11, %v4513_v49  ;;  %v590_v26 = vperm.slane %v584_v45, %v4488_v61  ;;  %v485_v27 = vrot.slane %v442_v57, 4  ;;  %v4607_v28 = vsel %vm435_vm5, %v495_v53, %v446_v15 }
  0xdc   :  { %3823 = vrot.lane.b32.xlu2 %v4565_v47, %s4268_s23  ;;  %v819_v24 = vrot.slane %v790_v8, 4  ;;  %v4610_v34 = vsel %vm435_vm5, %v483_v25, %v442_v57  ;;  %v578_v36 = vperm.slane %v572_v51, %v4488_v61  ;;  %v778_v48 = vperm.slane %v772_v20, %v4488_v61 }
  0xdd   :  { %3833 = vrot.lane.b32.xlu1 %v3832_v58, %s4268_s23  ;;  %3813 = vrot.lane.b32.xlu0 %v4473_v52, %s4272_s8  ;;  %v619_v38 = vrot.slane %v590_v26, 4  ;;  %v4615_v52 = vsel %vm435_vm5, %v454_v2, %v485_v27  ;;  %v4618_v40 = vsel %vm435_vm5, %v631_v19, %v582_v55  ;;  %v3847_v42 = vpack.i.bf16 %v4525_v16, %v4508_v6 }
  0xde   :  { %v621_v45 = vrot.slane %v578_v36, 4  ;;  %v497_v50 = vrot.slane %v446_v15, 4  ;;  %v3837_v54 = vpack.i.bf16 %v300_v30, %v298_v29  ;;  %v4626_v1 = vsel %vm435_vm5, %v819_v24, %v778_v48 }
  0xdf   :  { %v4623_v57 = vsel %vm435_vm5, %v619_v38, %v578_v36  ;;  %v821_v2 = vrot.slane %v778_v48, 4  ;;  %v361_v6 = vrot.slane %v4409_v13, 2  ;;  %v1075_v29 = vrot.slane %v4482_v56, 4 }
  0xe0   :  { %v4629_v3 = vsel %vm435_vm5, %v590_v26, %v621_v45  ;;  %v4634_v53 = vsel %vm435_vm5, %v458_v44, %v497_v50  ;;  %v958_v7 = vperm.slane %v4529_v18, %v4488_v61  ;;  %v633_v11 = vrot.slane %v582_v55, 4 }
  0xe1   :  { %v4639_v16 = vsel %vm435_vm5, %v790_v8, %v821_v2  ;;  %v4645_v30 = vsel %vm357_vm4, %v359_v32, %v361_v6  ;;  %v1076_v13 = vsel %vm435_vm5, %v1075_v29, %v4441_v35  ;;  %v794_v8 = vperm.slane %v786_v5, %v4488_v61 }
  0xe2   :  { %v3862_v44 = vpack.i.bf16 %v4645_v30, %v4513_v49  ;;  %v946_v56 = vperm.slane %v4459_v43, %v4488_v61  ;;  %v4659_v0 = vsel %vm435_vm5, %v594_v63, %v633_v11  ;;  %v987_v32 = vrot.slane %v958_v7, 4 }
  0xe3   :  { %v366_v18 = vrot.slane %v4426_v22, 2  ;;  %v376_v15 = vrot.slane %v4434_v31, 2  ;;  %v782_v35 = vperm.slane %v774_v21, %v4488_v61  ;;  %v831_v5 = vrot.slane %v794_v8, 4 }
  0xe4   :  { %3838 = vrot.lane.b32.xlu2 %v3837_v54, %s4268_s23  ;;  %v4667_v43 = vsel %vm435_vm5, %v987_v32, %v946_v56  ;;  %v989_v31 = vrot.slane %v946_v56, 4  ;;  %v371_v4 = vrot.slane %v4418_v17, 2  ;;  %v1094_v9 = vperm.slane %v4569_v41, %v4488_v61 }
  0xe5   :  { %3848 = vrot.lane.b32.xlu1 %v3847_v42, %s4272_s8  ;;  %3828 = vrot.lane.b32.xlu0 %v3847_v42, %s4268_s23  ;;  %v367_v63 = vsel %vm357_vm4, %v364_v59, %v366_v18  ;;  %v4676_v22 = vsel %vm435_vm5, %v831_v5, %v782_v35  ;;  %v833_v25 = vrot.slane %v782_v35, 4  ;;  %v950_v41 = vperm.slane %v4448_v39, %v4488_v61 }
  0xe6   :  { %v3867_v20 = vpack.i.bf16 %v367_v63, %v4547_v37  ;;  %v4683_v21 = vsel %vm435_vm5, %v958_v7, %v989_v31  ;;  %v372_v59 = vsel %vm357_vm4, %v369_v12, %v371_v4  ;;  %v1098_v38 = vperm.slane %v4553_v14, %v4488_v61 }
  0xe7   :  { %v1275_v51 = vrot.slane %v372_v59, 4  ;;  %v4701_v27 = vsel %vm435_vm5, %v794_v8, %v833_v25  ;;  %v3872_v36 = vpack.i.bf16 %v372_v59, %v4586_v60  ;;  %v1001_v42 = vrot.slane %v950_v41, 4 }
  0xe8   :  { %v1277_v14 = vrot.slane %v4645_v30, 4  ;;  %v1289_v11 = vrot.slane %v367_v63, 4  ;;  %v4273_v4 = vmov 1934713408  }
  0xe9   :  { %v1276_v39 = vsel %vm435_vm5, %v1275_v51, %v4645_v30 }
  0xea   :  { %v1282_v50 = vperm.slane %v1276_v39, %v4488_v61  ;;  %v1278_v29 = vsel %vm435_vm5, %v372_v59, %v1277_v14 }
  0xec   :  { %3853 = vrot.lane.b32.xlu2 %v3832_v58, %s4272_s8  ;;  %v377_v58 = vsel %vm357_vm4, %v374_v23, %v376_v15  ;;  %v1123_v23 = vrot.slane %v1094_v9, 4 }
  0xed   :  { %3863 = vrot.lane.b32.xlu1 %v3862_v44, %s4268_s23  ;;  %3843 = vrot.lane.b32.xlu0 %v4565_v47, %s4272_s8  ;;  %v962_v47 = vperm.slane %v4520_v10, %v4488_v61  ;;  %v3877_v19 = vpack.i.bf16 %v377_v58, %v4561_v46  ;;  %v1082_v10 = vperm.slane %v1076_v13, %v4488_v61  ;;  %v1287_v24 = vrot.slane %v377_v58, 4 }
  0xee   :  { %v1290_v8 = vsel %vm435_vm5, %v377_v58, %v1289_v11 }
  0xef   :  { %v999_v55 = vrot.slane %v962_v47, 4  ;;  %v4696_v17 = vsel %vm435_vm5, %v1123_v23, %v1082_v10  ;;  %v1125_v26 = vrot.slane %v1082_v10, 4  ;;  %v1288_v12 = vsel %vm435_vm5, %v1287_v24, %v367_v63 }
  0xf0   :  { %v1294_v45 = vperm.slane %v1288_v12, %v4488_v61  ;;  %v4723_v2 = vsel %vm435_vm5, %v962_v47, %v1001_v42  ;;  %v1298_v32 = vperm.slane %v1290_v8, %v4488_v61 }
  0xf1   :  { %v4704_v33 = vsel %vm435_vm5, %v999_v55, %v950_v41  ;;  %v4709_v48 = vsel %vm435_vm5, %v1094_v9, %v1125_v26  ;;  %v488_v9 = vunpack.c.l.s4 %v4273_v4 }
  0xf2   :  { %v1323_v6 = vrot.slane %v1294_v45, 4 }
  0xf4   :  { %3868 = vrot.lane.b32.xlu2 %v3867_v20, %s4268_s23  ;;  %v4741_v13 = vsel %vm435_vm5, %v1323_v6, %v1282_v50 }
  0xf5   :  { %3878 = vrot.lane.b32.xlu1 %v3877_v19, %s4268_s23  ;;  %3858 = vrot.lane.b32.xlu0 %v3837_v54, %s4272_s8  ;;  %v1135_v54 = vrot.slane %v1098_v38, 4  ;;  %7715 = vst [vmem:[#allocation3_spill] sm:$0xff] %v4741_v13 }
  0xfc   :  { %410 = vrot.lane.b32.xlu2 %v4513_v49, %s4272_s8  ;;  %v1325_v49 = vrot.slane %v1282_v50, 4 }
  0xfd   :  { %414 = vrot.lane.b32.xlu1 %v4547_v37, %s4272_s8  ;;  %3873 = vrot.lane.b32.xlu0 %v3872_v36, %s4268_s23  ;;  %v1086_v37 = vperm.slane %v4494_v62, %v4488_v61  ;;  %v1286_v62 = vperm.slane %v1278_v29, %v4488_v61 }
  0xfe   :  { %v4737_v44 = vsel %vm435_vm5, %v1294_v45, %v1325_v49 }
  0xff   :  { %v4732_v7 = vsel %vm435_vm5, %v1135_v54, %v1086_v37  ;;  %7714 = vst [vmem:[#allocation2_spill] sm:$0xff] %v4737_v44  ;;  %v1137_v56 = vrot.slane %v1086_v37, 4  ;;  %v1337_v18 = vrot.slane %v1286_v62, 4 }
 0x101   :  { %v4748_v15 = vsel %vm435_vm5, %v1098_v38, %v1137_v56  ;;  %v4751_v35 = vsel %vm435_vm5, %v1298_v32, %v1337_v18 }
 0x102   :  { %7716 = vst [vmem:[#allocation4_spill] sm:$0xff] %v4751_v35 }
 0x104   :  { %416 = vrot.lane.b32.xlu2 %v367_v63, %s4272_s8 }
 0x105   :  { %420 = vrot.lane.b32.xlu1 %v372_v59, %s4272_s8  ;;  %412 = vrot.lane.b32.xlu0 %v4645_v30, %s4272_s8  ;;  %v1335_v30 = vrot.slane %v1298_v32, 4  ;;  %v4769_v59 = vunpack.c.0.s8 %v488_v9 }
 0x107   :  { %v4756_v5 = vsel %vm435_vm5, %v1335_v30, %v1286_v62  ;;  %v4781_v23 = vperm.slane %v4607_v28, %v4769_v59  ;;  %v4787_v24 = vperm.slane %v4615_v52, %v4769_v59  ;;  %v4791_v25 = vperm.slane %v4618_v40, %v4769_v59 }
 0x108   :  { %7717 = vst [vmem:[#allocation5_spill] sm:$0xff] %v4756_v5  ;;  %v4795_v41 = vperm.slane %v4629_v3, %v4769_v59  ;;  %v4804_v51 = vperm.slane %v4634_v53, %v4769_v59  ;;  %v4810_v40 = vperm.slane %v4639_v16, %v4769_v59  ;;  %v4814_v3 = vperm.slane %v4659_v0, %v4769_v59 }
 0x109   :  { %v4819_v12 = vperm.slane %v4623_v57, %v4769_v59  ;;  %v4827_v16 = vperm.slane %v4676_v22, %v4769_v59  ;;  %v4831_v0 = vperm.slane %v4667_v43, %v4769_v59  ;;  %v4849_v11 = vperm.slane %v4683_v21, %v4769_v59 }
 0x10a   :  { %v4853_v62 = vperm.slane %v4709_v48, %v4769_v59  ;;  %v4860_v32 = vperm.slane %v4696_v17, %v4769_v59  ;;  %v4865_v30 = vperm.slane %v4704_v33, %v4769_v59  ;;  %v4871_v56 = vperm.slane %v4701_v27, %v4769_v59 }
 0x10b   :  { %7722 = vst [vmem:[#allocation10_spill] sm:$0xff] %v4819_v12  ;;  %v4875_v17 = vperm.slane %v4732_v7, %v4769_v59  ;;  %v4887_v27 = vperm.slane %v4723_v2, %v4769_v59  ;;  %v4891_v7 = vperm.slane %v4748_v15, %v4769_v59 }
 0x10c   :  { %422 = vrot.lane.b32.xlu2 %v4561_v46, %s4272_s8  ;;  %7723 = vst [vmem:[#allocation11_spill] sm:$0xff] %v4831_v0 }
 0x10d   :  { %418 = vrot.lane.b32.xlu0 %v4586_v60, %s4272_s8  ;;  %7725 = vst [vmem:[#allocation13_spill] sm:$0xff] %v4860_v32 }
 0x10e   :  { %7726 = vst [vmem:[#allocation14_spill] sm:$0xff] %v4865_v30 }
 0x10f   :  { %7727 = vst [vmem:[#allocation15_spill] sm:$0xff] %v4871_v56 }
 0x110   :  { %7728 = vst [vmem:[#allocation16_spill] sm:$0xff] %v4875_v17 }
 0x111   :  { %7729 = vst [vmem:[#allocation17_spill] sm:$0xff] %v4887_v27 }
 0x112   :  { %7730 = vst [vmem:[#allocation18_spill] sm:$0xff] %v4891_v7 }
 0x115   :  { %424 = vrot.lane.b32.xlu0 %v377_v58, %s4272_s8  ;;  %v4777_v58 = vperm.slane %v4610_v34, %v4769_v59  ;;  %v4799_v34 = vperm.slane %v4626_v1, %v4769_v59 }
 0x117   :  { %7720 = vst [vmem:[#allocation8_spill] sm:$0xff] %v4777_v58 }
 0x118   :  { %7721 = vst [vmem:[#allocation9_spill] sm:$0xff] %v4799_v34 }
 0x126   :  { %v4759_v63 = vpop.permute.xlu2 %3793 }
 0x127   :  { %v3796_v42 = vunpack.i.h.bf16 %v4759_v63  ;;  %v3795_v54 = vunpack.i.l.bf16 %v4759_v63 }
 0x129   :  { %v963_v21 = vrot.slane %v3796_v42, 4  ;;  %v459_v4 = vrot.slane %v3795_v54, 4 }
 0x12e   :  { %v4761_v31 = vpop.permute.xlu2 %3808  ;;  %v3784_v20 = vpop.permute.xlu0 %3783 }
 0x12f   :  { %v3786_v57 = vunpack.i.h.bf16 %v3784_v20  ;;  %v3785_v14 = vunpack.i.l.bf16 %v3784_v20  ;;  %v3810_v63 = vunpack.i.l.bf16 %v4761_v31 }
 0x131   :  { %v965_v20 = vrot.slane %v3786_v57, 4  ;;  %v461_v9 = vrot.slane %v3785_v14, 4  ;;  %v964_v18 = vsel %vm435_vm5, %v963_v21, %v3786_v57  ;;  %v3811_v57 = vunpack.i.h.bf16 %v4761_v31 }
 0x132   :  { %v561_v15 = vrot.slane %v3810_v63, 4 }
 0x133   :  { %v1065_v6 = vrot.slane %v3811_v57, 4 }
 0x136   :  { %v4763_v46 = vpop.permute.xlu1 %3788  ;;  %v4765_v47 = vpop.permute.xlu2 %3823 }
 0x137   :  { %7718 = vst [vmem:[#allocation6_spill] sm:$0xff] %v4765_v47  ;;  %v3790_v43 = vunpack.i.l.bf16 %v4763_v46  ;;  %v3791_v26 = vunpack.i.h.bf16 %v4763_v46  ;;  %v3825_v36 = vunpack.i.l.bf16 %v4765_v47 }
 0x139   :  { %v977_v5 = vrot.slane %v3791_v26, 4  ;;  %v473_v44 = vrot.slane %v3790_v43, 4 }
 0x13e   :  { %v4767_v19 = vpop.permute.xlu1 %3803  ;;  %v4771_v60 = vpop.permute.xlu2 %3838 }
 0x13f   :  { %7719 = vst [vmem:[#allocation7_spill] sm:$0xff] %v4771_v60 }
 0x146   :  { %v4855_v8 = vpop.permute.xlu2 %3853 }
 0x147   :  { %v4773_v10 = vpop.permute.xlu1 %3818  ;;  %v4783_v55 = vpop.permute.xlu0 %3798  ;;  %7724 = vst [vmem:[#allocation12_spill] sm:$0xff] %v4855_v8 }
 0x148   :  { %v7631_v28 = vunpack.i.l.bf16 %v4783_v55  ;;  %v7632_v1 = vunpack.i.l.bf16 %v4773_v10  ;;  %v7738_v7 = vunpack.i.l.bf16 %v4783_v55 }
 0x14a   :  { %v471_v45 = vrot.slane %v7631_v28, 4  ;;  %v559_v29 = vrot.slane %v7632_v1, 4 }
 0x14c   :  { %v472_v48 = vsel %vm435_vm5, %v471_v45, %v3790_v43  ;;  %v560_v33 = vsel %vm435_vm5, %v559_v29, %v3810_v63  ;;  %v460_v45 = vsel %vm435_vm5, %v459_v4, %v3785_v14  ;;  %v966_v29 = vsel %vm435_vm5, %v3796_v42, %v965_v20 }
 0x14d   :  { %v4883_v22 = vperm.slane %v472_v48, %v4488_v61  ;;  %v4898_v14 = vperm.slane %v964_v18, %v4488_v61  ;;  %v462_v48 = vsel %vm435_vm5, %v3795_v54, %v461_v9  ;;  %v4902_v2 = vperm.slane %v560_v33, %v4488_v61 }
 0x14e   :  { %v466_v31 = vperm.slane %v460_v45, %v4488_v61  ;;  %v3805_v42 = vunpack.i.l.bf16 %v4767_v19  ;;  %v3821_v20 = vunpack.i.h.bf16 %v4773_v10  ;;  %v4915_v54 = vperm.slane %v966_v29, %v4488_v61  ;;  %v4928_v38 = vpop.permute.xlu2 %3868 }
 0x14f   :  { %v4838_v37 = vpop.permute.xlu1 %3833  ;;  %v4845_v49 = vpop.permute.xlu0 %3813  ;;  %v507_v9 = vrot.slane %v4883_v22, 4  ;;  %v4921_v45 = vperm.slane %v462_v48, %v4488_v61  ;;  %v595_v53 = vrot.slane %v4902_v2, 4  ;;  %v3801_v29 = vunpack.i.h.bf16 %v4783_v55  ;;  %7732 = vst [vmem:[#allocation20_spill] sm:$0xff] %v4928_v38 }
 0x150   :  { %v7630_v21 = vunpack.i.l.bf16 %v4845_v49  ;;  %7731 = vst [vmem:[#allocation19_spill] sm:$0xff] %v4915_v54  ;;  %v509_v48 = vrot.slane %v466_v31, 4  ;;  %v1063_v52 = vrot.slane %v3821_v20, 4  ;;  %v661_v63 = vrot.slane %v3825_v36, 4 }
 0x151   :  { %v508_v28 = vsel %vm435_vm5, %v507_v9, %v466_v31  ;;  %v975_v13 = vrot.slane %v3801_v29, 4  ;;  %v7735_v9 = vunpack.i.l.bf16 %v4773_v10  ;;  %v3835_v35 = vunpack.i.l.bf16 %v4838_v37 }
 0x152   :  { %v547_v50 = vrot.slane %v7630_v21, 4  ;;  %v1066_v21 = vsel %vm435_vm5, %v3821_v20, %v1065_v6  ;;  %v1064_v31 = vsel %vm435_vm5, %v1063_v52, %v3811_v57  ;;  %v549_v20 = vrot.slane %v3805_v42, 4 }
 0x153   :  { %v978_v57 = vsel %vm435_vm5, %v3801_v29, %v977_v5  ;;  %v474_v52 = vsel %vm435_vm5, %v7738_v7, %v473_v44  ;;  %v659_v10 = vrot.slane %v3835_v35, 4  ;;  %v7739_v5 = vrot.slane %v4777_v58, 4 }
 0x154   :  { %v548_v39 = vsel %vm435_vm5, %v547_v50, %v3805_v42  ;;  %v7637_v50 = vunpack.i.h.bf16 %v4767_v19  ;;  %v510_v44 = vsel %vm435_vm5, %v4883_v22, %v509_v48  ;;  %v7741_v55 = vunpack.i.h.bf16 %v4771_v60 }
 0x155   :  { %v4931_v33 = vperm.slane %v548_v39, %v4488_v61  ;;  %v4955_v39 = vperm.slane %v508_v28, %v4769_v59  ;;  %v4969_v28 = vperm.slane %v1066_v21, %v4488_v61  ;;  %v4985_v21 = vperm.slane %v978_v57, %v4488_v61 }
 0x156   :  { %v1053_v6 = vrot.slane %v7637_v50, 4  ;;  %v976_v50 = vsel %vm435_vm5, %v975_v13, %v3791_v26  ;;  %v4994_v26 = vrot.slane %v7741_v55, 4  ;;  %v7742_v7 = vunpack.i.l.bf16 %v4771_v60 }
 0x157   :  { %v4904_v4 = vpop.permute.xlu1 %3848  ;;  %v4912_v18 = vpop.permute.xlu0 %3828  ;;  %v596_v1 = vsel %vm435_vm5, %v595_v53, %v4931_v33  ;;  %v562_v53 = vsel %vm435_vm5, %v7735_v9, %v561_v15  ;;  %7736 = vst [vmem:[#allocation23_spill] sm:$0xff] %v4955_v39  ;;  %v4966_v9 = vperm.slane %v1064_v31, %v4488_v61  ;;  %v534_v29 = vsel %vm435_vm5, %v4955_v39, %v7739_v5 }
 0x158   :  { %v4945_v46 = vperm.slane %v596_v1, %v4769_v59  ;;  %7737 = vst [vmem:[#allocation24_spill] sm:$0xff] %v4969_v28  ;;  %v4972_v42 = vperm.slane %v562_v53, %v4488_v61  ;;  %v597_v53 = vrot.slane %v4931_v33, 4  ;;  %v4988_v1 = vpop.permute.xlu2 %410  ;;  %v671_v5 = vrot.slane %v7742_v7, 4 }
 0x159   :  { %7740 = vst [vmem:[#allocation25_spill] sm:$0xff] %v4985_v21  ;;  %v3816_v57 = vunpack.i.h.bf16 %v4845_v49  ;;  %v7743_v58 = vunpack.i.h.bf16 %v4855_v8  ;;  %v7744_v22 = vunpack.i.l.bf16 %v4855_v8  ;;  %v660_v33 = vsel %vm435_vm5, %v659_v10, %v3825_v36 }
 0x15a   :  { %7734 = vst [vmem:[#allocation22_spill] sm:$0xff] %v4945_v46  ;;  %v645_v15 = vrot.slane %v4945_v46, 4  ;;  %v3870_v56 = vunpack.i.l.bf16 %v4928_v38  ;;  %v3850_v36 = vunpack.i.l.bf16 %v4904_v4  ;;  %v7750_v28 = vunpack.i.l.bf16 %v4771_v60 }
 0x15b   :  { %v683_v48 = vrot.slane %v7744_v22, 4  ;;  %v1051_v7 = vrot.slane %v3816_v57, 4  ;;  %v5032_v22 = vperm.slane %v660_v33, %v4488_v61  ;;  %v1054_v47 = vsel %vm435_vm5, %v3816_v57, %v1053_v6 }
 0x15c   :  { %v646_v31 = vsel %vm435_vm5, %v4819_v12, %v645_v15  ;;  %v4999_v15 = vperm.slane %v976_v50, %v4488_v61  ;;  %v7746_v33 = vunpack.i.h.bf16 %v4767_v19  ;;  %v809_v32 = vrot.slane %v3870_v56, 4 }
 0x15d   :  { %v3882_v13 = vpack.i.bf16 %v646_v31, %v534_v29  ;;  %v5005_v29 = vrot.slane %v7743_v58, 4  ;;  %v5010_v31 = vperm.slane %v474_v52, %v4488_v61  ;;  %v518_v58 = vperm.slane %v510_v44, %v4769_v59 }
 0x15e   :  { %v3830_v52 = vunpack.i.l.bf16 %v4912_v18  ;;  %v662_v44 = vsel %vm435_vm5, %v3835_v35, %v661_v63  ;;  %v1052_v12 = vsel %vm435_vm5, %v1051_v7, %v7746_v33  ;;  %v5059_v0 = vperm.slane %v1054_v47, %v4488_v61 }
 0x15f   :  { %v4942_v27 = vpop.permute.xlu1 %3863  ;;  %v4952_v43 = vpop.permute.xlu0 %3843  ;;  %3883 = vrot.lane.b32.xlu1 %v3882_v13, %s4274_s9  ;;  %v598_v13 = vsel %vm435_vm5, %v4902_v2, %v597_v53  ;;  %v519_v10 = vrot.slane %v5010_v31, 4  ;;  %v535_v39 = vrot.slane %v518_v58, 4  ;;  %v5044_v63 = vperm.slane %v662_v44, %v4488_v61 }
 0x160   :  { %7733 = vst [vmem:[#allocation21_spill] sm:$0xff] %v4942_v27  ;;  %v606_v50 = vperm.slane %v598_v13, %v4769_v59  ;;  %v672_v30 = vsel %vm435_vm5, %v671_v5, %v3830_v52  ;;  %v3845_v35 = vunpack.i.l.bf16 %v4952_v43  ;;  %v673_v5 = vrot.slane %v3830_v52, 4  ;;  %v5055_v17 = vpop.permute.xlu2 %416 }
 0x161   :  { %v5062_v19 = vperm.slane %v672_v30, %v4488_v61  ;;  %v5072_v52 = vperm.slane %v1052_v12, %v4488_v61  ;;  %v697_v60 = vrot.slane %v3850_v36, 4 }
 0x162   :  { %v684_v47 = vsel %vm435_vm5, %v683_v48, %v3845_v35  ;;  %v674_v12 = vsel %vm435_vm5, %v7750_v28, %v673_v5  ;;  %v649_v48 = vrot.slane %v606_v50, 4 }
 0x164   :  { %v650_v5 = vsel %vm435_vm5, %v4795_v41, %v649_v48 }
 0x167   :  { %v5013_v55 = vpop.permute.xlu1 %3878  ;;  %v5018_v46 = vpop.permute.xlu0 %3858 }
 0x168   :  { %v7745_v2 = vunpack.i.l.bf16 %v5018_v46  ;;  %v7748_v13 = vunpack.i.l.bf16 %v5013_v55 }
 0x16a   :  { %v695_v53 = vrot.slane %v7745_v2, 4  ;;  %v7747_v2 = vunpack.i.l.bf16 %v4845_v49  ;;  %v807_v6 = vrot.slane %v7748_v13, 4  ;;  %v536_v49 = vsel %vm435_vm5, %v535_v39, %v4787_v24 }
 0x16c   :  { %v550_v38 = vsel %vm435_vm5, %v7747_v2, %v549_v20  ;;  %v696_v44 = vsel %vm435_vm5, %v695_v53, %v3850_v36  ;;  %v7749_v20 = vrot.slane %v4795_v41, 4  ;;  %v808_v13 = vsel %vm435_vm5, %v807_v6, %v3870_v56 }
 0x16d   :  { %v5075_v53 = vperm.slane %v550_v38, %v4488_v61  ;;  %v702_v39 = vperm.slane %v696_v44, %v4488_v61  ;;  %v3865_v38 = vunpack.i.l.bf16 %v4942_v27  ;;  %v690_v56 = vperm.slane %v684_v47, %v4488_v61 }
 0x16e   :  { %v648_v7 = vsel %vm435_vm5, %v7749_v20, %v606_v50  ;;  %v814_v44 = vperm.slane %v808_v13, %v4488_v61  ;;  %v7751_v20 = vrot.slane %v4787_v24, 4  ;;  %v520_v50 = vsel %vm435_vm5, %v519_v10, %v4921_v45 }
 0x16f   :  { %v5069_v33 = vpop.permute.xlu0 %3873  ;;  %v3887_v2 = vpack.i.bf16 %v648_v7, %v536_v49  ;;  %v707_v49 = vrot.slane %v5062_v19, 4  ;;  %v685_v7 = vrot.slane %v3845_v35, 4  ;;  %v526_v47 = vperm.slane %v520_v50, %v4769_v59  ;;  %v423_v50 = vpop.permute.xlu2 %422 }
 0x170   :  { %v7656_v57 = vunpack.i.l.bf16 %v5069_v33  ;;  %v538_v28 = vsel %vm435_vm5, %v518_v58, %v7751_v20  ;;  %v5104_v13 = vperm.slane %v674_v12, %v4488_v61  ;;  %v7752_v10 = vrot.slane %v4972_v42, 4 }
 0x171   :  { %3888 = vrot.lane.b32.xlu1 %v3887_v2, %s4275_s10  ;;  %v731_v2 = vrot.slane %v702_v39, 4  ;;  %v3892_v30 = vpack.i.bf16 %v650_v5, %v538_v28  ;;  %v539_v20 = vrot.slane %v526_v47, 4  ;;  %v797_v28 = vrot.slane %v3865_v38, 4 }
 0x172   :  { %v795_v6 = vrot.slane %v7656_v57, 4  ;;  %v609_v57 = vrot.slane %v5075_v53, 4  ;;  %v608_v48 = vsel %vm435_vm5, %v7752_v10, %v5075_v53  ;;  %v7753_v36 = vunpack.i.l.bf16 %v4855_v8  ;;  %v415_v10 = vpop.permute.xlu1 %414 }
 0x173   :  { %v733_v5 = vrot.slane %v690_v56, 4  ;;  %v7754_v24 = vunpack.i.l.bf16 %v5013_v55  ;;  %v843_v21 = vrot.slane %v814_v44, 4  ;;  %v732_v53 = vsel %vm435_vm5, %v731_v2, %v690_v56 }
 0x174   :  { %v796_v35 = vsel %vm435_vm5, %v795_v6, %v3865_v38  ;;  %v708_v6 = vsel %vm435_vm5, %v707_v49, %v5032_v22  ;;  %v686_v12 = vsel %vm435_vm5, %v7753_v36, %v685_v7  ;;  %v7755_v38 = vunpack.i.l.bf16 %v5018_v46 }
 0x175   :  { %v802_v58 = vperm.slane %v796_v35, %v4488_v61  ;;  %v614_v35 = vperm.slane %v608_v48, %v4769_v59  ;;  %v810_v27 = vsel %vm435_vm5, %v7754_v24, %v809_v32  ;;  %v5124_v54 = vperm.slane %v708_v6, %v4769_v59 }
 0x176   :  { %v698_v49 = vsel %vm435_vm5, %v7755_v38, %v697_v60  ;;  %v540_v7 = vsel %vm435_vm5, %v539_v20, %v4781_v23  ;;  %v7756_v48 = vrot.slane %v4791_v25, 4  ;;  %v5137_v24 = vperm.slane %v732_v53, %v4769_v59 }
 0x177   :  { %v5108_v41 = vpop.permute.xlu0 %412  ;;  %v895_v6 = vrot.slane %v423_v50, 4  ;;  %v845_v56 = vrot.slane %v802_v58, 4  ;;  %v844_v36 = vsel %vm435_vm5, %v843_v21, %v802_v58  ;;  %v5141_v60 = vperm.slane %v686_v12, %v4488_v61 }
 0x178   :  { %v652_v32 = vsel %vm435_vm5, %v7756_v48, %v614_v35  ;;  %v757_v20 = vrot.slane %v5124_v54, 4  ;;  %v5148_v38 = vperm.slane %v844_v36, %v4769_v59  ;;  %v5151_v48 = vperm.slane %v698_v49, %v4488_v61 }
 0x179   :  { %3893 = vrot.lane.b32.xlu1 %v3892_v30, %s4276_s11  ;;  %v3897_v2 = vpack.i.bf16 %v652_v32, %v540_v7  ;;  %v5144_v30 = vperm.slane %v810_v27, %v4488_v61  ;;  %v896_v53 = vsel %vm435_vm5, %v895_v6, %v415_v10  ;;  %v653_v8 = vrot.slane %v614_v35, 4 }
 0x17a   :  { %v734_v7 = vsel %vm435_vm5, %v702_v39, %v733_v5  ;;  %v758_v21 = vsel %vm435_vm5, %v5137_v24, %v757_v20  ;;  %v7757_v58 = vrot.slane %v4799_v34, 4  ;;  %v7758_v12 = vrot.slane %v4781_v23, 4 }
 0x17b   :  { %v5165_v49 = vperm.slane %v734_v7, %v4769_v59  ;;  %v654_v39 = vsel %vm435_vm5, %v4791_v25, %v653_v8  ;;  %v846_v5 = vsel %vm435_vm5, %v814_v44, %v845_v56  ;;  %v7759_v35 = vrot.slane %v4921_v45, 4 }
 0x17c   :  { %v870_v27 = vsel %vm435_vm5, %v5148_v38, %v7757_v58  ;;  %v542_v32 = vsel %vm435_vm5, %v526_v47, %v7758_v12  ;;  %v897_v58 = vrot.slane %v415_v10, 4  ;;  %v7760_v23 = vunpack.i.l.bf16 %v5069_v33 }
 0x17d   :  { %v3937_v36 = vpack.i.bf16 %v870_v27, %v758_v21  ;;  %v522_v20 = vsel %vm435_vm5, %v5010_v31, %v7759_v35  ;;  %v3902_v7 = vpack.i.bf16 %v654_v39, %v542_v32  ;;  %v7761_v21 = vrot.slane %v5032_v22, 4 }
 0x17e   :  { %v798_v47 = vsel %vm435_vm5, %v7760_v23, %v797_v28  ;;  %v854_v8 = vperm.slane %v846_v5, %v4769_v59  ;;  %v530_v45 = vperm.slane %v522_v20, %v4769_v59  ;;  %v610_v31 = vsel %vm435_vm5, %v4972_v42, %v609_v57 }
 0x17f   :  { %v419_v6 = vpop.permute.xlu0 %418  ;;  %3938 = vrot.lane.b32.xlu2 %v3937_v36, %s4274_s9  ;;  %v710_v25 = vsel %vm435_vm5, %v5062_v19, %v7761_v21  ;;  %v855_v44 = vrot.slane %v5144_v30, 4  ;;  %v759_v22 = vrot.slane %v5165_v49, 4  ;;  %v618_v10 = vperm.slane %v610_v31, %v4769_v59 }
 0x180   :  { %v883_v12 = vrot.slane %v419_v6, 4  ;;  %v5193_v19 = vperm.slane %v896_v53, %v4488_v61  ;;  %v871_v27 = vrot.slane %v854_v8, 4  ;;  %v543_v42 = vrot.slane %v530_v45, 4 }
 0x181   :  { %3898 = vrot.lane.b32.xlu1 %v3897_v2, %s4277_s12  ;;  %v898_v57 = vsel %vm435_vm5, %v423_v50, %v897_v58  ;;  %v5200_v32 = vperm.slane %v798_v47, %v4488_v61  ;;  %v718_v2 = vperm.slane %v710_v25, %v4769_v59  ;;  %v7762_v36 = vrot.slane %v4814_v3, 4 }
 0x182   :  { %v884_v28 = vsel %vm435_vm5, %v883_v12, %v4988_v1  ;;  %v743_v53 = vrot.slane %v5151_v48, 4  ;;  %v872_v5 = vsel %vm435_vm5, %v871_v27, %v4810_v40  ;;  %v544_v35 = vsel %vm435_vm5, %v543_v42, %v4804_v51 }
 0x183   :  { %v5196_v56 = vperm.slane %v884_v28, %v4488_v61  ;;  %v5206_v39 = vsel %vm435_vm5, %v7762_v36, %v618_v10  ;;  %v7763_v20 = vrot.slane %v4988_v1, 4  ;;  %v760_v23 = vsel %vm435_vm5, %v759_v22, %v718_v2 }
 0x184   :  { %v3907_v47 = vpack.i.bf16 %v5206_v39, %v544_v35  ;;  %v657_v12 = vrot.slane %v618_v10, 4  ;;  %v7665_v21 = vunpack.i.h.bf16 %v5018_v46  ;;  %v5221_v25 = vperm.slane %v898_v57, %v4488_v61 }
 0x185   :  { %v909_v50 = vrot.slane %v5196_v56, 4  ;;  %v886_v58 = vsel %vm435_vm5, %v419_v6, %v7763_v20  ;;  %v3942_v31 = vpack.i.bf16 %v872_v5, %v760_v23  ;;  %v7764_v1 = vrot.slane %v4804_v51, 4 }
 0x186   :  { %v5235_v22 = vsel %vm435_vm5, %v4814_v3, %v657_v12  ;;  %v856_v10 = vsel %vm435_vm5, %v855_v44, %v5200_v32  ;;  %v7765_v42 = vunpack.i.h.bf16 %v4838_v37  ;;  %v894_v39 = vperm.slane %v886_v58, %v4488_v61 }
 0x187   :  { %v910_v28 = vsel %vm435_vm5, %v5193_v19, %v909_v50  ;;  %v5231_v6 = vsel %vm435_vm5, %v530_v45, %v7764_v1  ;;  %3943 = vrot.lane.b32.xlu2 %v3942_v31, %s4275_s10  ;;  %v7666_v45 = vunpack.i.h.bf16 %v4904_v4  ;;  %v7766_v3 = vunpack.i.h.bf16 %v4912_v18 }
 0x188   :  { %v5226_v27 = vperm.slane %v910_v28, %v4769_v59  ;;  %v5241_v57 = vrot.slane %v7765_v42, 4  ;;  %v7767_v5 = vunpack.i.h.bf16 %v4952_v43  ;;  %v744_v50 = vsel %vm435_vm5, %v743_v53, %v5141_v60 }
 0x189   :  { %v1176_v44 = vsel %vm435_vm5, %v4994_v26, %v7766_v3  ;;  %3903 = vrot.lane.b32.xlu1 %v3902_v7, %s4278_s13  ;;  %v1199_v58 = vrot.slane %v7665_v21, 4  ;;  %v5265_v26 = vpop.permute.xlu1 %420  ;;  %v919_v23 = vrot.slane %v5221_v25, 4  ;;  %v1101_v7 = vrot.slane %v5072_v52, 4 }
 0x18a   :  { %v1188_v35 = vsel %vm435_vm5, %v5005_v29, %v7767_v5  ;;  %1476 = vrot.lane.b32.xlu0 %v5226_v27, %s4275_s10  ;;  %v5269_v29 = vperm.slane %v856_v10, %v4769_v59  ;;  %v719_v12 = vrot.slane %v5104_v13, 4  ;;  %v761_v31 = vrot.slane %v718_v2, 4 }
 0x18b   :  { %v7768_v28 = vrot.slane %v4810_v40, 4  ;;  %v5277_v1 = vperm.slane %v1176_v44, %v4488_v61  ;;  %v5280_v42 = vperm.slane %v1188_v35, %v4488_v61  ;;  %v920_v3 = vsel %vm435_vm5, %v919_v23, %v894_v39  ;;  %v5294_v44 = vpop.permute.xlu0 %424 }
 0x18c   :  { %v5284_v10 = vperm.slane %v744_v50, %v4769_v59  ;;  %v745_v5 = vrot.slane %v5141_v60, 4  ;;  %v7667_v21 = vunpack.i.h.bf16 %v5013_v55  ;;  %v1387_v2 = vrot.slane %v5265_v26, 4 }
 0x18d   :  { %v874_v53 = vsel %vm435_vm5, %v854_v8, %v7768_v28  ;;  %v762_v40 = vsel %vm435_vm5, %v5165_v49, %v761_v31  ;;  %v1200_v8 = vsel %vm435_vm5, %v1199_v58, %v7666_v45  ;;  %v875_v23 = vrot.slane %v5269_v29, 4 }
 0x18e   :  { %v3947_v35 = vpack.i.bf16 %v874_v53, %v762_v40  ;;  %v7769_v50 = vrot.slane %v4898_v14, 4  ;;  %v5302_v28 = vperm.slane %v920_v3, %v4769_v59  ;;  %v720_v49 = vsel %vm435_vm5, %v719_v12, %v5044_v63 }
 0x18f   :  { %v1102_v58 = vsel %vm435_vm5, %v4966_v9, %v1101_v7  ;;  %v921_v45 = vrot.slane %v894_v39, 4  ;;  %v763_v53 = vrot.slane %v5284_v10, 4  ;;  %v7770_v40 = vrot.slane %v4966_v9, 4 }
 0x190   :  { %v1014_v60 = vsel %vm435_vm5, %v4999_v15, %v7769_v50  ;;  %3948 = vrot.lane.b32.xlu2 %v3947_v35, %s4276_s11  ;;  %v1110_v3 = vperm.slane %v1102_v58, %v4769_v59  ;;  %v5318_v12 = vrot.slane %v7667_v21, 4  ;;  %v1399_v39 = vrot.slane %v5294_v44, 4 }
 0x191   :  { %v1022_v31 = vperm.slane %v1014_v60, %v4769_v59  ;;  %v1100_v50 = vsel %vm435_vm5, %v7770_v40, %v5072_v52  ;;  %v1388_v60 = vsel %vm435_vm5, %v1387_v2, %v5108_v41  ;;  %3908 = vrot.lane.b32.xlu1 %v3907_v47, %s4279_s14  ;;  %v726_v52 = vperm.slane %v720_v49, %v4769_v59 }
 0x192   :  { %1516 = vrot.lane.b32.xlu0 %v5302_v28, %s4277_s12  ;;  %v876_v7 = vsel %vm435_vm5, %v875_v23, %v4827_v16  ;;  %v7771_v35 = vrot.slane %v4999_v15, 4  ;;  %v7772_v2 = vrot.slane %v4853_v62, 4  ;;  %v5339_v47 = vperm.slane %v1200_v8, %v4488_v61 }
 0x193   :  { %v1039_v9 = vrot.slane %v1022_v31, 4  ;;  %v857_v21 = vrot.slane %v5200_v32, 4  ;;  %v5343_v49 = vperm.slane %v1100_v50, %v4769_v59  ;;  %v764_v15 = vsel %vm435_vm5, %v763_v53, %v726_v52 }
 0x194   :  { %v1012_v58 = vsel %vm435_vm5, %v7771_v35, %v4898_v14  ;;  %v5336_v40 = vsel %vm435_vm5, %v7772_v2, %v1110_v3  ;;  %v922_v14 = vsel %vm435_vm5, %v5221_v25, %v921_v45  ;;  %v1153_v2 = vrot.slane %v1110_v3, 4  ;;  %v7776_v45 = vld [vmem:[#allocation19_spill] sm:$0xff]  ;;  %v7777_v3 = vld [vmem:[#allocation25_spill] sm:$0xff] }
 0x195   :  { %7773 = vst [vmem:[#allocation26_spill] sm:$0xff] %v5343_v49  ;;  %v5347_v23 = vsel %vm435_vm5, %v1039_v9, %v4849_v11  ;;  %v5355_v8 = vperm.slane %v1388_v60, %v4488_v61  ;;  %v1400_v32 = vsel %vm435_vm5, %v1399_v39, %v5055_v17  ;;  %v3952_v50 = vpack.i.bf16 %v876_v7, %v764_v15  ;;  %v7779_v39 = vld [vmem:[#allocation24_spill] sm:$0xff] }
 0x196   :  { %v5360_v20 = vperm.slane %v1012_v58, %v4769_v59  ;;  %v7775_v9 = vrot.slane %v4849_v11, 4  ;;  %v5369_v25 = vsel %vm435_vm5, %v4853_v62, %v1153_v2  ;;  %v7778_v60 = vrot.slane %v7777_v3, 4  ;;  %v7784_v62 = vld [vmem:[#allocation16_spill] sm:$0xff] }
 0x197   :  { %v7780_v7 = vrot.slane %v7779_v39, 4  ;;  %v1235_v15 = vrot.slane %v5339_v47, 4  ;;  %v1149_v11 = vrot.slane %v5343_v49, 4  ;;  %v5387_v2 = vperm.slane %v1400_v32, %v4488_v61 }
 0x198   :  { %7774 = vst [vmem:[#allocation27_spill] sm:$0xff] %v5360_v20  ;;  %v5365_v53 = vsel %vm435_vm5, %v1022_v31, %v7775_v9  ;;  %v1024_v35 = vsel %vm435_vm5, %v7778_v60, %v7776_v45  ;;  %v5382_v31 = vperm.slane %v922_v14, %v4769_v59  ;;  %3953 = vrot.lane.b32.xlu2 %v3952_v50, %s4277_s12  ;;  %v907_v36 = vrot.slane %v5193_v19, 4 }
 0x199   :  { %v1112_v58 = vsel %vm435_vm5, %v7780_v7, %v5059_v0  ;;  %v858_v9 = vsel %vm435_vm5, %v5144_v30, %v857_v21  ;;  %v1030_v60 = vperm.slane %v1024_v35, %v4769_v59  ;;  %v1413_v51 = vrot.slane %v5355_v8, 4  ;;  %v7782_v21 = vld [vmem:[#allocation11_spill] sm:$0xff] }
 0x19a   :  { %v1118_v7 = vperm.slane %v1112_v58, %v4769_v59  ;;  %v7781_v32 = vpack.i.bf16 %v5235_v22, %v5231_v6  ;;  %1556 = vrot.lane.b32.xlu0 %v5382_v31, %s4279_s14  ;;  %v746_v30 = vsel %vm435_vm5, %v5151_v48, %v745_v5  ;;  %v7783_v35 = vrot.slane %v7782_v21, 4  ;;  %v7786_v6 = vld [vmem:[#allocation13_spill] sm:$0xff] }
 0x19b   :  { %v765_v50 = vrot.slane %v726_v52, 4  ;;  %v1043_v58 = vrot.slane %v1030_v60, 4  ;;  %v7785_v14 = vrot.slane %v7784_v62, 4  ;;  %v1150_v22 = vsel %vm435_vm5, %v7786_v6, %v1149_v11 }
 0x19c   :  { %3913 = vrot.lane.b32.xlu1 %v7781_v32, %s4280_s15  ;;  %v1038_v19 = vsel %vm435_vm5, %v5360_v20, %v7783_v35  ;;  %v7787_v32 = vrot.slane %v4827_v16, 4  ;;  %v866_v5 = vperm.slane %v858_v9, %v4769_v59  ;;  %v1157_v21 = vrot.slane %v1118_v7, 4  ;;  %v7788_v20 = vld [vmem:[#allocation14_spill] sm:$0xff] }
 0x19d   :  { %v5412_v49 = vsel %vm435_vm5, %v7785_v14, %v1118_v7  ;;  %v766_v52 = vsel %vm435_vm5, %v5284_v10, %v765_v50  ;;  %v1414_v35 = vsel %vm435_vm5, %v5387_v2, %v1413_v51  ;;  %v754_v14 = vperm.slane %v746_v30, %v4769_v59 }
 0x19e   :  { %v878_v48 = vsel %vm435_vm5, %v5269_v29, %v7787_v32  ;;  %v5428_v34 = vsel %vm435_vm5, %v1043_v58, %v7788_v20  ;;  %v908_v16 = vsel %vm435_vm5, %v907_v36, %v5196_v56  ;;  %v7789_v11 = vrot.slane %v7788_v20, 4 }
 0x19f   :  { %v5441_v51 = vsel %vm435_vm5, %v7784_v62, %v1157_v21  ;;  %v7790_v10 = vunpack.i.h.bf16 %v5069_v33  ;;  %v3917_v30 = vpack.i.bf16 %v1150_v22, %v1038_v19  ;;  %v3957_v50 = vpack.i.bf16 %v878_v48, %v766_v52 }
 0x1a0   :  { %v5437_v9 = vsel %vm435_vm5, %v1030_v60, %v7789_v11  ;;  %v5448_v36 = vperm.slane %v1414_v35, %v4769_v59  ;;  %v7791_v20 = vrot.slane %v5044_v63, 4  ;;  %v879_v58 = vrot.slane %v866_v5, 4  ;;  %v7797_v35 = vld [vmem:[#allocation21_spill] sm:$0xff] }
 0x1a1   :  { %v1299_v7 = vrot.slane %v7790_v10, 4  ;;  %v7792_v62 = vrot.slane %v7776_v45, 4  ;;  %3958 = vrot.lane.b32.xlu2 %v3957_v50, %s4278_s13  ;;  %v767_v19 = vrot.slane %v754_v14, 4  ;;  %v5460_v22 = vperm.slane %v908_v16, %v4769_v59 }
 0x1a2   :  { %v722_v60 = vsel %vm435_vm5, %v5104_v13, %v7791_v20  ;;  %v7794_v48 = vrot.slane %v5059_v0, 4  ;;  %v7795_v13 = vld [vmem:[#allocation6_spill] sm:$0xff]  ;;  %v7671_v11 = vunpack.i.h.bf16 %v7797_v35  ;;  %1616 = vrot.lane.b32.xlu0 %v5448_v36, %s4275_s10  ;;  %v7798_v0 = vld [vmem:[#allocation20_spill] sm:$0xff] }
 0x1a3   :  { %v1026_v21 = vsel %vm435_vm5, %v7777_v3, %v7792_v62  ;;  %7793 = vst [vmem:[#allocation19_spill] sm:$0xff] %v5460_v22  ;;  %v7796_v52 = vunpack.i.h.bf16 %v7795_v13  ;;  %v1211_v3 = vrot.slane %v5277_v1, 4  ;;  %v7799_v10 = vunpack.i.h.bf16 %v7798_v0  ;;  %v7800_v62 = vld [vmem:[#allocation15_spill] sm:$0xff] }
 0x1a4   :  { %v1034_v32 = vperm.slane %v1026_v21, %v4769_v59  ;;  %v1114_v63 = vsel %vm435_vm5, %v7779_v39, %v7794_v48  ;;  %3918 = vrot.lane.b32.xlu1 %v3917_v30, %s4274_s9  ;;  %v730_v50 = vperm.slane %v722_v60, %v4769_v59  ;;  %v1300_v30 = vsel %vm435_vm5, %v1299_v7, %v7671_v11  ;;  %v7801_v48 = vld [vmem:[#allocation18_spill] sm:$0xff] }
 0x1a5   :  { %v1164_v45 = vsel %vm435_vm5, %v5241_v57, %v7796_v52  ;;  %v1122_v16 = vperm.slane %v1114_v63, %v4769_v59  ;;  %v1312_v39 = vsel %vm435_vm5, %v5318_v12, %v7799_v10  ;;  %v1236_v57 = vsel %vm435_vm5, %v1235_v15, %v5280_v42  ;;  %v7803_v10 = vld [vmem:[#allocation17_spill] sm:$0xff] }
 0x1a6   :  { %v1047_v20 = vrot.slane %v1034_v32, 4  ;;  %v880_v21 = vsel %vm435_vm5, %v879_v58, %v7800_v62  ;;  %v7802_v63 = vrot.slane %v7801_v48, 4  ;;  %v755_v12 = vrot.slane %v5137_v24, 4 }
 0x1a7   :  { %v1161_v56 = vrot.slane %v1122_v16, 4  ;;  %v768_v60 = vsel %vm435_vm5, %v767_v19, %v730_v50  ;;  %v931_v15 = vrot.slane %v5460_v22, 4  ;;  %v1242_v7 = vperm.slane %v1236_v57, %v4769_v59 }
 0x1a8   :  { %v5492_v52 = vsel %vm435_vm5, %v7802_v63, %v1122_v16  ;;  %v5499_v29 = vsel %vm435_vm5, %v1047_v20, %v7803_v10  ;;  %v7804_v11 = vrot.slane %v7803_v10, 4  ;;  %v1170_v19 = vperm.slane %v1164_v45, %v4488_v61 }
 0x1a9   :  { %v4002_v58 = vpack.i.bf16 %v5492_v52, %v5499_v29  ;;  %v5511_v24 = vsel %vm435_vm5, %v7801_v48, %v1161_v56  ;;  %v1318_v16 = vperm.slane %v1312_v39, %v4488_v61  ;;  %v3962_v20 = vpack.i.bf16 %v880_v21, %v768_v60 }
 0x1aa   :  { %v5507_v63 = vsel %vm435_vm5, %v1034_v32, %v7804_v11  ;;  %v1306_v22 = vperm.slane %v1300_v30, %v4488_v61  ;;  %v932_v10 = vsel %vm435_vm5, 0.0, %v931_v15  ;;  %v1212_v32 = vsel %vm435_vm5, %v1211_v3, %v1170_v19 }
 0x1ab   :  { %v4012_v57 = vpack.i.bf16 %v5511_v24, %v5507_v63  ;;  %3963 = vrot.lane.b32.xlu2 %v3962_v20, %s4279_s14  ;;  %v5523_v56 = vsel %vm435_vm5, %v755_v12, %v5124_v54  ;;  %v7805_v45 = vpack.i.bf16 %v5336_v40, %v5347_v23  ;;  %1456 = vrot.lane.b32.xlu0 %v932_v10, %s4274_s9  ;;  %v881_v11 = vrot.slane %v7800_v62, 4  ;;  %v7806_v40 = vld [vmem:[#allocation3_spill] sm:$0xff] }
 0x1ac   :  { %v1259_v39 = vrot.slane %v1242_v7, 4  ;;  %v1347_v30 = vrot.slane %v1318_v16, 4  ;;  %v769_v21 = vrot.slane %v730_v50, 4  ;;  %v1218_v3 = vperm.slane %v1212_v32, %v4769_v59 }
 0x1ad   :  { %3923 = vrot.lane.b32.xlu1 %v7805_v45, %s4275_s10  ;;  %v882_v48 = vsel %vm435_vm5, %v866_v5, %v881_v11  ;;  %v1349_v60 = vrot.slane %v1306_v22, 4  ;;  %v933_v54 = vrot.slane %v5226_v27, 4  ;;  %v5538_v23 = vperm.slane %v7806_v40, %v4769_v59 }
 0x1ae   :  { %v1348_v12 = vsel %vm435_vm5, %v1347_v30, %v1306_v22  ;;  %v770_v15 = vsel %vm435_vm5, %v754_v14, %v769_v21  ;;  %v5541_v62 = vsel %vm435_vm5, %v1259_v39, %v1218_v3  ;;  %v1237_v5 = vrot.slane %v5280_v42, 4 }
 0x1af   :  { %v3967_v20 = vpack.i.bf16 %v882_v48, %v770_v15  ;;  %v5544_v50 = vperm.slane %v1348_v12, %v4769_v59  ;;  %v934_v27 = vsel %vm435_vm5, 0.0, %v933_v54  ;;  %v1350_v22 = vsel %vm435_vm5, %v1318_v16, %v1349_v60 }
 0x1b0   :  { %v7807_v14 = vpack.i.bf16 %v5369_v25, %v5365_v53  ;;  %v1373_v10 = vrot.slane %v5538_v23, 4  ;;  %v1238_v32 = vsel %vm435_vm5, %v5339_v47, %v1237_v5  ;;  %v1261_v45 = vrot.slane %v1218_v3, 4 }
 0x1b1   :  { %v1358_v11 = vperm.slane %v1350_v22, %v4769_v59  ;;  %v935_v16 = vrot.slane %v5302_v28, 4  ;;  %v7808_v39 = vunpack.i.h.bf16 %v7798_v0  ;;  %v7809_v53 = vunpack.i.h.bf16 %v4904_v4 }
 0x1b2   :  { %v1374_v42 = vsel %vm435_vm5, %v5544_v50, %v1373_v10  ;;  %v1262_v21 = vsel %vm435_vm5, %v1242_v7, %v1261_v45  ;;  %v1246_v48 = vperm.slane %v1238_v32, %v4769_v59  ;;  %v1213_v60 = vrot.slane %v1170_v19, 4  ;;  %v7814_v19 = vld [vmem:[#allocation2_spill] sm:$0xff]  ;;  %v7818_v45 = vld [vmem:[#allocation7_spill] sm:$0xff] }
 0x1b3   :  { %3968 = vrot.lane.b32.xlu2 %v3967_v20, %s4280_s15  ;;  %1496 = vrot.lane.b32.xlu0 %v934_v27, %s4276_s11  ;;  %v1313_v30 = vrot.slane %v7808_v39, 4  ;;  %v1201_v25 = vrot.slane %v7809_v53, 4  ;;  %v3972_v47 = vpack.i.bf16 %v1374_v42, %v1262_v21  ;;  %v7810_v3 = vunpack.i.h.bf16 %v7797_v35 }
 0x1b4   :  { %v7811_v12 = vunpack.i.h.bf16 %v5013_v55  ;;  %v7812_v28 = vunpack.i.h.bf16 %v5018_v46  ;;  %v1375_v40 = vrot.slane %v1358_v11, 4  ;;  %v7813_v4 = vunpack.i.h.bf16 %v4912_v18 }
 0x1b5   :  { %3928 = vrot.lane.b32.xlu1 %v7807_v14, %s4276_s11  ;;  %v1301_v54 = vrot.slane %v7810_v3, 4  ;;  %v936_v7 = vsel %vm435_vm5, 0.0, %v935_v16  ;;  %v1214_v35 = vsel %vm435_vm5, %v5277_v1, %v1213_v60  ;;  %v1334_v55 = vperm.slane %v7814_v19, %v4769_v59 }
 0x1b6   :  { %v1314_v15 = vsel %vm435_vm5, %v7811_v12, %v1313_v30  ;;  %v1202_v0 = vsel %vm435_vm5, %v7812_v28, %v1201_v25  ;;  %v1177_v20 = vrot.slane %v7813_v4, 4  ;;  %v7815_v5 = vunpack.i.h.bf16 %v4952_v43 }
 0x1b7   :  { %v7816_v46 = vunpack.i.h.bf16 %v5069_v33  ;;  %v1411_v18 = vrot.slane %v5387_v2, 4  ;;  %v7817_v14 = vpack.i.bf16 %v5412_v49, %v5428_v34  ;;  %v1263_v1 = vrot.slane %v1246_v48, 4  ;;  %v7820_v49 = vld [vmem:[#allocation12_spill] sm:$0xff] }
 0x1b8   :  { %v1189_v27 = vrot.slane %v7815_v5, 4  ;;  %v1322_v10 = vperm.slane %v1314_v15, %v4488_v61  ;;  %v5597_v32 = vperm.slane %v1202_v0, %v4488_v61  ;;  %v1222_v43 = vperm.slane %v1214_v35, %v4769_v59 }
 0x1b9   :  { %v1302_v22 = vsel %vm435_vm5, %v7816_v46, %v1301_v54  ;;  %v1376_v33 = vsel %vm435_vm5, %v1375_v40, %v1334_v55  ;;  %v7819_v42 = vunpack.i.h.bf16 %v7818_v45  ;;  %v937_v34 = vrot.slane %v5382_v31, 4 }
 0x1ba   :  { %v1310_v16 = vperm.slane %v1302_v22, %v4488_v61  ;;  %v7821_v39 = vunpack.i.h.bf16 %v7820_v49  ;;  %v1264_v53 = vsel %vm435_vm5, %v1263_v1, %v1222_v43  ;;  %v1412_v25 = vsel %vm435_vm5, %v1411_v18, %v5355_v8 }
 0x1bb   :  { %3973 = vrot.lane.b32.xlu2 %v3972_v47, %s4274_s9  ;;  %1536 = vrot.lane.b32.xlu0 %v936_v7, %s4278_s13  ;;  %v1178_v2 = vsel %vm435_vm5, %v7819_v42, %v1177_v20  ;;  %v1359_v21 = vrot.slane %v1322_v10, 4  ;;  %v1247_v60 = vrot.slane %v5597_v32, 4  ;;  %v3977_v47 = vpack.i.bf16 %v1376_v33, %v1264_v53 }
 0x1bc   :  { %v1190_v30 = vsel %vm435_vm5, %v7821_v39, %v1189_v27  ;;  %v5614_v3 = vperm.slane %v1178_v2, %v4488_v61  ;;  %v938_v31 = vsel %vm435_vm5, 0.0, %v937_v34  ;;  %v5620_v12 = vperm.slane %v1412_v25, %v4769_v59 }
 0x1bd   :  { %3933 = vrot.lane.b32.xlu1 %v7817_v14, %s4277_s12  ;;  %v1198_v54 = vperm.slane %v1190_v30, %v4488_v61  ;;  %v1360_v15 = vsel %vm435_vm5, %v1359_v21, %v1310_v16  ;;  %v7822_v8 = vunpack.i.h.bf16 %v7795_v13  ;;  %v7823_v0 = vpack.i.bf16 %v5441_v51, %v5437_v9 }
 0x1be   :  { %v1377_v40 = vrot.slane %v1334_v55, 4  ;;  %v7824_v20 = vunpack.i.h.bf16 %v4838_v37  ;;  %v1265_v35 = vrot.slane %v1222_v43, 4  ;;  %v1366_v13 = vperm.slane %v1360_v15, %v4769_v59 }
 0x1bf   :  { %v1165_v28 = vrot.slane %v7822_v8, 4  ;;  %v1248_v4 = vsel %vm435_vm5, %v1247_v60, %v1198_v54  ;;  %v1223_v5 = vrot.slane %v5614_v3, 4  ;;  %v1435_v27 = vrot.slane %v5620_v12, 4 }
 0x1c0   :  { %v1378_v19 = vsel %vm435_vm5, %v1358_v11, %v1377_v40  ;;  %v1266_v9 = vsel %vm435_vm5, %v1246_v48, %v1265_v35  ;;  %v1254_v51 = vperm.slane %v1248_v4, %v4769_v59  ;;  %v1401_v37 = vrot.slane %v5055_v17, 4  ;;  %v7825_v17 = vld [vmem:[#allocation5_spill] sm:$0xff]  ;;  %v7826_v4 = vld [vmem:[#allocation4_spill] sm:$0xff] }
 0x1c1   :  { %v1166_v7 = vsel %vm435_vm5, %v7824_v20, %v1165_v28  ;;  %v3982_v46 = vpack.i.bf16 %v1378_v19, %v1266_v9  ;;  %v1379_v22 = vrot.slane %v1366_v13, 4  ;;  %v1436_v11 = vsel %vm435_vm5, 0.0, %v1435_v27 }
 0x1c2   :  { %v1174_v55 = vperm.slane %v1166_v7, %v4488_v61  ;;  %v1402_v14 = vsel %vm435_vm5, %v5294_v44, %v1401_v37  ;;  %v1267_v48 = vrot.slane %v1254_v51, 4  ;;  %v1342_v1 = vperm.slane %v7825_v17, %v4769_v59 }
 0x1c3   :  { %3978 = vrot.lane.b32.xlu2 %v3977_v47, %s4275_s10  ;;  %1576 = vrot.lane.b32.xlu0 %v938_v31, %s4280_s15  ;;  %v1389_v43 = vrot.slane %v5108_v41, 4  ;;  %v1361_v42 = vrot.slane %v1310_v16, 4  ;;  %v5658_v44 = vperm.slane %v1402_v14, %v4488_v61  ;;  %v1437_v2 = vrot.slane %v5448_v36, 4  ;;  %v5667_v41 = vld [vmem:[%s7625_s0 + $0x40] sm:$0xff]  ;;  %v7827_v14 = vld [vmem:[#allocation9_spill] sm:$0xff] }
 0x1c4   :  { %v1224_v18 = vsel %vm435_vm5, %v1223_v5, %v1174_v55  ;;  %v1380_v45 = vsel %vm435_vm5, %v1379_v22, %v1342_v1  ;;  %v1249_v34 = vrot.slane %v1198_v54, 4  ;;  %v1813_v30 = vrot.slane %v5667_v41, 1 }
 0x1c5   :  { %3988 = vrot.lane.b32.xlu1 %v7823_v0, %s4278_s13  ;;  %v1230_v33 = vperm.slane %v1224_v18, %v4769_v59  ;;  %v1423_v49 = vrot.slane %v5658_v44, 4  ;;  %v1438_v16 = vsel %vm435_vm5, 0.0, %v1437_v2  ;;  %v1362_v36 = vsel %vm435_vm5, %v1322_v10, %v1361_v42 }
 0x1c6   :  { %v1825_v53 = vrot.slane %v5667_v41, 7  ;;  %v1250_v25 = vsel %vm435_vm5, %v5597_v32, %v1249_v34  ;;  %v1370_v60 = vperm.slane %v1362_v36, %v4769_v59  ;;  %v1225_v47 = vrot.slane %v1174_v55, 4  ;;  %v5696_v32 = vld [vmem:[%s7625_s0 + $0x50] sm:$0xff] }
 0x1c7   :  { %v1268_v29 = vsel %vm435_vm5, %v1267_v48, %v1230_v33  ;;  %v1269_v21 = vrot.slane %v1230_v33, 4  ;;  %v1346_v20 = vperm.slane %v7826_v4, %v4769_v59  ;;  %v1814_v35 = vrot.slane %v5696_v32, 1 }
 0x1c8   :  { %v3992_v52 = vpack.i.bf16 %v1380_v45, %v1268_v29  ;;  %v5691_v54 = vsel %vm41_vm0, %v1813_v30, %v1825_v53  ;;  %v1383_v8 = vrot.slane %v1370_v60, 4  ;;  %v1226_v28 = vsel %vm435_vm5, %v5614_v3, %v1225_v47 }
 0x1c9   :  { %v1270_v24 = vsel %vm435_vm5, %v1254_v51, %v1269_v21  ;;  %v1828_v19 = vrot.slane %v5696_v32, 7  ;;  %v867_v9 = vrot.slane %v5148_v38, 4  ;;  %v1385_v18 = vrot.slane %v1346_v20, 4 }
 0x1ca   :  { %v1384_v3 = vsel %vm435_vm5, %v1383_v8, %v1346_v20  ;;  %v3752_v20 = vld [vmem:[%s7625_s0 + $0x58] sm:$0xff] }
 0x1cb   :  { %3983 = vrot.lane.b32.xlu2 %v3982_v46, %s4276_s11  ;;  %1596 = vrot.lane.b32.xlu0 %v1436_v11, %s4274_s9  ;;  %v5718_v51 = vsel %vm41_vm0, %v1814_v35, %v1828_v19  ;;  %v5723_v46 = vld [vmem:[%s7625_s0 + $0x60] sm:$0xff]  ;;  %v868_v48 = vsel %vm435_vm5, %v867_v9, %v7827_v14  ;;  %v1386_v29 = vsel %vm435_vm5, %v1370_v60, %v1385_v18 }
 0x1cd   :  { %4003 = vrot.lane.b32.xlu1 %v4002_v58, %s4279_s14  ;;  %v1390_v58 = vsel %vm435_vm5, %v5265_v26, %v1389_v43  ;;  %v1381_v26 = vrot.slane %v1342_v1, 4  ;;  %v1815_v1 = vrot.slane %v5723_v46, 1  ;;  %v1831_v43 = vrot.slane %v5723_v46, 7 }
 0x1ce   :  { %v1398_v39 = vperm.slane %v1390_v58, %v4488_v61 }
 0x1cf   :  { %v1382_v10 = vsel %vm435_vm5, %v1366_v13, %v1381_v26  ;;  %v1234_v13 = vperm.slane %v1226_v28, %v4769_v59  ;;  %v5746_v26 = vsel %vm41_vm0, %v1815_v1, %v1831_v43  ;;  %v7828_v28 = vld [vmem:[#allocation23_spill] sm:$0xff] }
 0x1d0   :  { %v1424_v63 = vsel %vm435_vm5, %v1423_v49, %v1398_v39  ;;  %v3997_v31 = vpack.i.bf16 %v1382_v10, %v1270_v24  ;;  %v1425_v33 = vrot.slane %v1398_v39, 4 }
 0x1d1   :  { %v1430_v15 = vperm.slane %v1424_v63, %v4769_v59  ;;  %v5704_v0 = vpop.permute.xlu1 %3883  ;;  %v1273_v38 = vrot.slane %v1234_v13, 4 }
 0x1d2   :  { %v1426_v34 = vsel %vm435_vm5, %v5658_v44, %v1425_v33  ;;  %v5754_v44 = vld [vmem:[%s7625_s0 + $0x70] sm:$0xff]  ;;  %v3885_v35 = vunpack.i.l.bf16 %v5704_v0 }
 0x1d3   :  { %3993 = vrot.lane.b32.xlu2 %v3992_v52, %s4277_s12  ;;  %1636 = vrot.lane.b32.xlu0 %v1438_v16, %s4276_s11  ;;  %v1439_v5 = vrot.slane %v1430_v15, 4  ;;  %v1434_v30 = vperm.slane %v1426_v34, %v4769_v59  ;;  %v1816_v10 = vrot.slane %v5754_v44, 1  ;;  %v1834_v60 = vrot.slane %v5754_v44, 7 }
 0x1d5   :  { %4013 = vrot.lane.b32.xlu1 %v4012_v57, %s4280_s15  ;;  %v1258_v57 = vperm.slane %v1250_v25, %v4769_v59  ;;  %v1440_v11 = vsel %vm435_vm5, 0.0, %v1439_v5  ;;  %v1441_v47 = vrot.slane %v1434_v30, 4  ;;  %v5778_v4 = vsel %vm41_vm0, %v1816_v10, %v1834_v60 }
 0x1d7   :  { %v1271_v40 = vrot.slane %v1258_v57, 4  ;;  %v1274_v36 = vsel %vm435_vm5, %v1258_v57, %v1273_v38  ;;  %v1442_v5 = vsel %vm435_vm5, 0.0, %v1441_v47 }
 0x1d8   :  { %v4017_v39 = vpack.i.bf16 %v1386_v29, %v1274_v36  ;;  %v1846_v36 = vrot.slane %v3752_v20, 5 }
 0x1d9   :  { %v3939_v7 = vpop.permute.xlu2 %3938  ;;  %v1272_v27 = vsel %vm435_vm5, %v1271_v40, %v1234_v13  ;;  %v531_v40 = vrot.slane %v7828_v28, 4  ;;  %v7829_v13 = vld [vmem:[#allocation10_spill] sm:$0xff] }
 0x1da   :  { %v4007_v55 = vpack.i.bf16 %v1384_v3, %v1272_v27  ;;  %v3941_v37 = vunpack.i.h.bf16 %v3939_v7  ;;  %v3940_v22 = vunpack.i.l.bf16 %v3939_v7  ;;  %v3886_v7 = vunpack.i.h.bf16 %v5704_v0 }
 0x1db   :  { %3998 = vrot.lane.b32.xlu2 %v3997_v31, %s4278_s13  ;;  %1656 = vrot.lane.b32.xlu0 %v1430_v15, %s4277_s12  ;;  %v643_v41 = vrot.slane %v7829_v13, 4 }
 0x1dc   :  { %v1727_v52 = vsel %vm1723_vm6, %v868_v48, %v3941_v37  ;;  %v1726_v58 = vsel %vm1723_vm6, %v5523_v56, %v3940_v22  ;;  %v3750_v56 = vld [vmem:[%s7625_s0 + $0x48] sm:$0xff]  ;;  %v7830_v37 = vld [vmem:[#allocation22_spill] sm:$0xff]  ;;  %v7831_v22 = vld [vmem:[#allocation8_spill] sm:$0xff] }
 0x1dd   :  { %1869 = vrot.lane.b32.xlu1 %v5691_v54, %s4268_s23  ;;  %v1826_v25 = vrot.slane %v3750_v56, 7  ;;  %v644_v0 = vsel %vm435_vm5, %v643_v41, %v7830_v37  ;;  %v1845_v18 = vrot.slane %v3750_v56, 5 }
 0x1de   :  { %v1725_v14 = vsel %vm1723_vm6, %v644_v0, %v3886_v7  ;;  %v7833_v0 = vld [vmem:[#allocation11_spill] sm:$0xff] }
 0x1df   :  { %v5772_v8 = vsel %vm41_vm0, %v1825_v53, %v1826_v25 }
 0x1e1   :  { %v3944_v17 = vpop.permute.xlu2 %3943 }
 0x1e2   :  { %v3946_v42 = vunpack.i.h.bf16 %v3944_v17  ;;  %v3945_v2 = vunpack.i.l.bf16 %v3944_v17 }
 0x1e3   :  { %4008 = vrot.lane.b32.xlu2 %v4007_v55, %s4279_s14  ;;  %1676 = vrot.lane.b32.xlu0 %v1440_v11, %s4278_s13  ;;  %v3889_v45 = vpop.permute.xlu1 %3888  ;;  %v1829_v55 = vrot.slane %v3752_v20, 7  ;;  %v532_v11 = vsel %vm435_vm5, %v531_v40, %v7831_v22 }
 0x1e4   :  { %v1732_v49 = vsel %vm1729_vm7, %v1726_v58, %v3945_v2  ;;  %v1733_v16 = vsel %vm1729_vm7, %v1727_v52, %v3946_v42  ;;  %v3891_v3 = vunpack.i.h.bf16 %v3889_v45  ;;  %v3890_v53 = vunpack.i.l.bf16 %v3889_v45 }
 0x1e5   :  { %1875 = vrot.lane.b32.xlu1 %v5718_v51, %s4268_s23  ;;  %v1724_v48 = vsel %vm1723_vm6, %v532_v11, %v3885_v35  ;;  %v5807_v52 = vsel %vm41_vm0, %v1828_v19, %v1829_v55  ;;  %v7832_v35 = vld [vmem:[#allocation27_spill] sm:$0xff]  ;;  %v7834_v11 = vld [vmem:[#allocation26_spill] sm:$0xff] }
 0x1e6   :  { %v1730_v1 = vsel %vm1729_vm7, %v1724_v48, %v3890_v53  ;;  %v1731_v33 = vsel %vm1729_vm7, %v1725_v14, %v3891_v3  ;;  %v1035_v13 = vrot.slane %v7832_v35, 4  ;;  %v1147_v3 = vrot.slane %v7786_v6, 4 }
 0x1e8   :  { %v1036_v22 = vsel %vm435_vm5, %v1035_v13, %v7833_v0  ;;  %v7835_v13 = vld [vmem:[#allocation19_spill] sm:$0xff] }
 0x1ea   :  { %v3949_v21 = vpop.permute.xlu2 %3948 }
 0x1eb   :  { %4018 = vrot.lane.b32.xlu2 %v4017_v39, %s4280_s15  ;;  %1696 = vrot.lane.b32.xlu0 %v1434_v30, %s4279_s14  ;;  %v3894_v63 = vpop.permute.xlu1 %3893  ;;  %v3951_v24 = vunpack.i.h.bf16 %v3949_v21  ;;  %v3950_v57 = vunpack.i.l.bf16 %v3949_v21  ;;  %v3756_v21 = vld [vmem:[%s7625_s0 + $0x78] sm:$0xff] }
 0x1ec   :  { %v3896_v27 = vunpack.i.h.bf16 %v3894_v63  ;;  %v3895_v9 = vunpack.i.l.bf16 %v3894_v63  ;;  %v1848_v40 = vrot.slane %v3756_v21, 5 }
 0x1ed   :  { %1881 = vrot.lane.b32.xlu1 %v5746_v26, %s4268_s23  ;;  %v5764_v31 = vsel %vm1735_vm8, %v1732_v49, %v3950_v57  ;;  %v5767_v15 = vsel %vm1735_vm8, %v1733_v16, %v3951_v24  ;;  %v5816_v49 = vsel %vm41_vm0, %v1826_v25, %v1845_v18  ;;  %v3754_v16 = vld [vmem:[%s7625_s0 + $0x68] sm:$0xff]  ;;  %v5839_v25 = vsel %vm41_vm0, %v1829_v55, %v1846_v36 }
 0x1ee   :  { %v1736_v2 = vsel %vm1735_vm8, %v1730_v1, %v3895_v9  ;;  %v1737_v29 = vsel %vm1735_vm8, %v1731_v33, %v3896_v27  ;;  %v1832_v32 = vrot.slane %v3754_v16, 7  ;;  %v1847_v10 = vrot.slane %v3754_v16, 5 }
 0x1ef   :  { %v1148_v18 = vsel %vm435_vm5, %v1147_v3, %v7834_v11 }
 0x1f0   :  { %v5836_v30 = vsel %vm41_vm0, %v1831_v43, %v1832_v32  ;;  %v1835_v43 = vrot.slane %v3756_v21, 7  ;;  %v5860_v47 = vsel %vm41_vm0, %v1832_v32, %v1847_v10 }
 0x1f2   :  { %v5796_v38 = vpop.permute.xlu2 %3953  ;;  %v1836_v57 = vsel %vm41_vm0, %v1834_v60, %v1835_v43  ;;  %v5873_v44 = vsel %vm41_vm0, %v1835_v43, %v1848_v40  ;;  %v1371_v60 = vrot.slane %v5544_v50, 4 }
 0x1f3   :  { %1871 = vrot.lane.b32.xlu2 %v5772_v8, %s4268_s23  ;;  %1716 = vrot.lane.b32.xlu0 %v1442_v5, %s4280_s15  ;;  %v3899_v17 = vpop.permute.xlu1 %3898 }
 0x1f4   :  { %v3901_v45 = vunpack.i.h.bf16 %v3899_v17  ;;  %v3900_v42 = vunpack.i.l.bf16 %v3899_v17  ;;  %v1372_v37 = vsel %vm435_vm5, %v1371_v60, %v5538_v23 }
 0x1f5   :  { %1887 = vrot.lane.b32.xlu1 %v5778_v4, %s4268_s23 }
 0x1f6   :  { %v5810_v58 = vsel %vm1741_vm9, %v1736_v2, %v3900_v42  ;;  %v5813_v34 = vsel %vm1741_vm9, %v1737_v29, %v3901_v45 }
 0x1fb   :  { %1877 = vrot.lane.b32.xlu2 %v5807_v52, %s4268_s23  ;;  %1873 = vrot.lane.b32.xlu0 %v5816_v49, %s4268_s23  ;;  %v5827_v19 = vpop.permute.xlu2 %3958  ;;  %v5829_v39 = vpop.permute.xlu1 %3903 }
 0x1fc   :  { %v5831_v56 = vpop.permute.xlu0 %1476 }
 0x1fd   :  { %1905 = vrot.lane.b32.xlu1 %v5691_v54, %s4269_s6 }
 0x203   :  { %1883 = vrot.lane.b32.xlu2 %v5836_v30, %s4268_s23  ;;  %1879 = vrot.lane.b32.xlu0 %v5839_v25, %s4268_s23  ;;  %v5852_v63 = vpop.permute.xlu1 %3908 }
 0x204   :  { %v5854_v24 = vpop.permute.xlu0 %1516 }
 0x205   :  { %1911 = vrot.lane.b32.xlu1 %v5718_v51, %s4269_s6  ;;  %v5850_v46 = vpop.permute.xlu2 %3963 }
 0x20b   :  { %1889 = vrot.lane.b32.xlu2 %v1836_v57, %s4268_s23  ;;  %1885 = vrot.lane.b32.xlu0 %v5860_v47, %s4268_s23 }
 0x20c   :  { %v5870_v7 = vpop.permute.xlu0 %1556 }
 0x20d   :  { %1925 = vrot.lane.b32.xlu1 %v1836_v57, %s4269_s6  ;;  %v5866_v28 = vpop.permute.xlu2 %3968 }
 0x20e   :  { %v5868_v20 = vpop.permute.xlu1 %3913  ;;  %v3971_v0 = vunpack.i.h.bf16 %v5866_v28 }
 0x213   :  { %1907 = vrot.lane.b32.xlu2 %v5772_v8, %s4269_s6  ;;  %1891 = vrot.lane.b32.xlu0 %v5873_v44, %s4268_s23 }
 0x214   :  { %v5884_v9 = vpop.permute.xlu0 %1616 }
 0x215   :  { %1917 = vrot.lane.b32.xlu1 %v5746_v26, %s4269_s6  ;;  %v3974_v41 = vpop.permute.xlu2 %3973 }
 0x216   :  { %v3919_v53 = vpop.permute.xlu1 %3918  ;;  %v3976_v5 = vunpack.i.h.bf16 %v3974_v41  ;;  %v3975_v27 = vunpack.i.l.bf16 %v3974_v41 }
 0x217   :  { %v3921_v50 = vunpack.i.h.bf16 %v3919_v53  ;;  %v3920_v55 = vunpack.i.l.bf16 %v3919_v53 }
 0x218   :  { %v1768_v14 = vsel %vm1723_vm6, %v1372_v37, %v3976_v5  ;;  %v1767_v6 = vsel %vm1723_vm6, %v5541_v62, %v3975_v27  ;;  %v3955_v37 = vunpack.i.l.bf16 %v5796_v38 }
 0x219   :  { %v1766_v48 = vsel %vm1723_vm6, %v1148_v18, %v3921_v50  ;;  %v1765_v17 = vsel %vm1723_vm6, %v1036_v22, %v3920_v55  ;;  %v3956_v50 = vunpack.i.h.bf16 %v5796_v38  ;;  %v3961_v55 = vunpack.i.h.bf16 %v5827_v19 }
 0x21a   :  { %v3965_v38 = vunpack.i.l.bf16 %v5850_v46 }
 0x21b   :  { %1913 = vrot.lane.b32.xlu2 %v5807_v52, %s4269_s6  ;;  %1909 = vrot.lane.b32.xlu0 %v5816_v49, %s4269_s6 }
 0x21d   :  { %1947 = vrot.lane.b32.xlu1 %v5718_v51, %s4270_s7  ;;  %v3979_v23 = vpop.permute.xlu2 %3978  ;;  %v1457_v42 = vpop.permute.xlu0 %1456 }
 0x21e   :  { %v3981_v33 = vunpack.i.h.bf16 %v3979_v23  ;;  %v3980_v45 = vunpack.i.l.bf16 %v3979_v23  ;;  %v1728_v41 = vsel %vm1723_vm6, %v7835_v13, %v1457_v42 }
 0x21f   :  { %v3924_v1 = vpop.permute.xlu1 %3923  ;;  %v1734_v53 = vsel %vm1729_vm7, %v1728_v41, %v5831_v56  ;;  %v3966_v56 = vunpack.i.h.bf16 %v5850_v46  ;;  %v3911_v46 = vunpack.i.h.bf16 %v5852_v63 }
 0x220   :  { %v3926_v2 = vunpack.i.h.bf16 %v3924_v1  ;;  %v3925_v62 = vunpack.i.l.bf16 %v3924_v1  ;;  %v5904_v29 = vsel %vm1729_vm7, %v1767_v6, %v3980_v45  ;;  %v5907_v16 = vsel %vm1729_vm7, %v1768_v14, %v3981_v33 }
 0x221   :  { %v3970_v6 = vunpack.i.l.bf16 %v5866_v28  ;;  %v3916_v1 = vunpack.i.h.bf16 %v5868_v20  ;;  %v3910_v45 = vunpack.i.l.bf16 %v5852_v63 }
 0x222   :  { %v1770_v32 = vsel %vm1729_vm7, %v1765_v17, %v3925_v62  ;;  %v1771_v51 = vsel %vm1729_vm7, %v1766_v48, %v3926_v2 }
 0x223   :  { %1959 = vrot.lane.b32.xlu2 %v5778_v4, %s4270_s7  ;;  %1923 = vrot.lane.b32.xlu0 %v5778_v4, %s4269_s6 }
 0x225   :  { %1955 = vrot.lane.b32.xlu1 %v5836_v30, %s4270_s7  ;;  %v5917_v36 = vpop.permute.xlu2 %3983  ;;  %v1497_v43 = vpop.permute.xlu0 %1496 }
 0x226   :  { %v1740_v27 = vsel %vm1735_vm8, %v1734_v53, %v1497_v43 }
 0x227   :  { %v3929_v21 = vpop.permute.xlu1 %3928 }
 0x228   :  { %v3931_v10 = vunpack.i.h.bf16 %v3929_v21  ;;  %v3930_v40 = vunpack.i.l.bf16 %v3929_v21 }
 0x22a   :  { %v5920_v60 = vsel %vm1735_vm8, %v1770_v32, %v3930_v40  ;;  %v5923_v35 = vsel %vm1735_vm8, %v1771_v51, %v3931_v10 }
 0x22b   :  { %1919 = vrot.lane.b32.xlu2 %v5836_v30, %s4269_s6  ;;  %1961 = vrot.lane.b32.xlu0 %v1836_v57, %s4270_s7  ;;  %v1746_v30 = vsel %vm1741_vm9, %v1740_v27, %v5854_v24  ;;  %v3960_v24 = vunpack.i.l.bf16 %v5827_v19  ;;  %v3906_v19 = vunpack.i.h.bf16 %v5829_v39  ;;  %v3985_v27 = vunpack.i.l.bf16 %v5917_v36 }
 0x22d   :  { %1921 = vrot.lane.b32.xlu1 %v5860_v47, %s4269_s6  ;;  %v5932_v4 = vpop.permute.xlu2 %3993  ;;  %v1537_v5 = vpop.permute.xlu0 %1536 }
 0x22e   :  { %v1752_v57 = vsel %vm1747_vm10, %v1746_v30, %v1537_v5  ;;  %v3996_v30 = vunpack.i.h.bf16 %v5932_v4 }
 0x22f   :  { %v5934_v3 = vpop.permute.xlu1 %3933  ;;  %v1758_v14 = vsel %vm1753_vm11, %v1752_v57, %v5870_v7  ;;  %v3905_v7 = vunpack.i.l.bf16 %v5829_v39  ;;  %v1749_v39 = vsel %vm1747_vm10, %v5813_v34, %v3906_v19 }
 0x230   :  { %v1755_v62 = vsel %vm1753_vm11, %v1749_v39, %v3911_v46 }
 0x231   :  { %v1761_v32 = vsel %vm1759_vm13, %v1755_v62, %v3916_v1 }
 0x233   :  { %1949 = vrot.lane.b32.xlu2 %v5807_v52, %s4270_s7  ;;  %1927 = vrot.lane.b32.xlu0 %v5873_v44, %s4269_s6  ;;  %v1745_v52 = vsel %vm1741_vm9, %v5767_v15, %v3956_v50  ;;  %v1744_v15 = vsel %vm1741_vm9, %v5764_v31, %v3955_v37  ;;  %v3915_v31 = vunpack.i.l.bf16 %v5868_v20  ;;  %v1748_v20 = vsel %vm1747_vm10, %v5810_v58, %v3905_v7 }
 0x234   :  { %v1751_v17 = vsel %vm1747_vm10, %v1745_v52, %v3961_v55  ;;  %v1750_v28 = vsel %vm1747_vm10, %v1744_v15, %v3960_v24  ;;  %v1754_v21 = vsel %vm1753_vm11, %v1748_v20, %v3910_v45  ;;  %v3986_v50 = vunpack.i.h.bf16 %v5917_v36 }
 0x235   :  { %1951 = vrot.lane.b32.xlu1 %v5839_v25, %s4270_s7  ;;  %v5954_v22 = vpop.permute.xlu2 %3998  ;;  %v1577_v18 = vpop.permute.xlu0 %1576  ;;  %v1757_v23 = vsel %vm1753_vm11, %v1751_v17, %v3966_v56  ;;  %v1756_v42 = vsel %vm1753_vm11, %v1750_v28, %v3965_v38  ;;  %v1760_v34 = vsel %vm1759_vm13, %v1754_v21, %v3915_v31  ;;  %v1777_v37 = vsel %vm1735_vm8, %v5904_v29, %v3985_v27 }
 0x236   :  { %v1764_v48 = vsel %vm1759_vm13, %v1758_v14, %v1577_v18  ;;  %v1763_v33 = vsel %vm1759_vm13, %v1757_v23, %v3971_v0  ;;  %v1762_v2 = vsel %vm1759_vm13, %v1756_v42, %v3970_v6  ;;  %v4001_v55 = vunpack.i.h.bf16 %v5954_v22 }
 0x237   :  { %v5959_v11 = vpop.permute.xlu1 %3988  ;;  %3757 = vmatpush.msk.msra.mxu0 %vm3576_vm12, %v1764_v48  ;;  %v3995_v56 = vunpack.i.l.bf16 %v5932_v4  ;;  %v1778_v36 = vsel %vm1735_vm8, %v5907_v16, %v3986_v50  ;;  %v4000_v0 = vunpack.i.l.bf16 %v5954_v22  ;;  %v3936_v18 = vunpack.i.h.bf16 %v5934_v3 }
 0x238   :  { %v1783_v29 = vsel %vm1741_vm9, %v1778_v36, %v3996_v30  ;;  %v3991_v48 = vunpack.i.h.bf16 %v5959_v11  ;;  %v3935_v15 = vunpack.i.l.bf16 %v5934_v3  ;;  %v3990_v1 = vunpack.i.l.bf16 %v5959_v11 }
 0x239   :  { %3601 = vmatpush.msra.mxu0 %v1763_v33  ;;  %v1788_v17 = vsel %vm1747_vm10, %v1783_v29, %v4001_v55  ;;  %v1782_v46 = vsel %vm1741_vm9, %v1777_v37, %v3995_v56  ;;  %v1781_v42 = vsel %vm1741_vm9, %v5923_v35, %v3936_v18 }
 0x23a   :  { %v1787_v45 = vsel %vm1747_vm10, %v1782_v46, %v4000_v0  ;;  %v1786_v11 = vsel %vm1747_vm10, %v1781_v42, %v3991_v48  ;;  %v1780_v62 = vsel %vm1741_vm9, %v5920_v60, %v3935_v15 }
 0x23b   :  { %1963 = vrot.lane.b32.xlu2 %v5873_v44, %s4270_s7  ;;  %1953 = vrot.lane.b32.xlu0 %v5746_v26, %s4270_s7  ;;  %v1785_v20 = vsel %vm1747_vm10, %v1780_v62, %v3990_v1 }
 0x23c   :  { %3602 = vmatpush.msra.mxu0 %v1762_v2 }
 0x23d   :  { %v5987_v63 = vpop.permute.xlu2 %4008  ;;  %v1597_v44 = vpop.permute.xlu0 %1596 }
 0x23e   :  { %3603 = vmatpush.msra.mxu0 %v1761_v32  ;;  %v4010_v4 = vunpack.i.l.bf16 %v5987_v63 }
 0x23f   :  { %v5992_v51 = vpop.permute.xlu1 %4003 }
 0x240   :  { %3604 = vmatpush.msra.mxu0 %v1760_v34  ;;  %v4006_v23 = vunpack.i.h.bf16 %v5992_v51  ;;  %v4005_v3 = vunpack.i.l.bf16 %v5992_v51  ;;  %v1792_v31 = vsel %vm1753_vm11, %v1787_v45, %v4010_v4 }
 0x242   :  { %v1790_v34 = vsel %vm1753_vm11, %v1785_v20, %v4005_v3 }
 0x243   :  { %1941 = vrot.lane.b32.xlu2 %v5691_v54, %s4270_s7  ;;  %1915 = vrot.lane.b32.xlu0 %v5839_v25, %s4269_s6 }
 0x245   :  { %v4019_v26 = vpop.permute.xlu2 %4018  ;;  %v1637_v10 = vpop.permute.xlu0 %1636 }
 0x246   :  { %v4021_v52 = vunpack.i.h.bf16 %v4019_v26  ;;  %v4020_v16 = vunpack.i.l.bf16 %v4019_v26 }
 0x247   :  { %v6000_v43 = vpop.permute.xlu1 %4013 }
 0x248   :  { %v4016_v33 = vunpack.i.h.bf16 %v6000_v43  ;;  %v4015_v2 = vunpack.i.l.bf16 %v6000_v43  ;;  %v1797_v39 = vsel %vm1759_vm13, %v1792_v31, %v4020_v16 }
 0x24a   :  { %v1795_v26 = vsel %vm1759_vm13, %v1790_v34, %v4015_v2 }
 0x24b   :  { %1957 = vrot.lane.b32.xlu2 %v5860_v47, %s4270_s7  ;;  %1943 = vrot.lane.b32.xlu0 %v5772_v8, %s4270_s7  ;;  %v1769_v8 = vsel %vm1723_vm6, %v5620_v12, %v1597_v44  ;;  %v4011_v12 = vunpack.i.h.bf16 %v5987_v63  ;;  %v1791_v63 = vsel %vm1753_vm11, %v1786_v11, %v4006_v23 }
 0x24c   :  { %v1796_v35 = vsel %vm1759_vm13, %v1791_v63, %v4016_v33 }
 0x24d   :  { %v1872_v58 = vpop.permute.xlu2 %1871  ;;  %v1657_v13 = vpop.permute.xlu0 %1656  ;;  %v1793_v7 = vsel %vm1753_vm11, %v1788_v17, %v4011_v12 }
 0x24e   :  { %v1798_v28 = vsel %vm1759_vm13, %v1793_v7, %v4021_v52 }
 0x24f   :  { %v6006_v40 = vpop.permute.xlu1 %1869 }
 0x253   :  { %1945 = vrot.lane.b32.xlu0 %v5816_v49, %s4270_s7  ;;  %v1774_v49 = vsel %vm1729_vm7, %v1769_v8, %v5884_v9 }
 0x254   :  { %v1779_v57 = vsel %vm1735_vm8, %v1774_v49, %v1637_v10 }
 0x255   :  { %v6010_v54 = vpop.permute.xlu2 %1877  ;;  %v1677_v41 = vpop.permute.xlu0 %1676  ;;  %v1784_v24 = vsel %vm1741_vm9, %v1779_v57, %v1657_v13 }
 0x256   :  { %v1789_v9 = vsel %vm1747_vm10, %v1784_v24, %v1677_v41 }
 0x257   :  { %v6012_v25 = vpop.permute.xlu1 %1875 }
 0x25d   :  { %v6014_v53 = vpop.permute.xlu2 %1883  ;;  %v1697_v47 = vpop.permute.xlu0 %1696 }
 0x25e   :  { %v1794_v19 = vsel %vm1753_vm11, %v1789_v9, %v1697_v47 }
 0x25f   :  { %v6016_v5 = vpop.permute.xlu1 %1881 }
 0x265   :  { %v6036_v38 = vpop.permute.xlu2 %1889  ;;  %v1717_v6 = vpop.permute.xlu0 %1716 }
 0x266   :  { %v1799_v22 = vsel %vm1759_vm13, %v1794_v19, %v1717_v6 }
 0x267   :  { %v1888_v14 = vpop.permute.xlu1 %1887  ;;  %3759 = vmatpush.msk.msra.mxu1 %vm3576_vm12, %v1799_v22 }
 0x269   :  { %3621 = vmatpush.msra.mxu1 %v1798_v28 }
 0x26b   :  { %3622 = vmatpush.msra.mxu1 %v1797_v39 }
 0x26d   :  { %v1908_v32 = vpop.permute.xlu2 %1907  ;;  %v6069_v21 = vpop.permute.xlu0 %1873  ;;  %3623 = vmatpush.msra.mxu1 %v1796_v35 }
 0x26e   :  { %v6067_v44 = vsel %vm194_vm1, %v1872_v58, %v1908_v32 }
 0x26f   :  { %v1906_v51 = vpop.permute.xlu1 %1905  ;;  %3624 = vmatpush.msra.mxu1 %v1795_v26 }
 0x270   :  { %v1977_v60 = vsel %vm194_vm1, %v6006_v40, %v1906_v51 }
 0x275   :  { %v1914_v43 = vpop.permute.xlu2 %1913  ;;  %v6075_v13 = vpop.permute.xlu0 %1879 }
 0x276   :  { %v1981_v30 = vsel %vm194_vm1, %v6010_v54, %v1914_v43 }
 0x277   :  { %v1912_v10 = vpop.permute.xlu1 %1911 }
 0x278   :  { %v1980_v40 = vsel %vm194_vm1, %v6012_v25, %v1912_v10 }
 0x27d   :  { %v1960_v41 = vpop.permute.xlu2 %1959  ;;  %v1886_v8 = vpop.permute.xlu0 %1885 }
 0x27f   :  { %v1926_v47 = vpop.permute.xlu1 %1925 }
 0x280   :  { %v1987_v19 = vsel %vm194_vm1, %v6036_v38, %v1926_v47 }
 0x285   :  { %v1920_v58 = vpop.permute.xlu2 %1919  ;;  %v1892_v50 = vpop.permute.xlu0 %1891 }
 0x286   :  { %v1984_v42 = vsel %vm194_vm1, %v6014_v53, %v1920_v58 }
 0x287   :  { %v1918_v27 = vpop.permute.xlu1 %1917 }
 0x288   :  { %v1983_v35 = vsel %vm194_vm1, %v6016_v5, %v1918_v27 }
 0x28d   :  { %v1950_v49 = vpop.permute.xlu2 %1949  ;;  %v6084_v37 = vpop.permute.xlu0 %1909 }
 0x28e   :  { %v6082_v57 = vsel %vm207_vm2, %v1981_v30, %v1950_v49 }
 0x28f   :  { %v1948_v55 = vpop.permute.xlu1 %1947  ;;  %v2143_v24 = vrot.slane %v6082_v57, 2  ;;  %v2067_v58 = vrot.slane %v6082_v57, 1 }
 0x290   :  { %v6087_v56 = vsel %vm207_vm2, %v1980_v40, %v1948_v55 }
 0x291   :  { %v2142_v12 = vrot.slane %v6087_v56, 2  ;;  %v2227_v0 = vrot.slane %v6087_v56, 4  ;;  %v2066_v40 = vrot.slane %v6087_v56, 1 }
 0x293   :  { %v6094_v54 = vsel %vm357_vm4, %v2142_v12, %v2143_v24 }
 0x294   :  { %2193 = vrot.lane.b32.xlu2 %v6094_v54, %s4272_s8  ;;  %v2563_v15 = vrot.slane %v6094_v54, 4 }
 0x295   :  { %v1964_v25 = vpop.permute.xlu2 %1963  ;;  %v1924_v36 = vpop.permute.xlu0 %1923 }
 0x296   :  { %v1986_v52 = vsel %vm194_vm1, %v1888_v14, %v1924_v36 }
 0x297   :  { %v6101_v9 = vsel %vm207_vm2, %v1986_v52, %v1960_v41  ;;  %v1956_v6 = vpop.permute.xlu1 %1955 }
 0x298   :  { %v2225_v18 = vrot.slane %v6101_v9, 4  ;;  %v6106_v29 = vsel %vm435_vm5, %v6101_v9, %v2227_v0  ;;  %v2152_v22 = vrot.slane %v6101_v9, 2  ;;  %v6139_v2 = vsel %vm207_vm2, %v1984_v42, %v1956_v6 }
 0x299   :  { %v2076_v53 = vrot.slane %v6101_v9, 1  ;;  %v2072_v20 = vrot.slane %v6139_v2, 1  ;;  %v6193_v0 = vsel %vm280_vm3, %v2066_v40, %v2067_v58 }
 0x29a   :  { %v6110_v4 = vsel %vm435_vm5, %v2225_v18, %v6087_v56 }
 0x29d   :  { %v1962_v48 = vpop.permute.xlu0 %1961  ;;  %v1942_v16 = vpop.permute.xlu2 %1941 }
 0x29e   :  { %v6115_v14 = vsel %vm207_vm2, %v1987_v19, %v1962_v48  ;;  %v6143_v11 = vsel %vm207_vm2, %v1977_v60, %v1942_v16  ;;  %v2148_v60 = vrot.slane %v6139_v2, 2  ;;  %v2363_v19 = vrot.slane %v6193_v0, 4 }
 0x29f   :  { %v2153_v17 = vrot.slane %v6115_v14, 2  ;;  %v1922_v28 = vpop.permute.xlu1 %1921  ;;  %v2077_v62 = vrot.slane %v6115_v14, 1  ;;  %v2215_v51 = vrot.slane %v6143_v11, 4 }
 0x2a0   :  { %v1985_v39 = vsel %vm194_vm1, %v1886_v8, %v1922_v28 }
 0x2a1   :  { %v6121_v46 = vsel %vm357_vm4, %v2152_v22, %v2153_v17  ;;  %v6162_v10 = vsel %vm280_vm3, %v2076_v53, %v2077_v62 }
 0x2a2   :  { %2201 = vrot.lane.b32.xlu1 %v6121_v46, %s4272_s8  ;;  %v2561_v38 = vrot.slane %v6121_v46, 4  ;;  %v6128_v23 = vsel %vm435_vm5, %v6121_v46, %v2563_v15  ;;  %v2361_v30 = vrot.slane %v6162_v10, 4  ;;  %v6212_v15 = vsel %vm435_vm5, %v6162_v10, %v2363_v19 }
 0x2a4   :  { %v6132_v7 = vsel %vm435_vm5, %v2561_v38, %v6094_v54  ;;  %v6197_v18 = vsel %vm435_vm5, %v2361_v30, %v6193_v0 }
 0x2a5   :  { %v1928_v1 = vpop.permute.xlu0 %1927  ;;  %v1958_v3 = vpop.permute.xlu2 %1957 }
 0x2a6   :  { %v1988_v33 = vsel %vm194_vm1, %v1892_v50, %v1928_v1  ;;  %v1997_v32 = vsel %vm207_vm2, %v1985_v39, %v1958_v3 }
 0x2a7   :  { %v2000_v45 = vsel %vm207_vm2, %v1988_v33, %v1964_v25  ;;  %v2074_v26 = vrot.slane %v1997_v32, 1  ;;  %v1952_v36 = vpop.permute.xlu1 %1951 }
 0x2a8   :  { %v2155_v31 = vrot.slane %v2000_v45, 2  ;;  %v2079_v55 = vrot.slane %v2000_v45, 1  ;;  %v2150_v45 = vrot.slane %v1997_v32, 2 }
 0x2a9   :  { %v6189_v25 = vsel %vm280_vm3, %v2072_v20, %v2074_v26 }
 0x2aa   :  { %v6147_v63 = vsel %vm357_vm4, %v2153_v17, %v2155_v31  ;;  %v6203_v48 = vsel %vm280_vm3, %v2077_v62, %v2079_v55  ;;  %v4057_v22 = vpack.i.bf16 %v6189_v25, %v6193_v0 }
 0x2ab   :  { %2203 = vrot.lane.b32.xlu1 %v6147_v63, %s4272_s8  ;;  %v2865_v33 = vrot.slane %v6203_v48, 4  ;;  %v3065_v28 = vrot.slane %v6147_v63, 4 }
 0x2ad   :  { %v1954_v34 = vpop.permute.xlu0 %1953 }
 0x2ae   :  { %v6159_v43 = vsel %vm207_vm2, %v1983_v35, %v1954_v34  ;;  %v2717_v35 = vrot.slane %v6139_v2, 4  ;;  %v2061_v34 = vrot.slane %v6143_v11, 1 }
 0x2af   :  { %v2071_v41 = vrot.slane %v6159_v43, 1  ;;  %v2213_v47 = vrot.slane %v6159_v43, 4  ;;  %v6168_v5 = vsel %vm435_vm5, %v6159_v43, %v2215_v51  ;;  %v2147_v8 = vrot.slane %v6159_v43, 2 }
 0x2b1   :  { %v6174_v27 = vsel %vm435_vm5, %v2213_v47, %v6143_v11  ;;  %v6177_v50 = vsel %vm357_vm4, %v2147_v8, %v2148_v60  ;;  %v6181_v49 = vsel %vm280_vm3, %v2071_v41, %v2072_v20  ;;  %v2151_v20 = vsel %vm357_vm4, %v2148_v60, %v2150_v45 }
 0x2b2   :  { %2197 = vrot.lane.b32.xlu0 %v6177_v50, %s4272_s8  ;;  %v4022_v12 = vpack.i.bf16 %v6162_v10, %v6177_v50  ;;  %v4042_v6 = vpack.i.bf16 %v6181_v49, %v6193_v0  ;;  %v6258_v47 = vperm.slane %v6132_v7, %v4488_v61  ;;  %v2137_v60 = vrot.slane %v6143_v11, 2 }
 0x2b3   :  { %v4037_v30 = vpack.i.bf16 %v2151_v20, %v6094_v54  ;;  %v2349_v7 = vrot.slane %v6181_v49, 4 }
 0x2b4   :  { %4023 = vrot.lane.b32.xlu2 %v4022_v12, %s4268_s23 }
 0x2b5   :  { %v1916_v52 = vpop.permute.xlu0 %1915 }
 0x2b6   :  { %v1982_v16 = vsel %vm194_vm1, %v6075_v13, %v1916_v52  ;;  %v1979_v52 = vsel %vm194_vm1, %v6069_v21, %v6084_v37 }
 0x2b7   :  { %v1994_v17 = vsel %vm207_vm2, %v1982_v16, %v1952_v36 }
 0x2b8   :  { %v2069_v38 = vrot.slane %v1994_v17, 1  ;;  %v2145_v1 = vrot.slane %v1994_v17, 2  ;;  %v2597_v17 = vrot.slane %v6258_v47, 4 }
 0x2ba   :  { %v6217_v42 = vsel %vm280_vm3, %v2067_v58, %v2069_v38  ;;  %v6222_v13 = vsel %vm357_vm4, %v2143_v24, %v2145_v1 }
 0x2bb   :  { %v6226_v3 = vsel %vm435_vm5, %v2865_v33, %v6217_v42  ;;  %v2867_v31 = vrot.slane %v6217_v42, 4  ;;  %v6231_v39 = vsel %vm435_vm5, %v3065_v28, %v6222_v13  ;;  %v3067_v62 = vrot.slane %v6222_v13, 4 }
 0x2bc   :  { %2195 = vrot.lane.b32.xlu2 %v6222_v13, %s4272_s8 }
 0x2bd   :  { %v6238_v32 = vsel %vm435_vm5, %v6203_v48, %v2867_v31  ;;  %v6242_v24 = vsel %vm435_vm5, %v6147_v63, %v3067_v62  ;;  %v1944_v53 = vpop.permute.xlu0 %1943  ;;  %v2853_v31 = vrot.slane %v6189_v25, 4  ;;  %v3053_v62 = vrot.slane %v2151_v20, 4 }
 0x2be   :  { %v6248_v51 = vsel %vm207_vm2, %v6067_v44, %v1944_v53  ;;  %v2549_v44 = vrot.slane %v6177_v50, 4 }
 0x2bf   :  { %v2062_v26 = vrot.slane %v6248_v51, 1  ;;  %v6254_v41 = vsel %vm435_vm5, %v2717_v35, %v6248_v51  ;;  %v2719_v8 = vrot.slane %v6248_v51, 4  ;;  %v2138_v58 = vrot.slane %v6248_v51, 2 }
 0x2c1   :  { %v2063_v40 = vsel %vm280_vm3, %v2061_v34, %v2062_v26  ;;  %v6268_v55 = vsel %vm435_vm5, %v6139_v2, %v2719_v8  ;;  %v2139_v12 = vsel %vm357_vm4, %v2137_v60, %v2138_v58  ;;  %v4067_v60 = vpack.i.bf16 %v6159_v43, %v6087_v56 }
 0x2c2   :  { %v2351_v36 = vrot.slane %v2063_v40, 4  ;;  %v2551_v19 = vrot.slane %v2139_v12, 4  ;;  %2189 = vrot.lane.b32.xlu1 %v2139_v12, %s4272_s8  ;;  %v2550_v54 = vsel %vm435_vm5, %v2549_v44, %v2139_v12  ;;  %v4027_v16 = vpack.i.bf16 %v2139_v12, %v6121_v46 }
 0x2c3   :  { %v6281_v38 = vperm.slane %v2550_v54, %v4488_v61  ;;  %v6284_v33 = vsel %vm435_vm5, %v2349_v7, %v2063_v40  ;;  %v4077_v35 = vpack.i.bf16 %v6217_v42, %v2063_v40  ;;  %v4052_v8 = vpack.i.bf16 %v2063_v40, %v6162_v10 }
 0x2c4   :  { %4038 = vrot.lane.b32.xlu2 %v4037_v30, %s4268_s23  ;;  %v6288_v21 = vsel %vm435_vm5, %v6181_v49, %v2351_v36  ;;  %v6292_v37 = vsel %vm435_vm5, %v6177_v50, %v2551_v19  ;;  %4028 = vrot.lane.b32.xlu0 %v4027_v16, %s4268_s23  ;;  %v4032_v50 = vpack.i.bf16 %v6101_v9, %v6181_v49 }
 0x2c5   :  { %v1946_v1 = vpop.permute.xlu0 %1945  ;;  %v6298_v28 = vsel %vm435_vm5, %v2597_v17, %v6281_v38  ;;  %v4102_v19 = vpack.i.bf16 %v6248_v51, %v6139_v2  ;;  %v4047_v54 = vpack.i.bf16 %v6147_v63, %v6203_v48  ;;  %v2236_v63 = vperm.slane %v6106_v29, %v4488_v61 }
 0x2c6   :  { %v1991_v46 = vsel %vm207_vm2, %v1979_v52, %v1946_v1  ;;  %v2224_v49 = vperm.slane %v6168_v5, %v4488_v61 }
 0x2c7   :  { %v2064_v45 = vrot.slane %v1991_v46, 1  ;;  %v2140_v53 = vrot.slane %v1991_v46, 2  ;;  %v2273_v0 = vrot.slane %v2236_v63, 4  ;;  %v2724_v46 = vperm.slane %v6254_v41, %v4488_v61 }
 0x2c8   :  { %v2572_v41 = vperm.slane %v6128_v23, %v4488_v61 }
 0x2c9   :  { %v2065_v34 = vsel %vm280_vm3, %v2062_v26, %v2064_v45  ;;  %v2141_v44 = vsel %vm357_vm4, %v2138_v58, %v2140_v53  ;;  %v6364_v29 = vsel %vm435_vm5, %v2273_v0, %v2224_v49  ;;  %v4097_v45 = vpack.i.bf16 %v6082_v57, %v6143_v11 }
 0x2ca   :  { %v6310_v30 = vsel %vm435_vm5, %v2853_v31, %v2065_v34  ;;  %v2855_v12 = vrot.slane %v2065_v34, 4  ;;  %v4092_v7 = vpack.i.bf16 %v2065_v34, %v6101_v9  ;;  %v6314_v36 = vsel %vm435_vm5, %v3053_v62, %v2141_v44  ;;  %4033 = vrot.lane.b32.xlu1 %v4032_v50, %s4272_s8  ;;  %7836 = vst [vmem:[#allocation25_spill] sm:$0xff] %v6364_v29 }
 0x2cb   :  { %v3055_v26 = vrot.slane %v2141_v44, 4  ;;  %v4062_v52 = vpack.i.bf16 %v6222_v13, %v2141_v44  ;;  %v4087_v40 = vpack.i.bf16 %v6217_v42, %v2065_v34  ;;  %v4082_v9 = vpack.i.bf16 %v6159_v43, %v6189_v25 }
 0x2cc   :  { %v6319_v10 = vsel %vm435_vm5, %v6189_v25, %v2855_v12  ;;  %4053 = vrot.lane.b32.xlu2 %v4052_v8, %s4272_s8  ;;  %2199 = vrot.lane.b32.xlu0 %v2151_v20, %s4272_s8  ;;  %v4107_v13 = vpack.i.bf16 %v6087_v56, %v6143_v11  ;;  %v4112_v43 = vpack.i.bf16 %v6115_v14, %v6139_v2  ;;  %v2767_v34 = vrot.slane %v2724_v46, 4 }
 0x2cd   :  { %v6324_v58 = vsel %vm435_vm5, %v2151_v20, %v3055_v26  ;;  %v4072_v56 = vpack.i.bf16 %v6203_v48, %v6115_v14  ;;  %v2232_v2 = vperm.slane %v6110_v4, %v4488_v61  ;;  %v2220_v25 = vperm.slane %v6174_v27, %v4488_v61 }
 0x2ce   :  { %v2729_v4 = vrot.slane %v6115_v14, 4  ;;  %v2731_v20 = vrot.slane %v6082_v57, 4  ;;  %v2728_v62 = vperm.slane %v6268_v55, %v4488_v61  ;;  %v2356_v53 = vperm.slane %v6284_v33, %v4488_v61 }
 0x2cf   :  { %v2263_v48 = vrot.slane %v2220_v25, 4  ;;  %v2560_v11 = vperm.slane %v6292_v37, %v4488_v61  ;;  %v2372_v50 = vperm.slane %v6212_v15, %v4488_v61  ;;  %v2609_v23 = vrot.slane %v2572_v41, 4 }
 0x2d0   :  { %v2730_v16 = vsel %vm435_vm5, %v2729_v4, %v6082_v57  ;;  %v2732_v17 = vsel %vm435_vm5, %v6115_v14, %v2731_v20  ;;  %v2368_v14 = vperm.slane %v6197_v18, %v4488_v61  ;;  %v2779_v8 = vrot.slane %v2728_v62, 4 }
 0x2d1   :  { %v6376_v27 = vsel %vm435_vm5, %v2232_v2, %v2263_v48  ;;  %v2736_v1 = vperm.slane %v2730_v16, %v4488_v61  ;;  %v2740_v31 = vperm.slane %v2732_v17, %v4488_v61  ;;  %v2599_v18 = vrot.slane %v6281_v38, 4 }
 0x2d2   :  { %4048 = vrot.lane.b32.xlu1 %v4047_v54, %s4268_s23  ;;  %v2397_v12 = vrot.slane %v2368_v14, 4  ;;  %v2611_v26 = vrot.slane %v2560_v11, 4  ;;  %v2360_v38 = vperm.slane %v6288_v21, %v4488_v61 }
 0x2d3   :  { %v2777_v55 = vrot.slane %v2740_v31, 4  ;;  %v2768_v37 = vsel %vm435_vm5, %v2736_v1, %v2767_v34  ;;  %v2600_v21 = vsel %vm435_vm5, %v6258_v47, %v2599_v18 }
 0x2d4   :  { %4063 = vrot.lane.b32.xlu2 %v4062_v52, %s4268_s23  ;;  %4043 = vrot.lane.b32.xlu0 %v4042_v6, %s4268_s23  ;;  %v2275_v6 = vrot.slane %v2224_v49, 4  ;;  %v6418_v52 = vsel %vm435_vm5, %v2397_v12, %v2356_v53  ;;  %v6442_v54 = vsel %vm435_vm5, %v2572_v41, %v2611_v26  ;;  %v2864_v49 = vperm.slane %v6319_v10, %v4488_v61 }
 0x2d5   :  { %v6414_v15 = vsel %vm435_vm5, %v2777_v55, %v2728_v62 }
 0x2d6   :  { %v6370_v42 = vsel %vm435_vm5, %v2236_v63, %v2275_v6  ;;  %v2915_v16 = vrot.slane %v2864_v49, 4 }
 0x2d7   :  { %7837 = vst [vmem:[#allocation24_spill] sm:$0xff] %v6370_v42 }
 0x2da   :  { %4058 = vrot.lane.b32.xlu1 %v4057_v22, %s4272_s8  ;;  %v2261_v22 = vrot.slane %v2232_v2, 4  ;;  %v3064_v2 = vperm.slane %v6324_v58, %v4488_v61 }
 0x2dc   :  { %4078 = vrot.lane.b32.xlu2 %v4077_v35, %s4268_s23  ;;  %2191 = vrot.lane.b32.xlu0 %v2141_v44, %s4272_s8  ;;  %v6367_v5 = vsel %vm435_vm5, %v2261_v22, %v2220_v25  ;;  %v2765_v35 = vrot.slane %v2736_v1, 4  ;;  %v4117_v44 = vpack.i.bf16 %v6082_v57, %v6248_v51  ;;  %v2409_v57 = vrot.slane %v2372_v50, 4 }
 0x2dd   :  { %v3072_v51 = vperm.slane %v6231_v39, %v4488_v61  ;;  %v3115_v20 = vrot.slane %v3064_v2, 4 }
 0x2de   :  { %v6405_v33 = vsel %vm435_vm5, %v2765_v35, %v2724_v46  ;;  %v2410_v39 = vsel %vm435_vm5, %v2409_v57, %v2360_v38  ;;  %v6501_v57 = vperm.slane %v2768_v37, %v4769_v59  ;;  %v6518_v37 = vperm.slane %v6418_v52, %v4769_v59 }
 0x2df   :  { %7838 = vst [vmem:[#allocation16_spill] sm:$0xff] %v6405_v33  ;;  %v3101_v63 = vrot.slane %v3072_v51, 4 }
 0x2e0   :  { %7848 = vst [vmem:[#allocation2_spill] sm:$0xff] %v6518_v37 }
 0x2e2   :  { %4073 = vrot.lane.b32.xlu1 %v4072_v56, %s4272_s8  ;;  %v2411_v56 = vrot.slane %v2360_v38, 4 }
 0x2e4   :  { %4093 = vrot.lane.b32.xlu2 %v4092_v7, %s4268_s23  ;;  %4068 = vrot.lane.b32.xlu0 %v4067_v60, %s4272_s8  ;;  %v2399_v60 = vrot.slane %v2356_v53, 4  ;;  %v2872_v7 = vperm.slane %v6226_v3, %v4488_v61  ;;  %v2860_v3 = vperm.slane %v6310_v30, %v4488_v61  ;;  %v2876_v30 = vperm.slane %v6238_v32, %v4488_v61 }
 0x2e5   :  { %v6449_v0 = vsel %vm435_vm5, %v2372_v50, %v2411_v56 }
 0x2e6   :  { %v2903_v47 = vrot.slane %v2860_v3, 4  ;;  %7840 = vst [vmem:[#allocation14_spill] sm:$0xff] %v6449_v0  ;;  %v2913_v32 = vrot.slane %v2876_v30, 4  ;;  %v6467_v1 = vsel %vm435_vm5, %v2876_v30, %v2915_v16 }
 0x2e7   :  { %7843 = vst [vmem:[#allocation20_spill] sm:$0xff] %v6467_v1 }
 0x2e8   :  { %v2904_v4 = vsel %vm435_vm5, %v2872_v7, %v2903_v47  ;;  %v6461_v58 = vsel %vm435_vm5, %v2913_v32, %v2864_v49 }
 0x2ea   :  { %4088 = vrot.lane.b32.xlu1 %v4087_v40, %s4272_s8  ;;  %v3060_v40 = vperm.slane %v6314_v36, %v4488_v61  ;;  %v3076_v36 = vperm.slane %v6242_v24, %v4488_v61 }
 0x2ec   :  { %4108 = vrot.lane.b32.xlu2 %v4107_v13, %s4268_s23  ;;  %4083 = vrot.lane.b32.xlu0 %v4082_v9, %s4268_s23  ;;  %v6429_v9 = vsel %vm435_vm5, %v2740_v31, %v2779_v8  ;;  %v2610_v13 = vsel %vm435_vm5, %v2609_v23, %v2560_v11  ;;  %v3103_v25 = vrot.slane %v3060_v40, 4  ;;  %v3113_v6 = vrot.slane %v3076_v36, 4 }
 0x2ed   :  { %7839 = vst [vmem:[#allocation13_spill] sm:$0xff] %v6429_v9  ;;  %v3102_v24 = vsel %vm435_vm5, %v3101_v63, %v3060_v40  ;;  %v6464_v17 = vsel %vm435_vm5, %v3076_v36, %v3115_v20  ;;  %v6483_v8 = vperm.slane %v6367_v5, %v4769_v59  ;;  %v6514_v36 = vperm.slane %v2610_v13, %v4769_v59 }
 0x2ee   :  { %v3104_v22 = vsel %vm435_vm5, %v3072_v51, %v3103_v25  ;;  %v6458_v10 = vsel %vm435_vm5, %v3113_v6, %v3064_v2  ;;  %7842 = vst [vmem:[#allocation21_spill] sm:$0xff] %v6464_v17  ;;  %v2194_v46 = vpop.permute.xlu2 %2193  ;;  %v6532_v63 = vperm.slane %v2410_v39, %v4769_v59  ;;  %v6543_v25 = vperm.slane %v6442_v54, %v4769_v59 }
 0x2ef   :  { %7844 = vst [vmem:[#allocation15_spill] sm:$0xff] %v6483_v8  ;;  %v2675_v26 = vrot.slane %v2194_v46, 4  ;;  %v6547_v32 = vperm.slane %v3104_v22, %v4769_v59 }
 0x2f0   :  { %7847 = vst [vmem:[#allocation3_spill] sm:$0xff] %v6514_v36 }
 0x2f1   :  { %7851 = vst [vmem:[#allocation5_spill] sm:$0xff] %v6532_v63 }
 0x2f2   :  { %4103 = vrot.lane.b32.xlu1 %v4102_v19, %s4272_s8  ;;  %v2400_v19 = vsel %vm435_vm5, %v2368_v14, %v2399_v60 }
 0x2f4   :  { %4098 = vrot.lane.b32.xlu0 %v4097_v45, %s4272_s8 }
 0x2fa   :  { %4118 = vrot.lane.b32.xlu1 %v4117_v44, %s4268_s23  ;;  %v6490_v44 = vperm.slane %v6376_v27, %v4769_v59  ;;  %v6507_v27 = vperm.slane %v2400_v19, %v4769_v59 }
 0x2fc   :  { %4113 = vrot.lane.b32.xlu0 %v4112_v43, %s4268_s23  ;;  %v2901_v43 = vrot.slane %v2872_v7, 4  ;;  %7845 = vst [vmem:[#allocation18_spill] sm:$0xff] %v6490_v44  ;;  %v6497_v7 = vperm.slane %v6298_v28, %v4769_v59 }
 0x2fe   :  { %v6453_v48 = vsel %vm435_vm5, %v2901_v43, %v2860_v3  ;;  %7846 = vst [vmem:[#allocation17_spill] sm:$0xff] %v6497_v7  ;;  %v6504_v3 = vperm.slane %v2600_v21, %v4769_v59  ;;  %v6522_v21 = vperm.slane %v6414_v15, %v4769_v59  ;;  %v6529_v43 = vperm.slane %v3102_v24, %v4769_v59 }
 0x2ff   :  { %7841 = vst [vmem:[#allocation6_spill] sm:$0xff] %v6453_v48 }
 0x300   :  { %7849 = vst [vmem:[#allocation7_spill] sm:$0xff] %v6522_v21 }
 0x301   :  { %7850 = vst [vmem:[#allocation12_spill] sm:$0xff] %v6529_v43 }
 0x30e   :  { %v6469_v45 = vpop.permute.xlu2 %4023 }
 0x314   :  { %v2202_v62 = vpop.permute.xlu1 %2201 }
 0x315   :  { %v2673_v35 = vrot.slane %v2202_v62, 4  ;;  %v2676_v6 = vsel %vm435_vm5, %v2202_v62, %v2675_v26  ;;  %v7673_v62 = vunpack.i.h.bf16 %v6469_v45 }
 0x316   :  { %v2196_v31 = vpop.permute.xlu2 %2195 }
 0x317   :  { %v2674_v11 = vsel %vm435_vm5, %v2673_v35, %v2194_v46  ;;  %v3179_v13 = vrot.slane %v2196_v31, 4 }
 0x318   :  { %v2680_v18 = vperm.slane %v2674_v11, %v4488_v61  ;;  %v6560_v11 = vperm.slane %v2904_v4, %v4769_v59 }
 0x31a   :  { %v2685_v51 = vrot.slane %v2680_v18, 4 }
 0x31d   :  { %v2204_v14 = vpop.permute.xlu1 %2203 }
 0x31e   :  { %v6471_v53 = vpop.permute.xlu2 %4038  ;;  %v3177_v49 = vrot.slane %v2204_v14, 4  ;;  %v3180_v24 = vsel %vm435_vm5, %v2204_v14, %v3179_v13 }
 0x31f   :  { %v6575_v4 = vperm.slane %v3180_v24, %v4488_v61  ;;  %v4040_v26 = vunpack.i.l.bf16 %v6471_v53 }
 0x320   :  { %v3178_v14 = vsel %vm435_vm5, %v3177_v49, %v2196_v31 }
 0x321   :  { %v2587_v22 = vrot.slane %v4040_v26, 4 }
 0x324   :  { %v6473_v41 = vpop.permute.xlu0 %2197 }
 0x325   :  { %v2661_v50 = vrot.slane %v6473_v41, 4 }
 0x326   :  { %v6475_v34 = vpop.permute.xlu2 %4053 }
 0x327   :  { %v4056_v49 = vunpack.i.h.bf16 %v6475_v34 }
 0x32e   :  { %v6510_v30 = vpop.permute.xlu2 %4063 }
 0x32f   :  { %v4065_v20 = vunpack.i.l.bf16 %v6510_v30  ;;  %v7676_v38 = vunpack.i.h.bf16 %v6510_v30 }
 0x334   :  { %v6479_v55 = vpop.permute.xlu1 %2189 }
 0x335   :  { %v2662_v60 = vsel %vm435_vm5, %v2661_v50, %v6479_v55  ;;  %v4041_v50 = vunpack.i.h.bf16 %v6471_v53  ;;  %v2449_v53 = vrot.slane %v7673_v62, 4 }
 0x336   :  { %v2668_v12 = vperm.slane %v2662_v60, %v4488_v61  ;;  %v6493_v23 = vpop.permute.xlu0 %4028  ;;  %v4025_v60 = vunpack.i.l.bf16 %v6469_v45  ;;  %v6593_v40 = vpop.permute.xlu2 %4078 }
 0x337   :  { %v4030_v13 = vunpack.i.l.bf16 %v6493_v23  ;;  %v4031_v24 = vunpack.i.h.bf16 %v6493_v23  ;;  %7855 = vst [vmem:[#allocation10_spill] sm:$0xff] %v6593_v40 }
 0x338   :  { %v2687_v5 = vrot.slane %v2668_v12, 4  ;;  %v2686_v19 = vsel %vm435_vm5, %v2685_v51, %v2668_v12  ;;  %v6572_v12 = vperm.slane %v2676_v6, %v4488_v61  ;;  %v3077_v6 = vrot.slane %v4041_v50, 4 }
 0x339   :  { %v6555_v46 = vperm.slane %v2686_v19, %v4769_v59  ;;  %v2663_v19 = vrot.slane %v6479_v55, 4  ;;  %v2585_v55 = vrot.slane %v4030_v13, 4  ;;  %v2575_v52 = vrot.slane %v4031_v24, 4 }
 0x33a   :  { %v2688_v28 = vsel %vm435_vm5, %v2680_v18, %v2687_v5  ;;  %v6568_v18 = vperm.slane %v6458_v10, %v4769_v59  ;;  %v3079_v5 = vrot.slane %v4065_v20, 4  ;;  %v6585_v10 = vperm.slane %v3178_v14, %v4488_v61 }
 0x33b   :  { %v6526_v56 = vperm.slane %v2688_v28, %v4769_v59  ;;  %7852 = vst [vmem:[#allocation4_spill] sm:$0xff] %v6555_v46  ;;  %v2709_v51 = vrot.slane %v6555_v46, 4  ;;  %v6582_v28 = vperm.slane %v6461_v58, %v4769_v59  ;;  %v2573_v14 = vrot.slane %v4025_v60, 4 }
 0x33c   :  { %v6534_v47 = vpop.permute.xlu1 %4033  ;;  %7853 = vst [vmem:[#allocation9_spill] sm:$0xff] %v6568_v18  ;;  %v2697_v15 = vrot.slane %v6572_v12, 4  ;;  %v3078_v23 = vsel %vm435_vm5, %v3077_v6, %v4065_v20  ;;  %v3080_v39 = vsel %vm435_vm5, %v4041_v50, %v3079_v5  ;;  %v2664_v2 = vsel %vm435_vm5, %v6473_v41, %v2663_v19 }
 0x33d   :  { %3254 = vrot.lane.b32.xlu0 %v6526_v56, %s4275_s10  ;;  %7854 = vst [vmem:[#allocation23_spill] sm:$0xff] %v6582_v28  ;;  %v2710_v58 = vsel %vm435_vm5, 0.0, %v2709_v51  ;;  %v2711_v31 = vrot.slane %v6526_v56, 4  ;;  %v6615_v20 = vperm.slane %v3078_v23, %v4488_v61  ;;  %v6618_v50 = vperm.slane %v3080_v39, %v4488_v61 }
 0x33e   :  { %v6552_v16 = vpop.permute.xlu0 %2199  ;;  %3234 = vrot.lane.b32.xlu2 %v2710_v58, %s4274_s9  ;;  %v2574_v58 = vsel %vm435_vm5, %v2573_v14, %v4031_v24  ;;  %v2588_v5 = vsel %vm435_vm5, %v4030_v13, %v2587_v22  ;;  %v4080_v6 = vunpack.i.l.bf16 %v6593_v40  ;;  %v6622_v51 = vrot.slane %v4056_v49, 4 }
 0x33f   :  { %v7857_v41 = vunpack.i.l.bf16 %v6475_v34  ;;  %v6627_v24 = vperm.slane %v2664_v2, %v4488_v61  ;;  %v2580_v14 = vperm.slane %v2574_v58, %v4488_v61  ;;  %v2586_v23 = vsel %vm435_vm5, %v2585_v55, %v4040_v26 }
 0x340   :  { %v3091_v13 = vrot.slane %v7676_v38, 4  ;;  %v2576_v46 = vsel %vm435_vm5, %v4025_v60, %v2575_v52  ;;  %v2712_v2 = vsel %vm435_vm5, 0.0, %v2711_v31  ;;  %v6647_v39 = vrot.slane %v4080_v6, 4  ;;  %v6652_v60 = vpop.permute.xlu2 %4093 }
 0x341   :  { %v2473_v19 = vrot.slane %v7857_v41, 4  ;;  %v6639_v41 = vperm.slane %v2588_v5, %v4488_v61  ;;  %v2592_v52 = vperm.slane %v2586_v23, %v4488_v61  ;;  %7859 = vst [vmem:[#allocation27_spill] sm:$0xff] %v6652_v60  ;;  %v2584_v26 = vperm.slane %v2576_v46, %v4488_v61 }
 0x342   :  { %v2623_v58 = vrot.slane %v2580_v14, 4  ;;  %v7860_v55 = vunpack.i.l.bf16 %v6534_v47  ;;  %v3165_v1 = vrot.slane %v6552_v16, 4 }
 0x343   :  { %v2635_v17 = vrot.slane %v2584_v26, 4 }
 0x344   :  { %v6596_v54 = vpop.permute.xlu1 %4048  ;;  %v2461_v42 = vrot.slane %v7860_v55, 4  ;;  %v2624_v33 = vsel %vm435_vm5, %v2592_v52, %v2623_v58 }
 0x345   :  { %7856 = vst [vmem:[#allocation22_spill] sm:$0xff] %v6596_v54  ;;  %v4051_v48 = vunpack.i.h.bf16 %v6596_v54 }
 0x346   :  { %v6605_v35 = vpop.permute.xlu0 %4043  ;;  %3274 = vrot.lane.b32.xlu2 %v2712_v2, %s4276_s11 }
 0x347   :  { %v7675_v62 = vunpack.i.h.bf16 %v6605_v35  ;;  %v4045_v56 = vunpack.i.l.bf16 %v6605_v35 }
 0x349   :  { %v2437_v22 = vrot.slane %v7675_v62, 4  ;;  %v2450_v5 = vsel %vm435_vm5, %v2449_v53, %v4045_v56  ;;  %v2633_v62 = vrot.slane %v6639_v41, 4  ;;  %v2698_v53 = vsel %vm435_vm5, %v2697_v15, %v6627_v24 }
 0x34a   :  { %v6662_v2 = vperm.slane %v2450_v5, %v4488_v61  ;;  %v2621_v5 = vrot.slane %v2592_v52, 4  ;;  %v2462_v15 = vsel %vm435_vm5, %v2461_v42, %v4056_v49  ;;  %v2451_v9 = vrot.slane %v4045_v56, 4 }
 0x34b   :  { %v2438_v31 = vsel %vm435_vm5, %v2437_v22, %v4080_v6  ;;  %v7681_v6 = vunpack.i.l.bf16 %v6596_v54  ;;  %v2634_v21 = vsel %vm435_vm5, %v2633_v62, %v2584_v26  ;;  %v6696_v58 = vperm.slane %v2462_v15, %v4488_v61 }
 0x34c   :  { %v6642_v29 = vpop.permute.xlu1 %4058  ;;  %v6671_v46 = vperm.slane %v2438_v31, %v4488_v61  ;;  %v2485_v22 = vrot.slane %v6662_v2, 4  ;;  %v2704_v31 = vperm.slane %v2698_v53, %v4769_v59  ;;  %v2622_v49 = vsel %vm435_vm5, %v2621_v5, %v2580_v14 }
 0x34d   :  { %7858 = vst [vmem:[#allocation8_spill] sm:$0xff] %v6642_v29  ;;  %v4060_v55 = vunpack.i.l.bf16 %v6642_v29  ;;  %v3089_v62 = vrot.slane %v4051_v48, 4  ;;  %v2953_v52 = vrot.slane %v7681_v6, 4  ;;  %v7866_v5 = vunpack.i.l.bf16 %v6534_v47 }
 0x34e   :  { %v6656_v38 = vpop.permute.xlu0 %2191  ;;  %v2486_v28 = vsel %vm435_vm5, %v2485_v22, %v6671_v46  ;;  %3294 = vrot.lane.b32.xlu2 %v2704_v31, %s4277_s12  ;;  %v6713_v22 = vperm.slane %v2624_v33, %v4769_v59  ;;  %v7867_v33 = vunpack.i.h.bf16 %v6469_v45 }
 0x34f   :  { %v3166_v23 = vsel %vm435_vm5, %v3165_v1, %v6656_v38  ;;  %v2474_v44 = vsel %vm435_vm5, %v2473_v19, %v4060_v55  ;;  %v2475_v0 = vrot.slane %v4060_v55, 4  ;;  %v7861_v19 = vunpack.i.l.bf16 %v6475_v34 }
 0x350   :  { %v6688_v1 = vperm.slane %v2474_v44, %v4488_v61  ;;  %v6691_v42 = vperm.slane %v3166_v23, %v4488_v61  ;;  %v3092_v44 = vsel %vm435_vm5, %v4051_v48, %v3091_v13  ;;  %v6716_v34 = vperm.slane %v2486_v28, %v4769_v59 }
 0x351   :  { %v2476_v56 = vsel %vm435_vm5, %v7861_v19, %v2475_v0  ;;  %v7864_v0 = vrot.slane %v6585_v10, 4  ;;  %v2713_v13 = vrot.slane %v2704_v31, 4  ;;  %v6723_v55 = vperm.slane %v2634_v21, %v4769_v59 }
 0x352   :  { %v6707_v23 = vperm.slane %v2476_v56, %v4488_v61  ;;  %v2509_v14 = vrot.slane %v6688_v1, 4  ;;  %7863 = vst [vmem:[#allocation26_spill] sm:$0xff] %v6716_v34  ;;  %v2464_v15 = vsel %vm435_vm5, %v7866_v5, %v6622_v51  ;;  %v2452_v19 = vsel %vm435_vm5, %v7867_v33, %v2451_v9 }
 0x353   :  { %v3190_v48 = vsel %vm435_vm5, %v7864_v0, %v6691_v42  ;;  %7865 = vst [vmem:[#allocation19_spill] sm:$0xff] %v6723_v55  ;;  %v6735_v56 = vperm.slane %v2622_v49, %v4769_v59  ;;  %v2636_v31 = vsel %vm435_vm5, %v6639_v41, %v2635_v17  ;;  %v7869_v21 = vunpack.i.h.bf16 %v6510_v30 }
 0x354   :  { %v6701_v26 = vpop.permute.xlu1 %4073  ;;  %v2510_v28 = vsel %vm435_vm5, %v2509_v14, %v6696_v58  ;;  %v3100_v6 = vperm.slane %v3092_v44, %v4488_v61  ;;  %v7870_v51 = vunpack.i.h.bf16 %v6593_v40  ;;  %v2521_v9 = vrot.slane %v6707_v23, 4 }
 0x355   :  { %7862 = vst [vmem:[#allocation11_spill] sm:$0xff] %v6701_v26  ;;  %v3090_v0 = vsel %vm435_vm5, %v3089_v62, %v7869_v21  ;;  %v6748_v14 = vperm.slane %v3190_v48, %v4769_v59  ;;  %v6751_v49 = vperm.slane %v2510_v28, %v4769_v59  ;;  %v6754_v17 = vperm.slane %v2464_v15, %v4488_v61 }
 0x356   :  { %v6710_v53 = vpop.permute.xlu0 %4068  ;;  %7868 = vst [vmem:[#allocation28_spill] sm:$0xff] %v6735_v56  ;;  %v2954_v45 = vsel %vm435_vm5, %v2953_v52, %v7870_v51  ;;  %v6757_v30 = vperm.slane %v2452_v19, %v4488_v61  ;;  %v2714_v41 = vsel %vm435_vm5, 0.0, %v2713_v13  ;;  %v2535_v62 = vrot.slane %v6716_v34, 4  ;;  %v6776_v13 = vpop.permute.xlu2 %4108 }
 0x357   :  { %7871 = vst [vmem:[#allocation29_spill] sm:$0xff] %v6748_v14  ;;  %v6762_v44 = vperm.slane %v2636_v31, %v4769_v59  ;;  %v7873_v52 = vunpack.i.h.bf16 %v6534_v47  ;;  %v6769_v5 = vperm.slane %v3090_v0, %v4488_v61  ;;  %3314 = vrot.lane.b32.xlu2 %v2714_v41, %s4278_s13  ;;  %v3213_v15 = vrot.slane %v6748_v14, 4 }
 0x358   :  { %7872 = vst [vmem:[#allocation30_spill] sm:$0xff] %v6751_v49  ;;  %v3137_v33 = vrot.slane %v3100_v6, 4  ;;  %v6774_v19 = vperm.slane %v2954_v45, %v4488_v61  ;;  %v2536_v28 = vsel %vm435_vm5, %v6751_v49, %v2535_v62  ;;  %v7875_v31 = vrot.slane %v6497_v7, 4 }
 0x359   :  { %v6766_v48 = vrot.slane %v7873_v52, 4  ;;  %7874 = vst [vmem:[#allocation31_spill] sm:$0xff] %v6776_v13  ;;  %v7876_v0 = vunpack.i.h.bf16 %v6605_v35  ;;  %v2522_v41 = vsel %vm435_vm5, %v2521_v9, %v6754_v17  ;;  %v3214_v45 = vsel %vm435_vm5, 0.0, %v3213_v15 }
 0x35a   :  { %v2648_v21 = vsel %vm435_vm5, %v6735_v56, %v7875_v31  ;;  %v2511_v14 = vrot.slane %v6696_v58, 4  ;;  %v7877_v7 = vunpack.i.l.bf16 %v6652_v60  ;;  %v2497_v31 = vrot.slane %v6757_v30, 4  ;;  %3374 = vrot.lane.b32.xlu0 %v3214_v45, %s4274_s9 }
 0x35b   :  { %v2440_v51 = vsel %vm435_vm5, %v7876_v0, %v6647_v39  ;;  %v4122_v52 = vpack.i.bf16 %v2536_v28, %v2648_v21  ;;  %v7879_v39 = vrot.slane %v6615_v20, 4  ;;  %v3138_v21 = vsel %vm435_vm5, %v3137_v33, %v6618_v50 }
 0x35c   :  { %v2249_v54 = vrot.slane %v7877_v7, 4  ;;  %v6797_v35 = vpop.permute.xlu1 %4088  ;;  %v6812_v0 = vperm.slane %v2440_v51, %v4488_v61  ;;  %v2487_v45 = vrot.slane %v6671_v46, 4  ;;  %v7882_v58 = vrot.slane %v6618_v50, 4 }
 0x35d   :  { %7878 = vst [vmem:[#allocation32_spill] sm:$0xff] %v6797_v35  ;;  %v3128_v9 = vsel %vm435_vm5, %v6769_v5, %v7879_v39  ;;  %4123 = vrot.lane.b32.xlu1 %v4122_v52, %s4274_s9  ;;  %v6816_v39 = vperm.slane %v2522_v41, %v4769_v59  ;;  %v3167_v51 = vrot.slane %v6656_v38, 4  ;;  %v6834_v62 = vperm.slane %v3138_v21, %v4769_v59 }
 0x35e   :  { %v6807_v7 = vpop.permute.xlu0 %4083  ;;  %v6822_v28 = vsel %vm435_vm5, %v3100_v6, %v7882_v58  ;;  %v6827_v33 = vperm.slane %v3128_v9, %v4769_v59  ;;  %v2498_v46 = vsel %vm435_vm5, %v2497_v31, %v6812_v0  ;;  %v7884_v50 = vunpack.i.h.bf16 %v6776_v13 }
 0x35f   :  { %7880 = vst [vmem:[#allocation33_spill] sm:$0xff] %v6807_v7  ;;  %v7885_v52 = vunpack.i.h.bf16 %v6701_v26  ;;  %v2488_v15 = vsel %vm435_vm5, %v6662_v2, %v2487_v45  ;;  %v2512_v38 = vsel %vm435_vm5, %v6688_v1, %v2511_v14  ;;  %v2541_v21 = vrot.slane %v6816_v39, 4 }
 0x360   :  { %7881 = vst [vmem:[#allocation34_spill] sm:$0xff] %v6816_v39  ;;  %v2250_v6 = vsel %vm435_vm5, %v2249_v54, %v7884_v50  ;;  %v6849_v41 = vperm.slane %v2498_v46, %v4769_v59  ;;  %v4070_v54 = vunpack.i.l.bf16 %v6710_v53  ;;  %v7886_v50 = vunpack.i.h.bf16 %v6797_v35 }
 0x361   :  { %7883 = vst [vmem:[#allocation35_spill] sm:$0xff] %v6822_v28  ;;  %v2977_v9 = vrot.slane %v7885_v52, 4  ;;  %v2653_v52 = vrot.slane %v6723_v55, 4  ;;  %v3168_v2 = vsel %vm435_vm5, %v6552_v16, %v3167_v51  ;;  %v3191_v1 = vrot.slane %v6691_v42, 4 }
 0x362   :  { %v7887_v45 = vunpack.i.l.bf16 %v6807_v7  ;;  %v2499_v46 = vrot.slane %v6812_v0, 4  ;;  %v6864_v56 = vperm.slane %v2250_v6, %v4488_v61  ;;  %v7888_v34 = vunpack.i.h.bf16 %v6642_v29 }
 0x363   :  { %v2978_v58 = vsel %vm435_vm5, %v2977_v9, %v7886_v50  ;;  %v6869_v50 = vperm.slane %v2512_v38, %v4769_v59  ;;  %v7889_v51 = vunpack.i.h.bf16 %v6807_v7  ;;  %v2542_v0 = vsel %vm435_vm5, %v2541_v21, %v6849_v41 }
 0x364   :  { %v2941_v31 = vrot.slane %v7887_v45, 4  ;;  %v2965_v9 = vrot.slane %v7888_v34, 4  ;;  %v6873_v42 = vperm.slane %v2978_v58, %v4488_v61  ;;  %v6880_v6 = vperm.slane %v2488_v15, %v4769_v59  ;;  %v6896_v7 = vpop.permute.xlu1 %4103 }
 0x365   :  { %v2237_v14 = vrot.slane %v7889_v51, 4  ;;  %v6883_v45 = vperm.slane %v3168_v2, %v4488_v61  ;;  %v2338_v34 = vsel %vm435_vm5, %v6766_v48, %v4070_v54  ;;  %v2654_v38 = vsel %vm435_vm5, %v2653_v52, %v6514_v36 }
 0x366   :  { %v7890_v58 = vunpack.i.h.bf16 %v6710_v53  ;;  %v7891_v51 = vunpack.i.h.bf16 %v6652_v60  ;;  %v4142_v21 = vpack.i.bf16 %v2542_v0, %v2654_v38  ;;  %v3192_v15 = vsel %vm435_vm5, %v6585_v10, %v3191_v1  ;;  %v6898_v2 = vpop.permute.xlu0 %4098 }
 0x367   :  { %v2339_v40 = vrot.slane %v4070_v54, 4  ;;  %v6901_v48 = vperm.slane %v3192_v15, %v4769_v59  ;;  %v2537_v52 = vrot.slane %v6869_v50, 4  ;;  %v6906_v60 = vperm.slane %v2338_v34, %v4488_v61 }
 0x368   :  { %v2325_v16 = vrot.slane %v7890_v58, 4  ;;  %v2942_v29 = vsel %vm435_vm5, %v2941_v31, %v7891_v51  ;;  %v2649_v58 = vrot.slane %v6713_v22, 4  ;;  %v7892_v31 = vunpack.i.l.bf16 %v6797_v35  ;;  %4143 = vrot.lane.b32.xlu2 %v4142_v21, %s4277_s12 }
 0x369   :  { %v3013_v10 = vrot.slane %v6873_v42, 4  ;;  %v7893_v1 = vunpack.i.l.bf16 %v6776_v13  ;;  %v6917_v38 = vperm.slane %v2942_v29, %v4488_v61  ;;  %3394 = vrot.lane.b32.xlu0 %v6901_v48, %s4275_s10  ;;  %v2538_v34 = vsel %vm435_vm5, %v2537_v52, %v6880_v6 }
 0x36a   :  { %v2966_v0 = vsel %vm435_vm5, %v2965_v9, %v7892_v31  ;;  %v2650_v9 = vsel %vm435_vm5, %v2649_v58, %v6504_v3  ;;  %v4100_v51 = vunpack.i.l.bf16 %v6898_v2  ;;  %v2285_v15 = vrot.slane %v6864_v56, 4 }
 0x36b   :  { %v2238_v54 = vsel %vm435_vm5, %v2237_v14, %v7893_v1  ;;  %v4075_v14 = vunpack.i.l.bf16 %v6701_v26  ;;  %v4127_v31 = vpack.i.bf16 %v2538_v34, %v2650_v9  ;;  %v7698_v21 = vunpack.i.l.bf16 %v6896_v7 }
 0x36c   :  { %v7894_v29 = vrot.slane %v6754_v17, 4  ;;  %v6934_v13 = vperm.slane %v2966_v0, %v4488_v61  ;;  %v2326_v52 = vsel %vm435_vm5, %v2325_v16, %v4100_v51  ;;  %v7895_v58 = vrot.slane %v6575_v4, 4 }
 0x36d   :  { %v7896_v26 = vunpack.i.h.bf16 %v6534_v47  ;;  %v2373_v9 = vrot.slane %v6906_v60, 4  ;;  %v6946_v17 = vperm.slane %v2238_v54, %v4488_v61  ;;  %4128 = vrot.lane.b32.xlu1 %v4127_v31, %s4275_s10  ;;  %v7897_v0 = vrot.slane %v6774_v19, 4 }
 0x36e   :  { %v2524_v1 = vsel %vm435_vm5, %v6707_v23, %v7894_v29  ;;  %v3202_v35 = vsel %vm435_vm5, %v7895_v58, %v6883_v45  ;;  %v2332_v23 = vperm.slane %v2326_v52, %v4488_v61  ;;  %v3014_v16 = vsel %vm435_vm5, %v3013_v10, %v6934_v13  ;;  %v4114_v54 = vpop.permute.xlu0 %4113 }
 0x36f   :  { %v2340_v34 = vsel %vm435_vm5, %v7896_v26, %v2339_v40  ;;  %v2990_v29 = vsel %vm435_vm5, %v7897_v0, %v6917_v38  ;;  %v4106_v47 = vunpack.i.h.bf16 %v6896_v7  ;;  %v4101_v40 = vunpack.i.h.bf16 %v6898_v2 }
 0x370   :  { %v6960_v26 = vsel %vm435_vm5, %v6757_v30, %v2499_v46  ;;  %v2829_v31 = vrot.slane %v7698_v21, 4  ;;  %v6966_v10 = vperm.slane %v3202_v35, %v4769_v59  ;;  %v6969_v52 = vperm.slane %v2524_v1, %v4769_v59  ;;  %v4119_v1 = vpop.permute.xlu1 %4118 }
 0x371   :  { %v2841_v58 = vrot.slane %v4075_v14, 4  ;;  %v6972_v0 = vperm.slane %v2340_v34, %v4488_v61  ;;  %v2374_v2 = vsel %vm435_vm5, %v2373_v9, %v2332_v23  ;;  %v6977_v46 = vperm.slane %v3014_v16, %v4769_v59 }
 0x372   :  { %7898 = vst [vmem:[#allocation36_spill] sm:$0xff] %v6966_v10  ;;  %v2286_v21 = vsel %vm435_vm5, %v2285_v15, %v6946_v17  ;;  %v6982_v35 = vperm.slane %v2990_v29, %v4769_v59  ;;  %3434 = vrot.lane.b32.xlu2 %v6966_v10, %s4277_s12  ;;  %v6987_v49 = vrot.slane %v4106_v47, 4  ;;  %v2843_v9 = vrot.slane %v4101_v40, 4 }
 0x373   :  { %v2539_v30 = vrot.slane %v6880_v6, 4  ;;  %v2830_v16 = vsel %vm435_vm5, %v2829_v31, %v4106_v47  ;;  %v2327_v55 = vrot.slane %v4100_v51, 4  ;;  %v6992_v15 = vperm.slane %v2374_v2, %v4769_v59 }
 0x374   :  { %v7900_v29 = vrot.slane %v6504_v3, 4  ;;  %v4121_v34 = vunpack.i.h.bf16 %v4119_v1  ;;  %v4120_v28 = vunpack.i.l.bf16 %v4119_v1  ;;  %v4116_v39 = vunpack.i.h.bf16 %v4114_v54 }
 0x375   :  { %7899 = vst [vmem:[#allocation37_spill] sm:$0xff] %v6992_v15  ;;  %v2540_v36 = vsel %vm435_vm5, %v6869_v50, %v2539_v30  ;;  %v4115_v63 = vunpack.i.l.bf16 %v4114_v54  ;;  %v7001_v6 = vperm.slane %v2286_v21, %v4769_v59  ;;  %v3039_v51 = vrot.slane %v6982_v35, 4 }
 0x376   :  { %v2652_v10 = vsel %vm435_vm5, %v6713_v22, %v7900_v29  ;;  %v7005_v47 = vperm.slane %v2830_v16, %v4488_v61  ;;  %v2375_v3 = vrot.slane %v2332_v23, 4  ;;  %v2755_v31 = vrot.slane %v4121_v34, 4 }
 0x377   :  { %v4132_v18 = vpack.i.bf16 %v2540_v36, %v2652_v10  ;;  %7901 = vst [vmem:[#allocation38_spill] sm:$0xff] %v7001_v6  ;;  %v2753_v2 = vrot.slane %v4116_v39, 4  ;;  %v2741_v22 = vrot.slane %v4115_v63, 4  ;;  %v7902_v50 = vrot.slane %v6483_v8, 4 }
 0x378   :  { %v3040_v21 = vsel %vm435_vm5, %v6977_v46, %v3039_v51  ;;  %v2423_v54 = vrot.slane %v6992_v15, 4  ;;  %v2842_v10 = vsel %vm435_vm5, %v2841_v58, %v4101_v40  ;;  %v2844_v30 = vsel %vm435_vm5, %v4075_v14, %v2843_v9 }
 0x379   :  { %4133 = vrot.lane.b32.xlu1 %v4132_v18, %s4276_s11  ;;  %v2312_v36 = vsel %vm435_vm5, %v7001_v6, %v7902_v50  ;;  %v2756_v23 = vsel %vm435_vm5, %v4116_v39, %v2755_v31  ;;  %v7903_v18 = vunpack.i.h.bf16 %v6710_v53  ;;  %v2743_v29 = vrot.slane %v4120_v28, 4 }
 0x37a   :  { %v4157_v1 = vpack.i.bf16 %v2312_v36, %v3040_v21  ;;  %v2742_v8 = vsel %vm435_vm5, %v2741_v22, %v4120_v28  ;;  %v2754_v50 = vsel %vm435_vm5, %v2753_v2, %v4121_v34  ;;  %v7027_v6 = vperm.slane %v2756_v23, %v4488_v61 }
 0x37b   :  { %v2328_v16 = vsel %vm435_vm5, %v7903_v18, %v2327_v55  ;;  %v7024_v51 = vperm.slane %v2742_v8, %v4488_v61  ;;  %v3215_v39 = vrot.slane %v6901_v48, 4  ;;  %v7904_v53 = vrot.slane %v6769_v5, 4 }
 0x37c   :  { %4158 = vrot.lane.b32.xlu2 %v4157_v1, %s4274_s9  ;;  %v2879_v14 = vrot.slane %v7005_v47, 4  ;;  %v2376_v28 = vsel %vm435_vm5, %v6906_v60, %v2375_v3  ;;  %v2424_v8 = vsel %vm435_vm5, %v6518_v37, %v2423_v54  ;;  %v7044_v58 = vperm.slane %v2754_v50, %v4488_v61 }
 0x37d   :  { %v3126_v55 = vsel %vm435_vm5, %v7904_v53, %v6615_v20  ;;  %v2791_v48 = vrot.slane %v7024_v51, 4  ;;  %v2545_v5 = vrot.slane %v6969_v52, 4  ;;  %v2657_v20 = vrot.slane %v6762_v44, 4 }
 0x37e   :  { %v7041_v40 = vperm.slane %v3126_v55, %v4769_v59  ;;  %v7050_v34 = vperm.slane %v2842_v10, %v4488_v61  ;;  %v2744_v60 = vsel %vm435_vm5, %v4115_v63, %v2743_v29  ;;  %v7906_v9 = vrot.slane %v6529_v43, 4  ;;  %v7943_v43 = vld [vmem:[#allocation22_spill] sm:$0xff] }
 0x37f   :  { %v7059_v31 = vperm.slane %v6960_v26, %v4769_v59  ;;  %v2792_v2 = vsel %vm435_vm5, %v7044_v58, %v2791_v48  ;;  %v2801_v22 = vrot.slane %v7027_v6, 4  ;;  %v3216_v36 = vsel %vm435_vm5, 0.0, %v3215_v39 }
 0x380   :  { %7905 = vst [vmem:[#allocation39_spill] sm:$0xff] %v7041_v40  ;;  %v3152_v3 = vsel %vm435_vm5, %v7041_v40, %v7906_v9  ;;  %v7066_v54 = vperm.slane %v2328_v16, %v4488_v61  ;;  %v2658_v26 = vsel %vm435_vm5, %v2657_v20, %v6543_v25  ;;  %v2384_v10 = vperm.slane %v2376_v28, %v4769_v59 }
 0x381   :  { %v4137_v21 = vpack.i.bf16 %v2424_v8, %v3152_v3  ;;  %3414 = vrot.lane.b32.xlu1 %v3216_v36, %s4276_s11  ;;  %v2546_v63 = vsel %vm435_vm5, %v2545_v5, %v7059_v31  ;;  %v2880_v23 = vsel %vm435_vm5, %v7050_v34, %v2879_v14  ;;  %v7077_v1 = vperm.slane %v2744_v60, %v4488_v61 }
 0x382   :  { %v4167_v18 = vpack.i.bf16 %v2546_v63, %v2658_v26  ;;  %v3153_v16 = vrot.slane %v6827_v33, 4  ;;  %v2385_v29 = vrot.slane %v6972_v0, 4  ;;  %v7083_v50 = vperm.slane %v2844_v30, %v4488_v61 }
 0x383   :  { %4138 = vrot.lane.b32.xlu0 %v4137_v21, %s4274_s9  ;;  %v2800_v39 = vperm.slane %v2792_v2, %v4769_v59  ;;  %v7907_v53 = vrot.slane %v6507_v27, 4  ;;  %v7908_v14 = vrot.slane %v6934_v13, 4  ;;  %v7909_v8 = vrot.slane %v6917_v38, 4 }
 0x384   :  { %v2802_v30 = vsel %vm435_vm5, %v2801_v22, %v7077_v1  ;;  %4168 = vrot.lane.b32.xlu2 %v4167_v18, %s4279_s14  ;;  %v3154_v5 = vsel %vm435_vm5, %v3153_v16, %v6547_v32  ;;  %v2888_v20 = vperm.slane %v2880_v23, %v4769_v59  ;;  %v7910_v13 = vrot.slane %v6627_v24, 4 }
 0x385   :  { %v2426_v55 = vsel %vm435_vm5, %v7907_v53, %v2384_v10  ;;  %v3016_v28 = vsel %vm435_vm5, %v6873_v42, %v7908_v14  ;;  %v2992_v48 = vsel %vm435_vm5, %v6774_v19, %v7909_v8  ;;  %v7911_v38 = vrot.slane %v6883_v45, 4 }
 0x386   :  { %v4147_v60 = vpack.i.bf16 %v2426_v55, %v3154_v5  ;;  %v2700_v42 = vsel %vm435_vm5, %v6572_v12, %v7910_v13  ;;  %v2287_v9 = vrot.slane %v6946_v17, 4  ;;  %v7912_v3 = vunpack.i.l.bf16 %v6896_v7  ;;  %v7915_v55 = vld [vmem:[#allocation5_spill] sm:$0xff] }
 0x387   :  { %v3204_v19 = vsel %vm435_vm5, %v6575_v4, %v7911_v38  ;;  %v2386_v22 = vsel %vm435_vm5, %v2385_v29, %v7066_v54  ;;  %v2427_v36 = vrot.slane %v2384_v10, 4  ;;  %v2889_v24 = vrot.slane %v7083_v50, 4  ;;  %v7918_v13 = vld [vmem:[#allocation9_spill] sm:$0xff]  ;;  %v7919_v38 = vld [vmem:[#allocation34_spill] sm:$0xff] }
 0x388   :  { %v2832_v2 = vsel %vm435_vm5, %v7912_v3, %v6987_v49  ;;  %v7120_v12 = vperm.slane %v2802_v30, %v4769_v59  ;;  %v7123_v45 = vperm.slane %v2992_v48, %v4769_v59  ;;  %v2817_v4 = vrot.slane %v2800_v39, 4  ;;  %v7936_v3 = vld [vmem:[#allocation27_spill] sm:$0xff] }
 0x389   :  { %v2708_v17 = vperm.slane %v2700_v42, %v4769_v59  ;;  %v7127_v21 = vperm.slane %v3204_v19, %v4769_v59  ;;  %v7131_v49 = vsel %vm435_vm5, %v6507_v27, %v2427_v36  ;;  %v7913_v7 = vrot.slane %v6547_v32, 4  ;;  %4148 = vrot.lane.b32.xlu1 %v4147_v60, %s4275_s10  ;;  %v7920_v19 = vld [vmem:[#allocation35_spill] sm:$0xff]  ;;  %v7922_v36 = vld [vmem:[#allocation14_spill] sm:$0xff] }
 0x38a   :  { %v7144_v10 = vsel %vm435_vm5, %v2817_v4, %v6501_v57  ;;  %v7914_v23 = vrot.slane %v6560_v11, 4  ;;  %v2392_v32 = vperm.slane %v2386_v22, %v4769_v59  ;;  %v2288_v18 = vsel %vm435_vm5, %v6864_v56, %v2287_v9 }
 0x38b   :  { %v7137_v63 = vsel %vm435_vm5, %v6827_v33, %v7913_v7  ;;  %3334 = vrot.lane.b32.xlu0 %v2708_v17, %s4279_s14  ;;  %v2543_v33 = vrot.slane %v6849_v41, 4  ;;  %v3157_v29 = vrot.slane %v6834_v62, 4  ;;  %v3043_v53 = vrot.slane %v7123_v45, 4 }
 0x38c   :  { %v7149_v27 = vsel %vm435_vm5, %v7914_v23, %v2888_v20  ;;  %v7916_v14 = vrot.slane %v7915_v55, 4  ;;  %v7917_v48 = vrot.slane %v6501_v57, 4  ;;  %v2931_v41 = vrot.slane %v2888_v20, 4  ;;  %3474 = vrot.lane.b32.xlu2 %v7127_v21, %s4279_s14  ;;  %v7925_v23 = vld [vmem:[#allocation19_spill] sm:$0xff] }
 0x38d   :  { %v7171_v56 = vperm.slane %v3016_v28, %v4769_v59  ;;  %v7174_v5 = vperm.slane %v2832_v2, %v4488_v61  ;;  %v2715_v60 = vrot.slane %v2708_v17, 4  ;;  %v7180_v42 = vsel %vm435_vm5, %v3157_v29, %v7918_v13  ;;  %v7921_v2 = vld [vmem:[#allocation23_spill] sm:$0xff] }
 0x38e   :  { %v7163_v8 = vsel %vm435_vm5, %v7916_v14, %v2392_v32  ;;  %v7168_v30 = vsel %vm435_vm5, %v2800_v39, %v7917_v48  ;;  %v2544_v57 = vsel %vm435_vm5, %v7919_v38, %v2543_v33  ;;  %v7185_v39 = vperm.slane %v2288_v18, %v4769_v59  ;;  %v7923_v17 = vld [vmem:[#allocation3_spill] sm:$0xff] }
 0x38f   :  { %v7191_v20 = vsel %vm435_vm5, %v6560_v11, %v2931_v41  ;;  %v3148_v9 = vperm.slane %v7920_v19, %v4769_v59  ;;  %v2933_v22 = vrot.slane %v7921_v2, 4  ;;  %v2420_v4 = vperm.slane %v7922_v36, %v4769_v59  ;;  %v7926_v19 = vld [vmem:[#allocation18_spill] sm:$0xff] }
 0x390   :  { %v7924_v7 = vrot.slane %v7923_v17, 4  ;;  %v3044_v11 = vsel %vm435_vm5, %v7171_v56, %v3043_v53  ;;  %v2821_v18 = vrot.slane %v7120_v12, 4  ;;  %v2890_v29 = vsel %vm435_vm5, %v2889_v24, %v7174_v5  ;;  %v7928_v17 = vld [vmem:[#allocation7_spill] sm:$0xff] }
 0x391   :  { %v2387_v14 = vrot.slane %v7066_v54, 4  ;;  %v2716_v48 = vsel %vm435_vm5, 0.0, %v2715_v60  ;;  %v7212_v38 = vperm.slane %v2890_v29, %v4769_v59  ;;  %v7927_v36 = vrot.slane %v7926_v19, 4  ;;  %v7930_v29 = vld [vmem:[#allocation16_spill] sm:$0xff] }
 0x392   :  { %v2656_v33 = vsel %vm435_vm5, %v7925_v23, %v7924_v7  ;;  %3354 = vrot.lane.b32.xlu1 %v2716_v48, %s4280_s15  ;;  %v7221_v7 = vsel %vm435_vm5, %v2821_v18, %v7928_v17  ;;  %v2431_v24 = vrot.slane %v2392_v32, 4  ;;  %v3159_v54 = vrot.slane %v7918_v13, 4  ;;  %v7929_v13 = vld [vmem:[#allocation36_spill] sm:$0xff] }
 0x393   :  { %v4152_v41 = vpack.i.bf16 %v2544_v57, %v2656_v33  ;;  %v2316_v53 = vsel %vm435_vm5, %v7185_v39, %v7927_v36  ;;  %v7227_v57 = vsel %vm435_vm5, %v2933_v22, %v7212_v38  ;;  %v3161_v32 = vrot.slane %v3148_v9, 4 }
 0x394   :  { %v4192_v60 = vpack.i.bf16 %v2316_v53, %v3044_v11  ;;  %v7233_v33 = vsel %vm435_vm5, %v7915_v55, %v2431_v24  ;;  %v7237_v18 = vsel %vm435_vm5, %v6834_v62, %v3159_v54  ;;  %v3217_v11 = vrot.slane %v7929_v13, 4  ;;  %v7932_v62 = vld [vmem:[#allocation21_spill] sm:$0xff]  ;;  %v7933_v24 = vld [vmem:[#allocation30_spill] sm:$0xff] }
 0x395   :  { %4153 = vrot.lane.b32.xlu0 %v4152_v41, %s4278_s13  ;;  %v7243_v22 = vperm.slane %v7930_v29, %v4769_v59  ;;  %v2388_v55 = vsel %vm435_vm5, %v6972_v0, %v2387_v14  ;;  %v2433_v36 = vrot.slane %v2420_v4, 4  ;;  %v3124_v53 = vperm.slane %v7932_v62, %v4769_v59  ;;  %v7938_v14 = vld [vmem:[#allocation26_spill] sm:$0xff]  ;;  %v7939_v62 = vld [vmem:[#allocation32_spill] sm:$0xff] }
 0x396   :  { %4193 = vrot.lane.b32.xlu2 %v4192_v60, %s4276_s11  ;;  %v2396_v41 = vperm.slane %v2388_v55, %v4769_v59  ;;  %v2533_v54 = vrot.slane %v7933_v24, 4  ;;  %v7934_v60 = vld [vmem:[#allocation10_spill] sm:$0xff]  ;;  %v7937_v29 = vunpack.i.h.bf16 %v7936_v3  ;;  %v2877_v16 = vrot.slane %v7050_v34, 4  ;;  %v7947_v34 = vld [vmem:[#allocation31_spill] sm:$0xff] }
 0x397   :  { %7931 = vst [vmem:[#allocation5_spill] sm:$0xff] %v7243_v22  ;;  %v7935_v13 = vunpack.i.h.bf16 %v7934_v60  ;;  %v7262_v0 = vsel %vm435_vm5, %v3161_v32, %v3124_v53  ;;  %v7940_v24 = vunpack.i.h.bf16 %v7939_v62  ;;  %v7941_v60 = vld [vmem:[#allocation33_spill] sm:$0xff]  ;;  %v2313_v32 = vrot.slane %v7185_v39, 4 }
 0x398   :  { %v2943_v28 = vrot.slane %v7937_v29, 4  ;;  %v7259_v48 = vsel %vm435_vm5, %v2433_v36, %v2396_v41  ;;  %v7266_v55 = vsel %vm435_vm5, %v2533_v54, %v7938_v14  ;;  %v3218_v29 = vsel %vm435_vm5, 0.0, %v3217_v11 }
 0x399   :  { %v2955_v23 = vrot.slane %v7935_v13, 4  ;;  %v2979_v26 = vrot.slane %v7940_v24, 4  ;;  %v7942_v13 = vunpack.i.l.bf16 %v7941_v60  ;;  %v2789_v36 = vrot.slane %v7044_v58, 4 }
 0x39a   :  { %3454 = vrot.lane.b32.xlu1 %v3218_v29, %s4278_s13  ;;  %v2815_v54 = vrot.slane %v7243_v22, 4  ;;  %v3163_v14 = vrot.slane %v3124_v53, 4  ;;  %v7944_v24 = vunpack.i.l.bf16 %v7943_v43  ;;  %v7946_v11 = vpack.i.bf16 %v7131_v49, %v7137_v63 }
 0x39b   :  { %v2944_v15 = vsel %vm435_vm5, %v7942_v13, %v2943_v28  ;;  %v7945_v28 = vunpack.i.l.bf16 %v7939_v62  ;;  %v2435_v58 = vrot.slane %v2396_v41, 4  ;;  %v3037_v29 = vrot.slane %v6977_v46, 4  ;;  %v7950_v62 = vld [vmem:[#allocation11_spill] sm:$0xff] }
 0x39c   :  { %v2956_v37 = vsel %vm435_vm5, %v7944_v24, %v2955_v23  ;;  %v7948_v39 = vunpack.i.h.bf16 %v7947_v34  ;;  %v7949_v53 = vunpack.i.l.bf16 %v7947_v34  ;;  %v7295_v43 = vperm.slane %v2944_v15, %v4488_v61  ;;  %v7953_v34 = vld [vmem:[#allocation8_spill] sm:$0xff] }
 0x39d   :  { %v2967_v13 = vrot.slane %v7945_v28, 4  ;;  %4163 = vrot.lane.b32.xlu0 %v7946_v11, %s4276_s11  ;;  %v2878_v23 = vsel %vm435_vm5, %v2877_v16, %v7005_v47  ;;  %v7951_v24 = vunpack.i.h.bf16 %v7950_v62  ;;  %v2891_v63 = vrot.slane %v7174_v5, 4 }
 0x39e   :  { %v2251_v40 = vrot.slane %v7948_v39, 4  ;;  %v2239_v22 = vrot.slane %v7949_v53, 4  ;;  %v7952_v46 = vpack.i.bf16 %v7144_v10, %v7149_v27  ;;  %v7308_v41 = vsel %vm435_vm5, %v2420_v4, %v2435_v58 }
 0x39f   :  { %v2980_v49 = vsel %vm435_vm5, %v7951_v24, %v2979_v26  ;;  %v7311_v15 = vsel %vm435_vm5, %v3148_v9, %v3163_v14  ;;  %v2790_v47 = vsel %vm435_vm5, %v2789_v36, %v7024_v51  ;;  %v2314_v16 = vsel %vm435_vm5, %v2313_v32, %v7926_v19 }
 0x3a0   :  { %4203 = vrot.lane.b32.xlu2 %v7952_v46, %s4275_s10  ;;  %v3041_v26 = vrot.slane %v7171_v56, 4  ;;  %v4227_v5 = vpack.i.bf16 %v7308_v41, %v7311_v15  ;;  %v7954_v10 = vunpack.i.h.bf16 %v7953_v34  ;;  %v7955_v4 = vunpack.i.h.bf16 %v7941_v60 }
 0x3a1   :  { %v7327_v14 = vperm.slane %v2878_v23, %v4769_v59  ;;  %v7331_v51 = vsel %vm435_vm5, %v3037_v29, %v6982_v35  ;;  %v3003_v56 = vrot.slane %v7295_v43, 4  ;;  %v2803_v19 = vrot.slane %v7077_v1, 4 }
 0x3a2   :  { %v2968_v27 = vsel %vm435_vm5, %v7954_v10, %v2967_v13  ;;  %v2240_v9 = vsel %vm435_vm5, %v7955_v4, %v2239_v22  ;;  %v3042_v36 = vsel %vm435_vm5, %v3041_v26, %v7123_v45  ;;  %v2823_v32 = vrot.slane %v7928_v17, 4 }
 0x3a3   :  { %v2988_v60 = vperm.slane %v2980_v49, %v4488_v61  ;;  %v2892_v22 = vsel %vm435_vm5, %v7083_v50, %v2891_v63  ;;  %v4172_v28 = vpack.i.bf16 %v2314_v16, %v3042_v36  ;;  %v7342_v13 = vperm.slane %v2790_v47, %v4769_v59  ;;  %v7958_v50 = vld [vmem:[#allocation6_spill] sm:$0xff]  ;;  %v7961_v63 = vld [vmem:[#allocation20_spill] sm:$0xff] }
 0x3a4   :  { %v2964_v35 = vperm.slane %v2956_v37, %v4488_v61  ;;  %v7956_v11 = vunpack.i.l.bf16 %v7936_v3  ;;  %v2976_v58 = vperm.slane %v2968_v27, %v4488_v61  ;;  %v2248_v45 = vperm.slane %v2240_v9, %v4488_v61  ;;  %v7962_v9 = vld [vmem:[#allocation24_spill] sm:$0xff] }
 0x3a5   :  { %v7957_v17 = vpack.i.bf16 %v7163_v8, %v7180_v42  ;;  %4173 = vrot.lane.b32.xlu0 %v4172_v28, %s4275_s10  ;;  %v7357_v29 = vperm.slane %v7958_v50, %v4769_v59  ;;  %v2927_v37 = vrot.slane %v7327_v14, 4  ;;  %v2659_v3 = vrot.slane %v6543_v25, 4 }
 0x3a6   :  { %v2252_v1 = vsel %vm435_vm5, %v7956_v11, %v2251_v40  ;;  %v7959_v40 = vld [vmem:[#allocation13_spill] sm:$0xff]  ;;  %v3004_v53 = vsel %vm435_vm5, %v2964_v35, %v3003_v56  ;;  %v2900_v23 = vperm.slane %v2892_v22, %v4769_v59  ;;  %v2804_v8 = vsel %vm435_vm5, %v7027_v6, %v2803_v19 }
 0x3a7   :  { %4178 = vrot.lane.b32.xlu1 %v7957_v17, %s4277_s12  ;;  %v2788_v39 = vperm.slane %v7959_v40, %v4769_v59  ;;  %v2547_v42 = vrot.slane %v7059_v31, 4  ;;  %v2260_v62 = vperm.slane %v2252_v1, %v4488_v61  ;;  %v3025_v24 = vrot.slane %v2988_v60, 4 }
 0x3a8   :  { %v7960_v49 = vpack.i.bf16 %v7168_v30, %v7191_v20  ;;  %v2816_v25 = vsel %vm435_vm5, %v7342_v13, %v2815_v54  ;;  %v2924_v46 = vperm.slane %v7961_v63, %v4769_v59  ;;  %v3027_v47 = vrot.slane %v2976_v58, 4 }
 0x3a9   :  { %v2299_v16 = vrot.slane %v2248_v45, 4  ;;  %v2548_v6 = vsel %vm435_vm5, %v6969_v52, %v2547_v42  ;;  %v2935_v31 = vrot.slane %v7212_v38, 4  ;;  %v7381_v61 = vperm.slane %v3004_v53, %v4769_v59 }
 0x3aa   :  { %4218 = vrot.lane.b32.xlu2 %v7960_v49, %s4276_s11  ;;  %v2812_v26 = vperm.slane %v2804_v8, %v4769_v59  ;;  %v2928_v30 = vsel %vm435_vm5, %v7357_v29, %v2927_v37  ;;  %v7388_v20 = vsel %vm435_vm5, %v7120_v12, %v2823_v32  ;;  %v2660_v34 = vsel %vm435_vm5, %v6762_v44, %v2659_v3 }
 0x3ab   :  { %v4187_v54 = vpack.i.bf16 %v2816_v25, %v2928_v30  ;;  %v2936_v52 = vsel %vm435_vm5, %v7921_v2, %v2935_v31  ;;  %v2939_v38 = vrot.slane %v2900_v23, 4  ;;  %v4182_v10 = vpack.i.bf16 %v2548_v6, %v2660_v34  ;;  %v3235_v6 = vpop.permute.xlu2 %3234 }
 0x3ac   :  { %v4242_v27 = vpack.i.bf16 %v7388_v20, %v2936_v52  ;;  %v3026_v4 = vsel %vm435_vm5, %v3025_v24, %v2976_v58  ;;  %v2284_v56 = vperm.slane %v7962_v9, %v4769_v59  ;;  %v2827_v12 = vrot.slane %v2788_v39, 4 }
 0x3ad   :  { %v2297_v19 = vrot.slane %v2260_v62, 4  ;;  %v3028_v36 = vsel %vm435_vm5, %v2988_v60, %v3027_v47  ;;  %v2300_v44 = vsel %vm435_vm5, %v2260_v62, %v2299_v16  ;;  %4183 = vrot.lane.b32.xlu0 %v4182_v10, %s4280_s15  ;;  %v2937_v2 = vrot.slane %v2924_v46, 4 }
 0x3ae   :  { %v3051_v32 = vrot.slane %v7381_v61, 4  ;;  %v2828_v22 = vsel %vm435_vm5, %v2812_v26, %v2827_v12  ;;  %v2940_v28 = vsel %vm435_vm5, %v2924_v46, %v2939_v38  ;;  %v2825_v11 = vrot.slane %v2812_v26, 4 }
 0x3af   :  { %4188 = vrot.lane.b32.xlu1 %v4187_v54, %s4274_s9  ;;  %v3032_v1 = vperm.slane %v3026_v4, %v4769_v59  ;;  %v2298_v58 = vsel %vm435_vm5, %v2297_v19, %v2248_v45  ;;  %v7963_v60 = vpack.i.bf16 %v7221_v7, %v7227_v57  ;;  %v3219_v17 = vrot.slane %v7127_v21, 4 }
 0x3b0   :  { %v4257_v50 = vpack.i.bf16 %v2828_v22, %v2940_v28  ;;  %v2308_v37 = vperm.slane %v2300_v44, %v4769_v59  ;;  %v3036_v3 = vperm.slane %v3028_v36, %v4769_v59  ;;  %v2826_v40 = vsel %vm435_vm5, %v2825_v11, %v2788_v39  ;;  %v7967_v44 = vld [vmem:[#allocation4_spill] sm:$0xff] }
 0x3b1   :  { %v2938_v53 = vsel %vm435_vm5, %v2937_v2, %v2900_v23  ;;  %v3001_v8 = vrot.slane %v2964_v35, 4  ;;  %v2304_v45 = vperm.slane %v2298_v58, %v4769_v59  ;;  %v2323_v62 = vrot.slane %v2284_v56, 4 }
 0x3b2   :  { %4233 = vrot.lane.b32.xlu2 %v7963_v60, %s4277_s12  ;;  %v4252_v42 = vpack.i.bf16 %v2826_v40, %v2938_v53  ;;  %v3052_v24 = vsel %vm435_vm5, %v3036_v3, %v3051_v32  ;;  %v3220_v21 = vsel %vm435_vm5, 0.0, %v3219_v17  ;;  %v3045_v49 = vrot.slane %v3032_v1, 4 }
 0x3b3   :  { %v3002_v7 = vsel %vm435_vm5, %v3001_v8, %v7295_v43  ;;  %v2324_v57 = vsel %vm435_vm5, %v2308_v37, %v2323_v62  ;;  %v7964_v35 = vpack.i.bf16 %v7233_v33, %v7237_v18  ;;  %v2317_v25 = vrot.slane %v2304_v45, 4  ;;  %v7965_v43 = vld [vmem:[#allocation25_spill] sm:$0xff] }
 0x3b4   :  { %v4247_v39 = vpack.i.bf16 %v2324_v57, %v3052_v24  ;;  %v3008_v23 = vperm.slane %v3002_v7, %v4769_v59  ;;  %v2280_v63 = vperm.slane %v7965_v43, %v4769_v59  ;;  %v7966_v33 = vpack.i.bf16 %v7259_v48, %v7262_v0  ;;  %v3275_v48 = vpop.permute.xlu2 %3274 }
 0x3b5   :  { %4198 = vrot.lane.b32.xlu0 %v7964_v35, %s4278_s13  ;;  %v2321_v20 = vrot.slane %v2308_v37, 4  ;;  %v3049_v54 = vrot.slane %v3036_v3, 4  ;;  %v3505_v2 = vsel %vm1723_vm6, %v7967_v44, %v3235_v6  ;;  %v7969_v35 = vld [vmem:[#allocation17_spill] sm:$0xff] }
 0x3b6   :  { %v3046_v46 = vsel %vm435_vm5, %v3045_v49, %v3008_v23  ;;  %v2318_v47 = vsel %vm435_vm5, %v2317_v25, %v2280_v63  ;;  %v3047_v18 = vrot.slane %v3008_v23, 4  ;;  %v2319_v31 = vrot.slane %v2280_v63, 4 }
 0x3b7   :  { %3494 = vrot.lane.b32.xlu1 %v3220_v21, %s4280_s15  ;;  %v4207_v16 = vpack.i.bf16 %v2318_v47, %v3046_v46  ;;  %v2322_v0 = vsel %vm435_vm5, %v2321_v20, %v2284_v56  ;;  %v3050_v34 = vsel %vm435_vm5, %v3049_v54, %v7381_v61 }
 0x3b8   :  { %v3048_v26 = vsel %vm435_vm5, %v3032_v1, %v3047_v18  ;;  %v2320_v30 = vsel %vm435_vm5, %v2304_v45, %v2319_v31  ;;  %v4237_v52 = vpack.i.bf16 %v2322_v0, %v3050_v34 }
 0x3b9   :  { %v4222_v59 = vpack.i.bf16 %v2320_v30, %v3048_v26 }
 0x3ba   :  { %4248 = vrot.lane.b32.xlu2 %v4247_v39, %s4280_s15 }
 0x3bc   :  { %v3295_v38 = vpop.permute.xlu2 %3294 }
 0x3bd   :  { %4208 = vrot.lane.b32.xlu0 %v4207_v16, %s4277_s12 }
 0x3bf   :  { %4213 = vrot.lane.b32.xlu1 %v7966_v33, %s4279_s14 }
 0x3c4   :  { %v3315_v41 = vpop.permute.xlu2 %3314 }
 0x3c5   :  { %4223 = vrot.lane.b32.xlu0 %v4222_v59, %s4278_s13  ;;  %v7970_v59 = vld [vmem:[#allocation29_spill] sm:$0xff] }
 0x3c7   :  { %4228 = vrot.lane.b32.xlu1 %v4227_v5, %s4280_s15  ;;  %v3255_v5 = vpop.permute.xlu0 %3254 }
 0x3c8   :  { %v3510_v32 = vsel %vm1729_vm7, %v3505_v2, %v3255_v5 }
 0x3c9   :  { %v3515_v28 = vsel %vm1735_vm8, %v3510_v32, %v3275_v48 }
 0x3ca   :  { %v3520_v1 = vsel %vm1741_vm9, %v3515_v28, %v3295_v38 }
 0x3cb   :  { %v3525_v60 = vsel %vm1747_vm10, %v3520_v1, %v3315_v41 }
 0x3cc   :  { %v4144_v10 = vpop.permute.xlu2 %4143 }
 0x3cd   :  { %4238 = vrot.lane.b32.xlu0 %v4237_v52, %s4279_s14  ;;  %v4145_v33 = vunpack.i.l.bf16 %v4144_v10  ;;  %v4146_v30 = vunpack.i.h.bf16 %v4144_v10 }
 0x3cf   :  { %4243 = vrot.lane.b32.xlu1 %v4242_v27, %s4278_s13  ;;  %v4124_v15 = vpop.permute.xlu1 %4123  ;;  %v3375_v9 = vpop.permute.xlu0 %3374 }
 0x3d0   :  { %v4125_v62 = vunpack.i.l.bf16 %v4124_v15  ;;  %v4126_v7 = vunpack.i.h.bf16 %v4124_v15  ;;  %v3540_v20 = vsel %vm1723_vm6, %v7970_v59, %v3375_v9 }
 0x3d2   :  { %v3503_v47 = vsel %vm1723_vm6, %v7266_v55, %v4126_v7 }
 0x3d4   :  { %v3435_v56 = vpop.permute.xlu2 %3434 }
 0x3d5   :  { %4253 = vrot.lane.b32.xlu0 %v4252_v42, %s4279_s14  ;;  %v7968_v42 = vld [vmem:[#allocation28_spill] sm:$0xff] }
 0x3d6   :  { %v2645_v45 = vrot.slane %v7968_v42, 4  ;;  %v7972_v42 = vld [vmem:[#allocation2_spill] sm:$0xff] }
 0x3d7   :  { %4258 = vrot.lane.b32.xlu1 %v4257_v50, %s4280_s15 }
 0x3d8   :  { %v2646_v39 = vsel %vm435_vm5, %v2645_v45, %v7969_v35  ;;  %v2421_v45 = vrot.slane %v7972_v42, 4  ;;  %v7973_v35 = vld [vmem:[#allocation12_spill] sm:$0xff] }
 0x3d9   :  { %v3504_v43 = vsel %vm1723_vm6, %v2646_v39, %v4125_v62 }
 0x3db   :  { %v3395_v19 = vpop.permute.xlu0 %3394 }
 0x3dc   :  { %v7454_v27 = vpop.permute.xlu2 %4158  ;;  %v3545_v48 = vsel %vm1729_vm7, %v3540_v20, %v3395_v19 }
 0x3dd   :  { %v4161_v20 = vunpack.i.h.bf16 %v7454_v27 }
 0x3df   :  { %v4129_v4 = vpop.permute.xlu1 %4128 }
 0x3e0   :  { %v4130_v24 = vunpack.i.l.bf16 %v4129_v4  ;;  %v4131_v23 = vunpack.i.h.bf16 %v4129_v4 }
 0x3e2   :  { %v3509_v46 = vsel %vm1729_vm7, %v3504_v43, %v4130_v24  ;;  %v3508_v18 = vsel %vm1729_vm7, %v3503_v47, %v4131_v23  ;;  %v7974_v23 = vld [vmem:[#allocation37_spill] sm:$0xff] }
 0x3e3   :  { %v2422_v43 = vsel %vm435_vm5, %v2421_v45, %v7974_v23 }
 0x3e4   :  { %v4169_v58 = vpop.permute.xlu2 %4168 }
 0x3e5   :  { %v4170_v34 = vunpack.i.l.bf16 %v4169_v58  ;;  %v4171_v9 = vunpack.i.h.bf16 %v4169_v58 }
 0x3eb   :  { %v4134_v12 = vpop.permute.xlu1 %4133 }
 0x3ec   :  { %v3475_v40 = vpop.permute.xlu2 %3474  ;;  %v4135_v21 = vunpack.i.l.bf16 %v4134_v12  ;;  %v4136_v63 = vunpack.i.h.bf16 %v4134_v12 }
 0x3ee   :  { %v3514_v16 = vsel %vm1735_vm8, %v3509_v46, %v4135_v21  ;;  %v3513_v31 = vsel %vm1735_vm8, %v3508_v18, %v4136_v63 }
 0x3ef   :  { %v3519_v54 = vsel %vm1741_vm9, %v3514_v16, %v4145_v33  ;;  %v3518_v41 = vsel %vm1741_vm9, %v3513_v31, %v4146_v30 }
 0x3f3   :  { %v3415_v61 = vpop.permute.xlu1 %3414 }
 0x3f4   :  { %v7470_v57 = vpop.permute.xlu2 %4193  ;;  %v3550_v52 = vsel %vm1735_vm8, %v3545_v48, %v3415_v61 }
 0x3f5   :  { %v7452_v36 = vpop.permute.xlu0 %4138  ;;  %v3555_v19 = vsel %vm1741_vm9, %v3550_v52, %v3435_v56  ;;  %v7511_v56 = vld [vmem:[%s7626_s1] sm:$0xff] }
 0x3f6   :  { %3758 = vmatmul.msk.f32.vlgmr.msra.gmra.mxu0 %vm3572_vm14, %v7511_v56  ;;  %3760 = vmatmul.msk.f32.vlgmr.msra.gmra.mxu1 %vm3572_vm14, %v7511_v56 }
 0x3fb   :  { %v7459_v22 = vpop.permute.xlu1 %4148 }
 0x3fc   :  { %v7494_v15 = vpop.permute.xlu2 %4203  ;;  %v4151_v62 = vunpack.i.h.bf16 %v7459_v22  ;;  %v4150_v24 = vunpack.i.l.bf16 %v7459_v22 }
 0x3fd   :  { %v3335_v11 = vpop.permute.xlu0 %3334  ;;  %v4205_v45 = vunpack.i.l.bf16 %v7494_v15 }
 0x3fe   :  { %v3530_v17 = vsel %vm1753_vm11, %v3525_v60, %v3335_v11 }
 0x404   :  { %v3355_v50 = vpop.permute.xlu1 %3354  ;;  %v7506_v60 = vpop.permute.xlu2 %4218 }
 0x405   :  { %v3535_v3 = vsel %vm1759_vm13, %v3530_v17, %v3355_v50  ;;  %v7971_v17 = vld [vmem:[#allocation39_spill] sm:$0xff] }
 0x406   :  { %3761 = vmatpush.msk.msra.mxu2 %vm3576_vm12, %v3535_v3  ;;  %v3149_v50 = vrot.slane %v7971_v17, 4  ;;  %v4141_v3 = vunpack.i.h.bf16 %v7452_v36 }
 0x407   :  { %v4154_v37 = vpop.permute.xlu0 %4153 }
 0x408   :  { %v4155_v6 = vunpack.i.l.bf16 %v4154_v37  ;;  %v4156_v26 = vunpack.i.h.bf16 %v4154_v37  ;;  %v3150_v39 = vsel %vm435_vm5, %v3149_v50, %v7973_v35  ;;  %v3502_v46 = vsel %vm1723_vm6, %v2422_v43, %v4141_v3 }
 0x409   :  { %v4195_v3 = vunpack.i.l.bf16 %v7470_v57 }
 0x40a   :  { %v3524_v55 = vsel %vm1747_vm10, %v3519_v54, %v4155_v6  ;;  %v3523_v4 = vsel %vm1747_vm10, %v3518_v41, %v4156_v26  ;;  %v3507_v6 = vsel %vm1729_vm7, %v3502_v46, %v4151_v62  ;;  %v7975_v26 = vld [vmem:[#allocation38_spill] sm:$0xff]  ;;  %v4160_v54 = vunpack.i.l.bf16 %v7454_v27 }
 0x40b   :  { %v3529_v12 = vsel %vm1753_vm11, %v3524_v55, %v4170_v34  ;;  %v3528_v61 = vsel %vm1753_vm11, %v3523_v4, %v4171_v9  ;;  %v2309_v30 = vrot.slane %v7975_v26, 4  ;;  %v4220_v26 = vunpack.i.l.bf16 %v7506_v60 }
 0x40c   :  { %v3455_v53 = vpop.permute.xlu1 %3454  ;;  %v7537_v33 = vpop.permute.xlu2 %4233 }
 0x40d   :  { %v3560_v2 = vsel %vm1747_vm10, %v3555_v19, %v3455_v53 }
 0x40e   :  { %v3565_v11 = vsel %vm1753_vm11, %v3560_v2, %v3475_v40  ;;  %v4140_v40 = vunpack.i.l.bf16 %v7452_v36  ;;  %v7976_v2 = vld [vmem:[#allocation15_spill] sm:$0xff] }
 0x40f   :  { %v7467_v8 = vpop.permute.xlu0 %4163 }
 0x410   :  { %v4166_v7 = vunpack.i.h.bf16 %v7467_v8  ;;  %v4165_v21 = vunpack.i.l.bf16 %v7467_v8  ;;  %v3539_v47 = vsel %vm1723_vm6, %v3150_v39, %v4140_v40 }
 0x411   :  { %v3544_v8 = vsel %vm1729_vm7, %v3539_v47, %v4150_v24 }
 0x412   :  { %v3512_v59 = vsel %vm1735_vm8, %v3507_v6, %v4166_v7 }
 0x414   :  { %v4249_v62 = vpop.permute.xlu2 %4248 }
 0x415   :  { %v4251_v46 = vunpack.i.h.bf16 %v4249_v62  ;;  %v4250_v47 = vunpack.i.l.bf16 %v4249_v62 }
 0x417   :  { %v7476_v25 = vpop.permute.xlu0 %4173 }
 0x418   :  { %v4176_v4 = vunpack.i.h.bf16 %v7476_v25  ;;  %v4175_v9 = vunpack.i.l.bf16 %v7476_v25  ;;  %v3538_v25 = vsel %vm1723_vm6, %v7331_v51, %v4160_v54  ;;  %v4206_v51 = vunpack.i.h.bf16 %v7494_v15 }
 0x419   :  { %v7472_v49 = vpop.permute.xlu1 %4178 }
 0x41a   :  { %v4181_v36 = vunpack.i.h.bf16 %v7472_v49  ;;  %v4180_v63 = vunpack.i.l.bf16 %v7472_v49  ;;  %v3549_v49 = vsel %vm1735_vm8, %v3544_v8, %v4165_v21  ;;  %v3543_v50 = vsel %vm1729_vm7, %v3538_v25, %v4175_v9 }
 0x41b   :  { %v3548_v39 = vsel %vm1735_vm8, %v3543_v50, %v4195_v3 }
 0x41c   :  { %v3517_v48 = vsel %vm1741_vm9, %v3512_v59, %v4181_v36  ;;  %v3554_v55 = vsel %vm1741_vm9, %v3549_v49, %v4180_v63 }
 0x41f   :  { %v4184_v38 = vpop.permute.xlu0 %4183 }
 0x420   :  { %v4186_v5 = vunpack.i.h.bf16 %v4184_v38  ;;  %v4185_v10 = vunpack.i.l.bf16 %v4184_v38 }
 0x421   :  { %v7489_v0 = vpop.permute.xlu1 %4188 }
 0x422   :  { %v3534_v44 = vsel %vm1759_vm13, %v3529_v12, %v4185_v10  ;;  %v3533_v32 = vsel %vm1759_vm13, %v3528_v61, %v4186_v5  ;;  %v2310_v61 = vsel %vm435_vm5, %v2309_v30, %v7976_v2 }
 0x423   :  { %3641 = vmatpush.msra.mxu2 %v3534_v44 }
 0x425   :  { %3642 = vmatpush.msra.mxu2 %v3533_v32  ;;  %v2813_v32 = vrot.slane %v7342_v13, 4 }
 0x427   :  { %v4199_v1 = vpop.permute.xlu0 %4198 }
 0x428   :  { %v4201_v16 = vunpack.i.h.bf16 %v4199_v1  ;;  %v4200_v22 = vunpack.i.l.bf16 %v4199_v1  ;;  %v4191_v1 = vunpack.i.h.bf16 %v7489_v0 }
 0x429   :  { %v3495_v28 = vpop.permute.xlu1 %3494 }
 0x42a   :  { %v3570_v58 = vsel %vm1759_vm13, %v3565_v11, %v3495_v28  ;;  %v3522_v5 = vsel %vm1747_vm10, %v3517_v48, %v4201_v16  ;;  %v3559_v10 = vsel %vm1747_vm10, %v3554_v55, %v4200_v22  ;;  %v2925_v28 = vrot.slane %v7357_v29, 4 }
 0x42b   :  { %3763 = vmatpush.msk.msra.mxu3 %vm3576_vm12, %v3570_v58  ;;  %v3501_v11 = vsel %vm1723_vm6, %v2310_v61, %v4161_v20  ;;  %v4190_v58 = vunpack.i.l.bf16 %v7489_v0  ;;  %v4196_v29 = vunpack.i.h.bf16 %v7470_v57  ;;  %v7977_v0 = vld [vmem:[#allocation5_spill] sm:$0xff]  ;;  %v4236_v55 = vunpack.i.h.bf16 %v7537_v33 }
 0x42c   :  { %v3506_v17 = vsel %vm1729_vm7, %v3501_v11, %v4176_v4  ;;  %v2814_v24 = vsel %vm435_vm5, %v2813_v32, %v7977_v0  ;;  %v2926_v7 = vsel %vm435_vm5, %v2925_v28, %v7327_v14 }
 0x42d   :  { %v3537_v35 = vsel %vm1723_vm6, %v2926_v7, %v4190_v58  ;;  %v3511_v57 = vsel %vm1735_vm8, %v3506_v17, %v4196_v29  ;;  %v4281_v17 = vmov 512.0  }
 0x42e   :  { %v3542_v6 = vsel %vm1729_vm7, %v3537_v35, %v4205_v45  ;;  %4264 = vrcp.f32 %v4281_v17 }
 0x42f   :  { %v7520_v53 = vpop.permute.xlu0 %4208  ;;  %v3547_v54 = vsel %vm1735_vm8, %v3542_v6, %v4220_v26  ;;  %v3696_v6 = vld [vmem:[%s7627_s2] sm:$0xff] }
 0x430   :  { %v4210_v13 = vunpack.i.l.bf16 %v7520_v53 }
 0x431   :  { %v4214_v37 = vpop.permute.xlu1 %4213 }
 0x432   :  { %v4216_v18 = vunpack.i.h.bf16 %v4214_v37  ;;  %v4215_v31 = vunpack.i.l.bf16 %v4214_v37  ;;  %v4211_v37 = vunpack.i.h.bf16 %v7520_v53  ;;  %v3536_v53 = vsel %vm1723_vm6, %v2814_v24, %v4191_v1 }
 0x433   :  { %v3553_v15 = vsel %vm1741_vm9, %v3548_v39, %v4210_v13  ;;  %v3541_v22 = vsel %vm1729_vm7, %v3536_v53, %v4206_v51 }
 0x434   :  { %v3527_v12 = vsel %vm1753_vm11, %v3522_v5, %v4216_v18  ;;  %v3564_v27 = vsel %vm1753_vm11, %v3559_v10, %v4215_v31  ;;  %v3516_v43 = vsel %vm1741_vm9, %v3511_v57, %v4211_v37  ;;  %v4221_v31 = vunpack.i.h.bf16 %v7506_v60  ;;  %v4265_v50 = vpop.eup %4264 }
 0x435   :  { %v3675_v37 = vmul.f32 512.0, %v4265_v50  ;;  %vm3679_vm15 = vweird.f32 %v4265_v50 }
 0x436   :  { %v3546_v48 = vsel %vm1735_vm8, %v3541_v22, %v4221_v31  ;;  %v3718_v31 = vld [vmem:[%s7628_s3] sm:$0xff] }
 0x437   :  { %v4224_v41 = vpop.permute.xlu0 %4223  ;;  %v3551_v10 = vsel %vm1741_vm9, %v3546_v48, %v4236_v55  ;;  %v3676_v13 = vsub.f32 1.0, %v3675_v37 }
 0x438   :  { %v4226_v40 = vunpack.i.h.bf16 %v4224_v41  ;;  %v4225_v42 = vunpack.i.l.bf16 %v4224_v41 }
 0x439   :  { %v4229_v34 = vpop.permute.xlu1 %4228  ;;  %v3677_v29 = vmul.f32 %v4265_v50, %v3676_v13 }
 0x43a   :  { %v4231_v52 = vunpack.i.h.bf16 %v4229_v34  ;;  %v4230_v38 = vunpack.i.l.bf16 %v4229_v34  ;;  %v3521_v14 = vsel %vm1747_vm10, %v3516_v43, %v4226_v40  ;;  %v3558_v16 = vsel %vm1747_vm10, %v3553_v15, %v4225_v42 }
 0x43b   :  { %v4235_v34 = vunpack.i.l.bf16 %v7537_v33  ;;  %v3678_v3 = vadd.f32 %v4265_v50, %v3677_v29 }
 0x43c   :  { %v3532_v19 = vsel %vm1759_vm13, %v3527_v12, %v4231_v52  ;;  %v3569_v44 = vsel %vm1759_vm13, %v3564_v27, %v4230_v38 }
 0x43d   :  { %3643 = vmatpush.msra.mxu2 %v3532_v19  ;;  %3661 = vmatpush.msra.mxu3 %v3569_v44  ;;  %v3552_v5 = vsel %vm1741_vm9, %v3547_v54, %v4235_v34  ;;  %v3680_v40 = vsel %vm3679_vm15, %v4265_v50, %v3678_v3 }
 0x43f   :  { %v4239_v23 = vpop.permute.xlu0 %4238 }
 0x440   :  { %v4241_v36 = vunpack.i.h.bf16 %v4239_v23  ;;  %v4240_v63 = vunpack.i.l.bf16 %v4239_v23  ;;  %v4282_v23 = vmov 0  }
 0x441   :  { %v4244_v21 = vpop.permute.xlu1 %4243  ;;  %4262 = vset.pattern.permute.xlu1 %v4282_v23  ;;  %4263 = vset.pattern.permute.xlu0 %v4282_v23 }
 0x442   :  { %v3526_v8 = vsel %vm1753_vm11, %v3521_v14, %v4241_v36  ;;  %v3563_v18 = vsel %vm1753_vm11, %v3558_v16, %v4240_v63  ;;  %v4246_v49 = vunpack.i.h.bf16 %v4244_v21  ;;  %v4245_v20 = vunpack.i.l.bf16 %v4244_v21 }
 0x443   :  { %v3531_v30 = vsel %vm1759_vm13, %v3526_v8, %v4251_v46  ;;  %v3568_v59 = vsel %vm1759_vm13, %v3563_v18, %v4250_v47 }
 0x444   :  { %3644 = vmatpush.msra.mxu2 %v3531_v30  ;;  %3662 = vmatpush.msra.mxu3 %v3568_v59  ;;  %v3557_v9 = vsel %vm1747_vm10, %v3552_v5, %v4245_v20  ;;  %v3556_v12 = vsel %vm1747_vm10, %v3551_v10, %v4246_v49 }
 0x445   :  { %3762 = vmatmul.msk.f32.vlgmr.msra.gmra.mxu2 %vm3572_vm14, %v7511_v56 }
 0x447   :  { %v4254_v52 = vpop.permute.xlu0 %4253 }
 0x448   :  { %v4256_v38 = vunpack.i.h.bf16 %v4254_v52  ;;  %v4255_v41 = vunpack.i.l.bf16 %v4254_v52 }
 0x449   :  { %v4259_v60 = vpop.permute.xlu1 %4258 }
 0x44a   :  { %v4260_v4 = vunpack.i.l.bf16 %v4259_v60  ;;  %v3562_v27 = vsel %vm1753_vm11, %v3557_v9, %v4255_v41  ;;  %v3561_v19 = vsel %vm1753_vm11, %v3556_v12, %v4256_v38  ;;  %v4261_v44 = vunpack.i.h.bf16 %v4259_v60 }
 0x44c   :  { %v3567_v33 = vsel %vm1759_vm13, %v3562_v27, %v4260_v4  ;;  %v3566_v2 = vsel %vm1759_vm13, %v3561_v19, %v4261_v44 }
 0x44d   :  { %3663 = vmatpush.msra.mxu3 %v3567_v33 }
 0x44f   :  { %3664 = vmatpush.msra.mxu3 %v3566_v2 }
 0x450   :  { %3764 = vmatmul.msk.f32.vlgmr.msra.gmra.mxu3 %vm3572_vm14, %v7511_v56 }
 0x473   :  { %v3606_v61 = vpop.f32.mrf.mxu0  ;;  %v3626_v32 = vpop.f32.mrf.mxu1 }
 0x474   :  { %v3669_v28 = vadd.f32 %v3626_v32, %v3606_v61 }
 0x4c8   :  { %v3646_v11 = vpop.f32.mrf.mxu2 }
 0x4c9   :  { %v3670_v25 = vadd.f32 %v3669_v28, %v3646_v11 }
 0x4d3   :  { %v3666_v1 = vpop.f32.mrf.mxu3 }
 0x4d4   :  { %v3671_v58 = vadd.f32 %v3670_v25, %v3666_v1 }
 0x4d6   :  { %3672 = vadd.xlane.f32.xlu2 %v3671_v58 }
 0x549   :  { %v3673_v42 = vpop.xlane.xlu2 %3672 }
 0x54a   :  { %v3681_v51 = vmul.f32 %v3680_v40, %v3673_v42 }
 0x54c   :  { %v3682_v56 = vsub.f32 %v3606_v61, %v3681_v51  ;;  %v3683_v45 = vsub.f32 %v3626_v32, %v3681_v51  ;;  %v3684_v62 = vsub.f32 %v3646_v11, %v3681_v51  ;;  %v3685_v0 = vsub.f32 %v3666_v1, %v3681_v51 }
 0x54e   :  { %v3686_v24 = vmul.f32 %v3682_v56, %v3682_v56  ;;  %v3687_v7 = vmul.f32 %v3683_v45, %v3683_v45  ;;  %v3688_v21 = vmul.f32 %v3684_v62, %v3684_v62  ;;  %v3689_v35 = vmul.f32 %v3685_v0, %v3685_v0 }
 0x550   :  { %v3690_v53 = vadd.f32 %v3687_v7, %v3686_v24 }
 0x552   :  { %v3691_v57 = vadd.f32 %v3690_v53, %v3688_v21 }
 0x554   :  { %v3692_v39 = vadd.f32 %v3691_v57, %v3689_v35 }
 0x556   :  { %3693 = vadd.xlane.f32.xlu0 %v3692_v39 }
 0x5c9   :  { %v3694_v43 = vpop.xlane.xlu0 %3693 }
 0x5ca   :  { %v3695_v15 = vmul.f32 %v3694_v43, %v3680_v40 }
 0x5cc   :  { %v3697_v36 = vadd.f32 1e-05, %v3695_v15 }
 0x5ce   :  { %4266 = vrsqrt.f32 %v3697_v36  ;;  %vm3704_vm1 = vweird.f32 %v3697_v36 }
 0x5d4   :  { %v4267_v63 = vpop.eup %4266 }
 0x5d5   :  { %v3699_v46 = vmul.f32 %v4267_v63, %v3697_v36  ;;  %vm3705_vm0 = vweird.f32 %v4267_v63 }
 0x5d6   :  { %vm3706_vm2 = vmor %vm3704_vm1, %vm3705_vm0 }
 0x5d7   :  { %v3700_v47 = vmul.f32 %v4267_v63, %v3699_v46 }
 0x5d9   :  { %v3701_v14 = vmul.f32 0.5, %v3700_v47 }
 0x5db   :  { %v3702_v16 = vsub.f32 1.5, %v3701_v14 }
 0x5dd   :  { %v3703_v22 = vmul.f32 %v4267_v63, %v3702_v16 }
 0x5df   :  { %v3707_v8 = vsel %vm3706_vm2, %v4267_v63, %v3703_v22 }
 0x5e0   :  { %v3708_v18 = vmul.f32 %v3707_v8, %v3696_v6 }
 0x5e2   :  { %3711 = vperm.xlu1 %4262, %v3708_v18  }
 0x5ea   :  { %3721 = vperm.xlu1 %4262, %v3718_v31  }
 0x654   :  { %v3712_v26 = vpop.permute.xlu1 %3711 }
 0x655   :  { %v3714_v30 = vmul.f32 %v3712_v26, %v3682_v56  ;;  %v3715_v59 = vmul.f32 %v3712_v26, %v3683_v45  ;;  %v3716_v49 = vmul.f32 %v3712_v26, %v3684_v62  ;;  %v3717_v20 = vmul.f32 %v3712_v26, %v3685_v0 }
 0x65c   :  { %v3722_v54 = vpop.permute.xlu1 %3721 }
 0x65d   :  { %v3724_v48 = vadd.f32 %v3722_v54, %v3714_v30  ;;  %v3725_v55 = vadd.f32 %v3722_v54, %v3715_v59  ;;  %v3726_v34 = vadd.f32 %v3722_v54, %v3716_v49  ;;  %v3727_v60 = vadd.f32 %v3722_v54, %v3717_v20 }
 0x65f   :  { %vm3728_vm3 = vcmp.ge.f32.partialorder %v3724_v48, 0.0  ;;  %vm3729_vm4 = vcmp.ge.f32.partialorder %v3725_v55, 0.0  ;;  %vm3730_vm5 = vcmp.ge.f32.partialorder %v3726_v34, 0.0  ;;  %vm3731_vm6 = vcmp.ge.f32.partialorder %v3727_v60, 0.0 }
 0x660   :  { %v3732_v52 = vmul.f32 0.01, %v3724_v48  ;;  %v3733_v38 = vmul.f32 0.01, %v3725_v55  ;;  %v3734_v41 = vmul.f32 0.01, %v3726_v34 }
 0x661   :  { %v3735_v5 = vmul.f32 0.01, %v3727_v60 }
 0x662   :  { %v3736_v10 = vsel %vm3728_vm3, %v3724_v48, %v3732_v52  ;;  %v3737_v4 = vsel %vm3729_vm4, %v3725_v55, %v3733_v38  ;;  %v3738_v9 = vsel %vm3730_vm5, %v3726_v34, %v3734_v41 }
 0x663   :  { %v3739_v12 = vsel %vm3731_vm6, %v3727_v60, %v3735_v5  ;;  %3740 = vst [vmem:[%s7629_s4] sm:$0xff] %v3736_v10 }
 0x664   :  { %3741 = vst [vmem:[%s7629_s4 + $0x8] sm:$0xff] %v3737_v4 }
 0x665   :  { %3765 = vst [vmem:[%s7629_s4 + $0x10] sm:$0xff] %v3738_v9 }
 0x666   :  { %3766 = vst [vmem:[%s7629_s4 + $0x18] sm:$0xff] %v3739_v12 }

</bundles_post_ra>
